<compile_context>
chip_gen: v7x
topology: tpu7x:2x2x1
jax: 0.10.0
libtpu: 0.0.40
codegen_flags: <defaults>
</compile_context>

<pallas_src>
import functools
import math

import jax
import jax.numpy as jnp
from jax.experimental import pallas as pl
from jax.experimental.pallas import tpu as pltpu


# ---------------------------------------------------------------------------
# Pallas kernel: full Set2Set forward for one set (N, D) -> (N, 1) int32 indices
# (one grid step per set in the batch)
# ---------------------------------------------------------------------------
def _set2set_kernel(x_ref, we_ref, be_ref, wd_ref, bd_ref,
                    w1_ref, w2t_ref, w3_ref, w4t_ref, w5_ref, w6_ref, w7t_ref,
                    out_ref, *, num_step_encoder):
    n, d = x_ref.shape
    x = x_ref[...]                                   # (N, D)
    we, be = we_ref[...], be_ref[...]                # encoder gate weights (2D, 4D), (1, 4D)
    wd, bd = wd_ref[...], bd_ref[...]                # decoder gate weights
    w1, w2t = w1_ref[...], w2t_ref[...]
    w3, w4t = w3_ref[...], w4t_ref[...]
    w5, w6, w7t = w5_ref[...], w6_ref[...], w7t_ref[...]

    def lstm(h, read, mem, w, b):
        # Single fused gate matmul: LHS = [h || read] (lane concat, XLU slot),
        # gates laid out [forget | input | output | memory] along lanes.
        hr = jnp.concatenate([h, read], axis=1)                               # (1, 2D)
        g = jnp.dot(hr, w, preferred_element_type=jnp.float32) + b            # (1, 4D)
        # One sigmoid + one tanh pass over the full gate row, then lane-slice.
        sg = jax.nn.sigmoid(g)
        tg = jnp.tanh(g)
        ft, it, ot = sg[:, 0:d], sg[:, d:2 * d], sg[:, 2 * d:3 * d]
        ct = tg[:, 3 * d:4 * d]
        mem = ft * mem + it * ct
        h = ot * jnp.tanh(mem)
        return h, mem

    def attend(h, w, w_vt):
        # energy_i = tanh(h @ W + x_i) . w_v ; softmax over the set dim; read.
        # The degenerate (D, 1) projection is a VPU multiply + lane reduce
        # (w_vt passed transposed as a (1, D) row), not a 1-lane MXU matmul.
        e = jnp.tanh(jnp.dot(h, w, preferred_element_type=jnp.float32) + x)   # (N, D)
        energy = jnp.sum(e * w_vt, axis=1, keepdims=True)                     # (N, 1)
        m = jnp.max(energy, axis=0, keepdims=True)
        p = jnp.exp(energy - m)
        att = p / jnp.sum(p, axis=0, keepdims=True)   # exact divide: keep argmax parity
        read = jnp.sum(x * att, axis=0, keepdims=True)                        # (1, D)
        return read

    zero = jnp.zeros((1, d), jnp.float32)

    # ------------------------------- encoder -------------------------------
    def enc_body(_, carry):
        h, read, mem = carry
        h, mem = lstm(h, read, mem, we, be)
        read = attend(h, w1, w2t)
        return h, read, mem

    h, read, _ = jax.lax.fori_loop(0, num_step_encoder, enc_body,
                                   (zero, zero, zero), unroll=True)

    # ------------------------------- decoder -------------------------------
    xw6 = jnp.dot(x, w6, preferred_element_type=jnp.float32)   # loop-invariant hoist
    iota_n = jax.lax.broadcasted_iota(jnp.int32, (n, 1), 0)

    def dec_body(tt, carry):
        h, read, mem = carry
        h, mem = lstm(h, read, mem, wd, bd)
        read = attend(h, w3, w4t)
        e2 = jnp.tanh(jnp.dot(read, w5, preferred_element_type=jnp.float32) + xw6)  # (N, D)
        energy2 = jnp.sum(e2 * w7t, axis=1, keepdims=True)                          # (N, 1)
        m2 = jnp.max(energy2, axis=0, keepdims=True)                                # (1, 1)
        cand = jnp.where(energy2 >= m2, iota_n, n)                                  # (N, 1)
        idx = jnp.min(cand, axis=0, keepdims=True)              # first maximal index, (1, 1)
        out_ref[pl.ds(tt, 1), :] = idx                          # tiny dynamic store, no O(N) select
        return h, read, mem

    # Bounded unroll: full unroll only for small sets (avoids imem/vreg blowup).
    dec_unroll = True if n <= 32 else 4
    jax.lax.fori_loop(0, n, dec_body, (h, read, zero), unroll=dec_unroll)


# ---------------------------------------------------------------------------
# pallas_call wrapper: batched over independent sets (grid axis = batch)
# ---------------------------------------------------------------------------
def set2set_forward_pallas(input_sets, params, num_step_encoder):
    single = input_sets.ndim == 2
    if single:
        input_sets = input_sets[None]
    b, n, d = input_sets.shape

    args = (
        input_sets,
        params["we"], params["be"],
        params["wd"], params["bd"],
        params["w1"], params["w2"].T,
        params["w3"], params["w4"].T,
        params["w5"], params["w6"], params["w7"].T,
    )

    def const_spec(shape):
        # Full-array block, constant index_map -> stays VMEM-resident across
        # grid steps (no per-set weight re-DMA).
        return pl.BlockSpec(shape, lambda i, _nd=len(shape): (0,) * _nd)

    in_specs = [
        pl.BlockSpec((None, n, d), lambda i: (i, 0, 0)),       # one set per grid step
        const_spec((2 * d, 4 * d)), const_spec((1, 4 * d)),    # encoder gates
        const_spec((2 * d, 4 * d)), const_spec((1, 4 * d)),    # decoder gates
        const_spec((d, d)), const_spec((1, d)),                # W1, W2^T
        const_spec((d, d)), const_spec((1, d)),                # W3, W4^T
        const_spec((d, d)), const_spec((d, d)),                # W5, W6
        const_spec((1, d)),                                    # W7^T
    ]

    kernel = functools.partial(_set2set_kernel, num_step_encoder=num_step_encoder)
    out = pl.pallas_call(
        kernel,
        out_shape=jax.ShapeDtypeStruct((b, n, 1), jnp.int32),
        grid=(b,),
        in_specs=in_specs,
        out_specs=pl.BlockSpec((None, n, 1), lambda i: (i, 0, 0)),
        compiler_params=pltpu.CompilerParams(
            dimension_semantics=("parallel",)),    # megacore: split batch across TCs
    )(*args)

    out = out[..., 0]                # (B, N); torch returns int64, int32 is sufficient
    return out[0] if single else out


# ---------------------------------------------------------------------------
# Parameter construction (mirrors Set2Set._init_param: xavier_uniform, zero bias)
# ---------------------------------------------------------------------------
def _xavier_uniform(key, fan_in, fan_out):
    limit = math.sqrt(6.0 / (fan_in + fan_out))
    return jax.random.uniform(key, (fan_in, fan_out), jnp.float32, -limit, limit)


def make_params(key, d):
    keys = jax.random.split(key, 15)

    def lstm_params(ks):
        # gate order: [forget, input, output, memory]; each Linear(2D -> D)
        ws = [_xavier_uniform(k, 2 * d, d) for k in ks]
        return jnp.concatenate(ws, axis=1), jnp.zeros((1, 4 * d), jnp.float32)

    we, be = lstm_params(keys[0:4])
    wd, bd = lstm_params(keys[4:8])
    return dict(
        we=we, be=be, wd=wd, bd=bd,
        w1=_xavier_uniform(keys[8], d, d),
        w2=_xavier_uniform(keys[9], d, 1),
        w3=_xavier_uniform(keys[10], d, d),
        w4=_xavier_uniform(keys[11], d, 1),
        w5=_xavier_uniform(keys[12], d, d),
        w6=_xavier_uniform(keys[13], d, d),
        w7=_xavier_uniform(keys[14], d, 1),
    )


# ---------------------------------------------------------------------------
# Pure-JAX reference (mirrors the PyTorch module exactly, single set)
# ---------------------------------------------------------------------------
def set2set_forward_ref(input_set, params, num_step_encoder):
    n, d = input_set.shape

    def lstm(h2d, mem, w, b):
        g = h2d @ w + b
        ft = jax.nn.sigmoid(g[:, 0:d])
        it = jax.nn.sigmoid(g[:, d:2 * d])
        ot = jax.nn.sigmoid(g[:, 2 * d:3 * d])
        ct = jnp.tanh(g[:, 3 * d:4 * d])
        mem = ft * mem + it * ct
        return ot * jnp.tanh(mem), mem

    hidden = jnp.zeros((1, 2 * d), jnp.float32)
    memory = jnp.zeros((1, d), jnp.float32)
    for _ in range(num_step_encoder):
        h, memory = lstm(hidden, memory, params["we"], params["be"])
        energy = jnp.tanh(h @ params["w1"] + input_set) @ params["w2"]
        att = jax.nn.softmax(energy, axis=0)
        read = jnp.sum(input_set * att, axis=0, keepdims=True)
        hidden = jnp.concatenate([h, read], axis=1)

    memory = jnp.zeros((1, d), jnp.float32)
    outs = []
    for _ in range(n):
        h, memory = lstm(hidden, memory, params["wd"], params["bd"])
        energy = jnp.tanh(h @ params["w3"] + input_set) @ params["w4"]
        att = jax.nn.softmax(energy, axis=0)
        read = jnp.sum(input_set * att, axis=0, keepdims=True)
        hidden = jnp.concatenate([h, read], axis=1)
        e2 = jnp.tanh(read @ params["w5"] + input_set @ params["w6"]) @ params["w7"]
        outs.append(jnp.argmax(e2).astype(jnp.int32))
    return jnp.stack(outs)


# ---------------------------------------------------------------------------
if __name__ == "__main__":
    B, N, D = 2, 8, 32           # batch of sets, num_element, element_dim (4*D = 128 lanes)
    NUM_STEP_ENCODER = 4

    key = jax.random.PRNGKey(0)
    k_p, k_x = jax.random.split(key)
    params = make_params(k_p, D)
    input_sets = jax.random.normal(k_x, (B, N, D), jnp.float32)

    out = jax.block_until_ready(
        set2set_forward_pallas(input_sets, params, NUM_STEP_ENCODER))
    ref = jnp.stack([set2set_forward_ref(input_sets[i], params, NUM_STEP_ENCODER)
                     for i in range(B)])
    ref = jax.block_until_ready(ref)

    assert out.shape == (B, N), out.shape
    assert jnp.array_equal(out, ref), (out, ref)
    print("KERNEL_OK")
</pallas_src>

<mosaic_0001>
module attributes {stable_mosaic.version = 11 : i64} {
  func.func @_set2set_kernel(%arg0: i32, %arg1: memref<1x8x32xf32, #tpu.memory_space<vmem>>, %arg2: memref<64x128xf32, #tpu.memory_space<vmem>>, %arg3: memref<1x128xf32, #tpu.memory_space<vmem>>, %arg4: memref<64x128xf32, #tpu.memory_space<vmem>>, %arg5: memref<1x128xf32, #tpu.memory_space<vmem>>, %arg6: memref<32x32xf32, #tpu.memory_space<vmem>>, %arg7: memref<1x32xf32, #tpu.memory_space<vmem>>, %arg8: memref<32x32xf32, #tpu.memory_space<vmem>>, %arg9: memref<1x32xf32, #tpu.memory_space<vmem>>, %arg10: memref<32x32xf32, #tpu.memory_space<vmem>>, %arg11: memref<32x32xf32, #tpu.memory_space<vmem>>, %arg12: memref<1x32xf32, #tpu.memory_space<vmem>>, %arg13: memref<1x8x1xi32, #tpu.memory_space<vmem>>) attributes {dimension_semantics = [#tpu.dimension_semantics<parallel>], iteration_bounds = array<i64: 2>, scalar_prefetch = 0 : i64, scratch_operands = 0 : i64, tpu.core_type = #tpu.core_type<tc>, window_params = [{transform_indices = @transform_0, window_bounds = array<i64: 1, 8, 32>}, {pipeline_mode = #tpu.pipeline_mode<synchronous>, transform_indices = @transform_1, window_bounds = array<i64: 64, 128>}, {pipeline_mode = #tpu.pipeline_mode<synchronous>, transform_indices = @transform_2, window_bounds = array<i64: 1, 128>}, {pipeline_mode = #tpu.pipeline_mode<synchronous>, transform_indices = @transform_3, window_bounds = array<i64: 64, 128>}, {pipeline_mode = #tpu.pipeline_mode<synchronous>, transform_indices = @transform_4, window_bounds = array<i64: 1, 128>}, {pipeline_mode = #tpu.pipeline_mode<synchronous>, transform_indices = @transform_5, window_bounds = array<i64: 32, 32>}, {pipeline_mode = #tpu.pipeline_mode<synchronous>, transform_indices = @transform_6, window_bounds = array<i64: 1, 32>}, {pipeline_mode = #tpu.pipeline_mode<synchronous>, transform_indices = @transform_7, window_bounds = array<i64: 32, 32>}, {pipeline_mode = #tpu.pipeline_mode<synchronous>, transform_indices = @transform_8, window_bounds = array<i64: 1, 32>}, {pipeline_mode = #tpu.pipeline_mode<synchronous>, transform_indices = @transform_9, window_bounds = array<i64: 32, 32>}, {pipeline_mode = #tpu.pipeline_mode<synchronous>, transform_indices = @transform_10, window_bounds = array<i64: 32, 32>}, {pipeline_mode = #tpu.pipeline_mode<synchronous>, transform_indices = @transform_11, window_bounds = array<i64: 1, 32>}, {transform_indices = @transform_12, window_bounds = array<i64: 1, 8, 1>}]} {
    %c0 = arith.constant 0 : index
    %c0_0 = arith.constant 0 : index
    %c0_1 = arith.constant 0 : index
    %0 = vector.load %arg1[%c0, %c0_0, %c0_1] : memref<1x8x32xf32, #tpu.memory_space<vmem>>, vector<1x8x32xf32>
    %1 = vector.shape_cast %0 : vector<1x8x32xf32> to vector<8x32xf32>
    %c0_2 = arith.constant 0 : index
    %c0_3 = arith.constant 0 : index
    %2 = vector.load %arg2[%c0_2, %c0_3] : memref<64x128xf32, #tpu.memory_space<vmem>>, vector<64x128xf32>
    %c0_4 = arith.constant 0 : index
    %c0_5 = arith.constant 0 : index
    %3 = vector.load %arg3[%c0_4, %c0_5] : memref<1x128xf32, #tpu.memory_space<vmem>>, vector<1x128xf32>
    %c0_6 = arith.constant 0 : index
    %c0_7 = arith.constant 0 : index
    %4 = vector.load %arg4[%c0_6, %c0_7] : memref<64x128xf32, #tpu.memory_space<vmem>>, vector<64x128xf32>
    %c0_8 = arith.constant 0 : index
    %c0_9 = arith.constant 0 : index
    %5 = vector.load %arg5[%c0_8, %c0_9] : memref<1x128xf32, #tpu.memory_space<vmem>>, vector<1x128xf32>
    %c0_10 = arith.constant 0 : index
    %c0_11 = arith.constant 0 : index
    %6 = vector.load %arg6[%c0_10, %c0_11] : memref<32x32xf32, #tpu.memory_space<vmem>>, vector<32x32xf32>
    %c0_12 = arith.constant 0 : index
    %c0_13 = arith.constant 0 : index
    %7 = vector.load %arg7[%c0_12, %c0_13] : memref<1x32xf32, #tpu.memory_space<vmem>>, vector<1x32xf32>
    %c0_14 = arith.constant 0 : index
    %c0_15 = arith.constant 0 : index
    %8 = vector.load %arg8[%c0_14, %c0_15] : memref<32x32xf32, #tpu.memory_space<vmem>>, vector<32x32xf32>
    %c0_16 = arith.constant 0 : index
    %c0_17 = arith.constant 0 : index
    %9 = vector.load %arg9[%c0_16, %c0_17] : memref<1x32xf32, #tpu.memory_space<vmem>>, vector<1x32xf32>
    %c0_18 = arith.constant 0 : index
    %c0_19 = arith.constant 0 : index
    %10 = vector.load %arg10[%c0_18, %c0_19] : memref<32x32xf32, #tpu.memory_space<vmem>>, vector<32x32xf32>
    %c0_20 = arith.constant 0 : index
    %c0_21 = arith.constant 0 : index
    %11 = vector.load %arg11[%c0_20, %c0_21] : memref<32x32xf32, #tpu.memory_space<vmem>>, vector<32x32xf32>
    %c0_22 = arith.constant 0 : index
    %c0_23 = arith.constant 0 : index
    %12 = vector.load %arg12[%c0_22, %c0_23] : memref<1x32xf32, #tpu.memory_space<vmem>>, vector<1x32xf32>
    %cst = arith.constant 0.000000e+00 : f32
    %13 = vector.broadcast %cst : f32 to vector<1x32xf32>
    %c0_i32 = arith.constant 0 : i32
    %14 = tpu.concatenate %13, %13 in 1 : vector<1x32xf32>, vector<1x32xf32> -> vector<1x64xf32>
    %cst_24 = arith.constant dense<0.000000e+00> : vector<1x128xf32>
    %15 = tpu.matmul %14, %2, %cst_24 {dimension_numbers = #tpu.dot_dimension_numbers<[1], [0], [0], [1], [0, 0, 1, 1], [], []>} : vector<1x64xf32>, vector<64x128xf32>, vector<1x128xf32> -> vector<1x128xf32>
    %16 = arith.addf %15, %3 : vector<1x128xf32>
    %17 = arith.negf %16 : vector<1x128xf32>
    %18 = math.exp %17 : vector<1x128xf32>
    %cst_25 = arith.constant 1.000000e+00 : f32
    %19 = vector.broadcast %cst_25 : f32 to vector<1x128xf32>
    %20 = arith.addf %19, %18 : vector<1x128xf32>
    %21 = arith.divf %19, %20 : vector<1x128xf32>
    %22 = math.tanh %16 : vector<1x128xf32>
    %23 = vector.extract_strided_slice %21 {offsets = [0, 0], sizes = [1, 32], strides = [1, 1]} : vector<1x128xf32> to vector<1x32xf32>
    %24 = vector.extract_strided_slice %21 {offsets = [0, 32], sizes = [1, 32], strides = [1, 1]} : vector<1x128xf32> to vector<1x32xf32>
    %25 = vector.extract_strided_slice %21 {offsets = [0, 64], sizes = [1, 32], strides = [1, 1]} : vector<1x128xf32> to vector<1x32xf32>
    %26 = vector.extract_strided_slice %22 {offsets = [0, 96], sizes = [1, 32], strides = [1, 1]} : vector<1x128xf32> to vector<1x32xf32>
    %27 = arith.mulf %23, %13 : vector<1x32xf32>
    %28 = arith.mulf %24, %26 : vector<1x32xf32>
    %29 = arith.addf %27, %28 : vector<1x32xf32>
    %30 = math.tanh %29 : vector<1x32xf32>
    %31 = arith.mulf %25, %30 : vector<1x32xf32>
    %cst_26 = arith.constant dense<0.000000e+00> : vector<1x32xf32>
    %32 = tpu.matmul %31, %6, %cst_26 {dimension_numbers = #tpu.dot_dimension_numbers<[1], [0], [0], [1], [0, 0, 1, 1], [], []>} : vector<1x32xf32>, vector<32x32xf32>, vector<1x32xf32> -> vector<1x32xf32>
    %33 = vector.broadcast %32 : vector<1x32xf32> to vector<8x32xf32>
    %34 = arith.addf %33, %1 : vector<8x32xf32>
    %35 = math.tanh %34 : vector<8x32xf32>
    %36 = vector.broadcast %7 : vector<1x32xf32> to vector<8x32xf32>
    %37 = arith.mulf %35, %36 : vector<8x32xf32>
    %cst_27 = arith.constant dense<0.000000e+00> : vector<8xf32>
    %38 = vector.multi_reduction <add>, %37, %cst_27 [1] : vector<8x32xf32> to vector<8xf32>
    %39 = vector.shape_cast %38 : vector<8xf32> to vector<8x1xf32>
    %cst_28 = arith.constant dense<0xFF800000> : vector<1xf32>
    %40 = vector.multi_reduction <maximumf>, %39, %cst_28 [0] : vector<8x1xf32> to vector<1xf32>
    %41 = vector.shape_cast %40 : vector<1xf32> to vector<1x1xf32>
    %42 = vector.broadcast %41 : vector<1x1xf32> to vector<8x1xf32>
    %43 = arith.subf %39, %42 : vector<8x1xf32>
    %44 = math.exp %43 : vector<8x1xf32>
    %cst_29 = arith.constant dense<0.000000e+00> : vector<1xf32>
    %45 = vector.multi_reduction <add>, %44, %cst_29 [0] : vector<8x1xf32> to vector<1xf32>
    %46 = vector.shape_cast %45 : vector<1xf32> to vector<1x1xf32>
    %47 = vector.broadcast %46 : vector<1x1xf32> to vector<8x1xf32>
    %48 = arith.divf %44, %47 : vector<8x1xf32>
    %49 = vector.broadcast %48 : vector<8x1xf32> to vector<8x32xf32>
    %50 = arith.mulf %1, %49 : vector<8x32xf32>
    %cst_30 = arith.constant dense<0.000000e+00> : vector<32xf32>
    %51 = vector.multi_reduction <add>, %50, %cst_30 [0] : vector<8x32xf32> to vector<32xf32>
    %52 = vector.shape_cast %51 : vector<32xf32> to vector<1x32xf32>
    %c1_i32 = arith.constant 1 : i32
    %53 = tpu.concatenate %31, %52 in 1 : vector<1x32xf32>, vector<1x32xf32> -> vector<1x64xf32>
    %cst_31 = arith.constant dense<0.000000e+00> : vector<1x128xf32>
    %54 = tpu.matmul %53, %2, %cst_31 {dimension_numbers = #tpu.dot_dimension_numbers<[1], [0], [0], [1], [0, 0, 1, 1], [], []>} : vector<1x64xf32>, vector<64x128xf32>, vector<1x128xf32> -> vector<1x128xf32>
    %55 = arith.addf %54, %3 : vector<1x128xf32>
    %56 = arith.negf %55 : vector<1x128xf32>
    %57 = math.exp %56 : vector<1x128xf32>
    %cst_32 = arith.constant 1.000000e+00 : f32
    %58 = vector.broadcast %cst_32 : f32 to vector<1x128xf32>
    %59 = arith.addf %58, %57 : vector<1x128xf32>
    %60 = arith.divf %58, %59 : vector<1x128xf32>
    %61 = math.tanh %55 : vector<1x128xf32>
    %62 = vector.extract_strided_slice %60 {offsets = [0, 0], sizes = [1, 32], strides = [1, 1]} : vector<1x128xf32> to vector<1x32xf32>
    %63 = vector.extract_strided_slice %60 {offsets = [0, 32], sizes = [1, 32], strides = [1, 1]} : vector<1x128xf32> to vector<1x32xf32>
    %64 = vector.extract_strided_slice %60 {offsets = [0, 64], sizes = [1, 32], strides = [1, 1]} : vector<1x128xf32> to vector<1x32xf32>
    %65 = vector.extract_strided_slice %61 {offsets = [0, 96], sizes = [1, 32], strides = [1, 1]} : vector<1x128xf32> to vector<1x32xf32>
    %66 = arith.mulf %62, %29 : vector<1x32xf32>
    %67 = arith.mulf %63, %65 : vector<1x32xf32>
    %68 = arith.addf %66, %67 : vector<1x32xf32>
    %69 = math.tanh %68 : vector<1x32xf32>
    %70 = arith.mulf %64, %69 : vector<1x32xf32>
    %cst_33 = arith.constant dense<0.000000e+00> : vector<1x32xf32>
    %71 = tpu.matmul %70, %6, %cst_33 {dimension_numbers = #tpu.dot_dimension_numbers<[1], [0], [0], [1], [0, 0, 1, 1], [], []>} : vector<1x32xf32>, vector<32x32xf32>, vector<1x32xf32> -> vector<1x32xf32>
    %72 = vector.broadcast %71 : vector<1x32xf32> to vector<8x32xf32>
    %73 = arith.addf %72, %1 : vector<8x32xf32>
    %74 = math.tanh %73 : vector<8x32xf32>
    %75 = vector.broadcast %7 : vector<1x32xf32> to vector<8x32xf32>
    %76 = arith.mulf %74, %75 : vector<8x32xf32>
    %cst_34 = arith.constant dense<0.000000e+00> : vector<8xf32>
    %77 = vector.multi_reduction <add>, %76, %cst_34 [1] : vector<8x32xf32> to vector<8xf32>
    %78 = vector.shape_cast %77 : vector<8xf32> to vector<8x1xf32>
    %cst_35 = arith.constant dense<0xFF800000> : vector<1xf32>
    %79 = vector.multi_reduction <maximumf>, %78, %cst_35 [0] : vector<8x1xf32> to vector<1xf32>
    %80 = vector.shape_cast %79 : vector<1xf32> to vector<1x1xf32>
    %81 = vector.broadcast %80 : vector<1x1xf32> to vector<8x1xf32>
    %82 = arith.subf %78, %81 : vector<8x1xf32>
    %83 = math.exp %82 : vector<8x1xf32>
    %cst_36 = arith.constant dense<0.000000e+00> : vector<1xf32>
    %84 = vector.multi_reduction <add>, %83, %cst_36 [0] : vector<8x1xf32> to vector<1xf32>
    %85 = vector.shape_cast %84 : vector<1xf32> to vector<1x1xf32>
    %86 = vector.broadcast %85 : vector<1x1xf32> to vector<8x1xf32>
    %87 = arith.divf %83, %86 : vector<8x1xf32>
    %88 = vector.broadcast %87 : vector<8x1xf32> to vector<8x32xf32>
    %89 = arith.mulf %1, %88 : vector<8x32xf32>
    %cst_37 = arith.constant dense<0.000000e+00> : vector<32xf32>
    %90 = vector.multi_reduction <add>, %89, %cst_37 [0] : vector<8x32xf32> to vector<32xf32>
    %91 = vector.shape_cast %90 : vector<32xf32> to vector<1x32xf32>
    %c2_i32 = arith.constant 2 : i32
    %92 = tpu.concatenate %70, %91 in 1 : vector<1x32xf32>, vector<1x32xf32> -> vector<1x64xf32>
    %cst_38 = arith.constant dense<0.000000e+00> : vector<1x128xf32>
    %93 = tpu.matmul %92, %2, %cst_38 {dimension_numbers = #tpu.dot_dimension_numbers<[1], [0], [0], [1], [0, 0, 1, 1], [], []>} : vector<1x64xf32>, vector<64x128xf32>, vector<1x128xf32> -> vector<1x128xf32>
    %94 = arith.addf %93, %3 : vector<1x128xf32>
    %95 = arith.negf %94 : vector<1x128xf32>
    %96 = math.exp %95 : vector<1x128xf32>
    %cst_39 = arith.constant 1.000000e+00 : f32
    %97 = vector.broadcast %cst_39 : f32 to vector<1x128xf32>
    %98 = arith.addf %97, %96 : vector<1x128xf32>
    %99 = arith.divf %97, %98 : vector<1x128xf32>
    %100 = math.tanh %94 : vector<1x128xf32>
    %101 = vector.extract_strided_slice %99 {offsets = [0, 0], sizes = [1, 32], strides = [1, 1]} : vector<1x128xf32> to vector<1x32xf32>
    %102 = vector.extract_strided_slice %99 {offsets = [0, 32], sizes = [1, 32], strides = [1, 1]} : vector<1x128xf32> to vector<1x32xf32>
    %103 = vector.extract_strided_slice %99 {offsets = [0, 64], sizes = [1, 32], strides = [1, 1]} : vector<1x128xf32> to vector<1x32xf32>
    %104 = vector.extract_strided_slice %100 {offsets = [0, 96], sizes = [1, 32], strides = [1, 1]} : vector<1x128xf32> to vector<1x32xf32>
    %105 = arith.mulf %101, %68 : vector<1x32xf32>
    %106 = arith.mulf %102, %104 : vector<1x32xf32>
    %107 = arith.addf %105, %106 : vector<1x32xf32>
    %108 = math.tanh %107 : vector<1x32xf32>
    %109 = arith.mulf %103, %108 : vector<1x32xf32>
    %cst_40 = arith.constant dense<0.000000e+00> : vector<1x32xf32>
    %110 = tpu.matmul %109, %6, %cst_40 {dimension_numbers = #tpu.dot_dimension_numbers<[1], [0], [0], [1], [0, 0, 1, 1], [], []>} : vector<1x32xf32>, vector<32x32xf32>, vector<1x32xf32> -> vector<1x32xf32>
    %111 = vector.broadcast %110 : vector<1x32xf32> to vector<8x32xf32>
    %112 = arith.addf %111, %1 : vector<8x32xf32>
    %113 = math.tanh %112 : vector<8x32xf32>
    %114 = vector.broadcast %7 : vector<1x32xf32> to vector<8x32xf32>
    %115 = arith.mulf %113, %114 : vector<8x32xf32>
    %cst_41 = arith.constant dense<0.000000e+00> : vector<8xf32>
    %116 = vector.multi_reduction <add>, %115, %cst_41 [1] : vector<8x32xf32> to vector<8xf32>
    %117 = vector.shape_cast %116 : vector<8xf32> to vector<8x1xf32>
    %cst_42 = arith.constant dense<0xFF800000> : vector<1xf32>
    %118 = vector.multi_reduction <maximumf>, %117, %cst_42 [0] : vector<8x1xf32> to vector<1xf32>
    %119 = vector.shape_cast %118 : vector<1xf32> to vector<1x1xf32>
    %120 = vector.broadcast %119 : vector<1x1xf32> to vector<8x1xf32>
    %121 = arith.subf %117, %120 : vector<8x1xf32>
    %122 = math.exp %121 : vector<8x1xf32>
    %cst_43 = arith.constant dense<0.000000e+00> : vector<1xf32>
    %123 = vector.multi_reduction <add>, %122, %cst_43 [0] : vector<8x1xf32> to vector<1xf32>
    %124 = vector.shape_cast %123 : vector<1xf32> to vector<1x1xf32>
    %125 = vector.broadcast %124 : vector<1x1xf32> to vector<8x1xf32>
    %126 = arith.divf %122, %125 : vector<8x1xf32>
    %127 = vector.broadcast %126 : vector<8x1xf32> to vector<8x32xf32>
    %128 = arith.mulf %1, %127 : vector<8x32xf32>
    %cst_44 = arith.constant dense<0.000000e+00> : vector<32xf32>
    %129 = vector.multi_reduction <add>, %128, %cst_44 [0] : vector<8x32xf32> to vector<32xf32>
    %130 = vector.shape_cast %129 : vector<32xf32> to vector<1x32xf32>
    %c3_i32 = arith.constant 3 : i32
    %131 = tpu.concatenate %109, %130 in 1 : vector<1x32xf32>, vector<1x32xf32> -> vector<1x64xf32>
    %cst_45 = arith.constant dense<0.000000e+00> : vector<1x128xf32>
    %132 = tpu.matmul %131, %2, %cst_45 {dimension_numbers = #tpu.dot_dimension_numbers<[1], [0], [0], [1], [0, 0, 1, 1], [], []>} : vector<1x64xf32>, vector<64x128xf32>, vector<1x128xf32> -> vector<1x128xf32>
    %133 = arith.addf %132, %3 : vector<1x128xf32>
    %134 = arith.negf %133 : vector<1x128xf32>
    %135 = math.exp %134 : vector<1x128xf32>
    %cst_46 = arith.constant 1.000000e+00 : f32
    %136 = vector.broadcast %cst_46 : f32 to vector<1x128xf32>
    %137 = arith.addf %136, %135 : vector<1x128xf32>
    %138 = arith.divf %136, %137 : vector<1x128xf32>
    %139 = math.tanh %133 : vector<1x128xf32>
    %140 = vector.extract_strided_slice %138 {offsets = [0, 0], sizes = [1, 32], strides = [1, 1]} : vector<1x128xf32> to vector<1x32xf32>
    %141 = vector.extract_strided_slice %138 {offsets = [0, 32], sizes = [1, 32], strides = [1, 1]} : vector<1x128xf32> to vector<1x32xf32>
    %142 = vector.extract_strided_slice %138 {offsets = [0, 64], sizes = [1, 32], strides = [1, 1]} : vector<1x128xf32> to vector<1x32xf32>
    %143 = vector.extract_strided_slice %139 {offsets = [0, 96], sizes = [1, 32], strides = [1, 1]} : vector<1x128xf32> to vector<1x32xf32>
    %144 = arith.mulf %140, %107 : vector<1x32xf32>
    %145 = arith.mulf %141, %143 : vector<1x32xf32>
    %146 = arith.addf %144, %145 : vector<1x32xf32>
    %147 = math.tanh %146 : vector<1x32xf32>
    %148 = arith.mulf %142, %147 : vector<1x32xf32>
    %cst_47 = arith.constant dense<0.000000e+00> : vector<1x32xf32>
    %149 = tpu.matmul %148, %6, %cst_47 {dimension_numbers = #tpu.dot_dimension_numbers<[1], [0], [0], [1], [0, 0, 1, 1], [], []>} : vector<1x32xf32>, vector<32x32xf32>, vector<1x32xf32> -> vector<1x32xf32>
    %150 = vector.broadcast %149 : vector<1x32xf32> to vector<8x32xf32>
    %151 = arith.addf %150, %1 : vector<8x32xf32>
    %152 = math.tanh %151 : vector<8x32xf32>
    %153 = vector.broadcast %7 : vector<1x32xf32> to vector<8x32xf32>
    %154 = arith.mulf %152, %153 : vector<8x32xf32>
    %cst_48 = arith.constant dense<0.000000e+00> : vector<8xf32>
    %155 = vector.multi_reduction <add>, %154, %cst_48 [1] : vector<8x32xf32> to vector<8xf32>
    %156 = vector.shape_cast %155 : vector<8xf32> to vector<8x1xf32>
    %cst_49 = arith.constant dense<0xFF800000> : vector<1xf32>
    %157 = vector.multi_reduction <maximumf>, %156, %cst_49 [0] : vector<8x1xf32> to vector<1xf32>
    %158 = vector.shape_cast %157 : vector<1xf32> to vector<1x1xf32>
    %159 = vector.broadcast %158 : vector<1x1xf32> to vector<8x1xf32>
    %160 = arith.subf %156, %159 : vector<8x1xf32>
    %161 = math.exp %160 : vector<8x1xf32>
    %cst_50 = arith.constant dense<0.000000e+00> : vector<1xf32>
    %162 = vector.multi_reduction <add>, %161, %cst_50 [0] : vector<8x1xf32> to vector<1xf32>
    %163 = vector.shape_cast %162 : vector<1xf32> to vector<1x1xf32>
    %164 = vector.broadcast %163 : vector<1x1xf32> to vector<8x1xf32>
    %165 = arith.divf %161, %164 : vector<8x1xf32>
    %166 = vector.broadcast %165 : vector<8x1xf32> to vector<8x32xf32>
    %167 = arith.mulf %1, %166 : vector<8x32xf32>
    %cst_51 = arith.constant dense<0.000000e+00> : vector<32xf32>
    %168 = vector.multi_reduction <add>, %167, %cst_51 [0] : vector<8x32xf32> to vector<32xf32>
    %169 = vector.shape_cast %168 : vector<32xf32> to vector<1x32xf32>
    %cst_52 = arith.constant dense<0.000000e+00> : vector<8x32xf32>
    %170 = tpu.matmul %1, %11, %cst_52 {dimension_numbers = #tpu.dot_dimension_numbers<[1], [0], [0], [1], [0, 0, 1, 1], [], []>} : vector<8x32xf32>, vector<32x32xf32>, vector<8x32xf32> -> vector<8x32xf32>
    %171 = tpu.iota {dimensions = array<i32: 0>} : vector<8x1xi32>
    %c0_i32_53 = arith.constant 0 : i32
    %172 = tpu.concatenate %148, %169 in 1 : vector<1x32xf32>, vector<1x32xf32> -> vector<1x64xf32>
    %cst_54 = arith.constant dense<0.000000e+00> : vector<1x128xf32>
    %173 = tpu.matmul %172, %4, %cst_54 {dimension_numbers = #tpu.dot_dimension_numbers<[1], [0], [0], [1], [0, 0, 1, 1], [], []>} : vector<1x64xf32>, vector<64x128xf32>, vector<1x128xf32> -> vector<1x128xf32>
    %174 = arith.addf %173, %5 : vector<1x128xf32>
    %175 = arith.negf %174 : vector<1x128xf32>
    %176 = math.exp %175 : vector<1x128xf32>
    %cst_55 = arith.constant 1.000000e+00 : f32
    %177 = vector.broadcast %cst_55 : f32 to vector<1x128xf32>
    %178 = arith.addf %177, %176 : vector<1x128xf32>
    %179 = arith.divf %177, %178 : vector<1x128xf32>
    %180 = math.tanh %174 : vector<1x128xf32>
    %181 = vector.extract_strided_slice %179 {offsets = [0, 0], sizes = [1, 32], strides = [1, 1]} : vector<1x128xf32> to vector<1x32xf32>
    %182 = vector.extract_strided_slice %179 {offsets = [0, 32], sizes = [1, 32], strides = [1, 1]} : vector<1x128xf32> to vector<1x32xf32>
    %183 = vector.extract_strided_slice %179 {offsets = [0, 64], sizes = [1, 32], strides = [1, 1]} : vector<1x128xf32> to vector<1x32xf32>
    %184 = vector.extract_strided_slice %180 {offsets = [0, 96], sizes = [1, 32], strides = [1, 1]} : vector<1x128xf32> to vector<1x32xf32>
    %185 = arith.mulf %181, %13 : vector<1x32xf32>
    %186 = arith.mulf %182, %184 : vector<1x32xf32>
    %187 = arith.addf %185, %186 : vector<1x32xf32>
    %188 = math.tanh %187 : vector<1x32xf32>
    %189 = arith.mulf %183, %188 : vector<1x32xf32>
    %cst_56 = arith.constant dense<0.000000e+00> : vector<1x32xf32>
    %190 = tpu.matmul %189, %8, %cst_56 {dimension_numbers = #tpu.dot_dimension_numbers<[1], [0], [0], [1], [0, 0, 1, 1], [], []>} : vector<1x32xf32>, vector<32x32xf32>, vector<1x32xf32> -> vector<1x32xf32>
    %191 = vector.broadcast %190 : vector<1x32xf32> to vector<8x32xf32>
    %192 = arith.addf %191, %1 : vector<8x32xf32>
    %193 = math.tanh %192 : vector<8x32xf32>
    %194 = vector.broadcast %9 : vector<1x32xf32> to vector<8x32xf32>
    %195 = arith.mulf %193, %194 : vector<8x32xf32>
    %cst_57 = arith.constant dense<0.000000e+00> : vector<8xf32>
    %196 = vector.multi_reduction <add>, %195, %cst_57 [1] : vector<8x32xf32> to vector<8xf32>
    %197 = vector.shape_cast %196 : vector<8xf32> to vector<8x1xf32>
    %cst_58 = arith.constant dense<0xFF800000> : vector<1xf32>
    %198 = vector.multi_reduction <maximumf>, %197, %cst_58 [0] : vector<8x1xf32> to vector<1xf32>
    %199 = vector.shape_cast %198 : vector<1xf32> to vector<1x1xf32>
    %200 = vector.broadcast %199 : vector<1x1xf32> to vector<8x1xf32>
    %201 = arith.subf %197, %200 : vector<8x1xf32>
    %202 = math.exp %201 : vector<8x1xf32>
    %cst_59 = arith.constant dense<0.000000e+00> : vector<1xf32>
    %203 = vector.multi_reduction <add>, %202, %cst_59 [0] : vector<8x1xf32> to vector<1xf32>
    %204 = vector.shape_cast %203 : vector<1xf32> to vector<1x1xf32>
    %205 = vector.broadcast %204 : vector<1x1xf32> to vector<8x1xf32>
    %206 = arith.divf %202, %205 : vector<8x1xf32>
    %207 = vector.broadcast %206 : vector<8x1xf32> to vector<8x32xf32>
    %208 = arith.mulf %1, %207 : vector<8x32xf32>
    %cst_60 = arith.constant dense<0.000000e+00> : vector<32xf32>
    %209 = vector.multi_reduction <add>, %208, %cst_60 [0] : vector<8x32xf32> to vector<32xf32>
    %210 = vector.shape_cast %209 : vector<32xf32> to vector<1x32xf32>
    %cst_61 = arith.constant dense<0.000000e+00> : vector<1x32xf32>
    %211 = tpu.matmul %210, %10, %cst_61 {dimension_numbers = #tpu.dot_dimension_numbers<[1], [0], [0], [1], [0, 0, 1, 1], [], []>} : vector<1x32xf32>, vector<32x32xf32>, vector<1x32xf32> -> vector<1x32xf32>
    %212 = vector.broadcast %211 : vector<1x32xf32> to vector<8x32xf32>
    %213 = arith.addf %212, %170 : vector<8x32xf32>
    %214 = math.tanh %213 : vector<8x32xf32>
    %215 = vector.broadcast %12 : vector<1x32xf32> to vector<8x32xf32>
    %216 = arith.mulf %214, %215 : vector<8x32xf32>
    %cst_62 = arith.constant dense<0.000000e+00> : vector<8xf32>
    %217 = vector.multi_reduction <add>, %216, %cst_62 [1] : vector<8x32xf32> to vector<8xf32>
    %218 = vector.shape_cast %217 : vector<8xf32> to vector<8x1xf32>
    %cst_63 = arith.constant dense<0xFF800000> : vector<1xf32>
    %219 = vector.multi_reduction <maximumf>, %218, %cst_63 [0] : vector<8x1xf32> to vector<1xf32>
    %220 = vector.shape_cast %219 : vector<1xf32> to vector<1x1xf32>
    %221 = vector.broadcast %220 : vector<1x1xf32> to vector<8x1xf32>
    %222 = arith.cmpf oge, %218, %221 : vector<8x1xf32>
    %c8_i32 = arith.constant 8 : i32
    %223 = vector.broadcast %c8_i32 : i32 to vector<8x1xi32>
    %224 = arith.select %222, %171, %223 : vector<8x1xi1>, vector<8x1xi32>
    %cst_64 = arith.constant dense<2147483647> : vector<1xi32>
    %225 = vector.multi_reduction <minsi>, %224, %cst_64 [0] : vector<8x1xi32> to vector<1xi32>
    %226 = vector.shape_cast %225 : vector<1xi32> to vector<1x1xi32>
    %c0_65 = arith.constant 0 : index
    %227 = arith.index_cast %c0_i32_53 : i32 to index
    %c0_66 = arith.constant 0 : index
    %228 = vector.load %arg13[%c0_65, %227, %c0_66] : memref<1x8x1xi32, #tpu.memory_space<vmem>>, vector<1x1x1xi32>
    %229 = vector.shape_cast %228 : vector<1x1x1xi32> to vector<1x1xi32>
    %230 = vector.shape_cast %226 : vector<1x1xi32> to vector<1x1x1xi32>
    tpu.vector_store %arg13[%c0_65, %227, %c0_66], %230 {strides = array<i32>} : memref<1x8x1xi32, #tpu.memory_space<vmem>>, vector<1x1x1xi32>,
    %c1_i32_67 = arith.constant 1 : i32
    %231 = tpu.concatenate %189, %210 in 1 : vector<1x32xf32>, vector<1x32xf32> -> vector<1x64xf32>
    %cst_68 = arith.constant dense<0.000000e+00> : vector<1x128xf32>
    %232 = tpu.matmul %231, %4, %cst_68 {dimension_numbers = #tpu.dot_dimension_numbers<[1], [0], [0], [1], [0, 0, 1, 1], [], []>} : vector<1x64xf32>, vector<64x128xf32>, vector<1x128xf32> -> vector<1x128xf32>
    %233 = arith.addf %232, %5 : vector<1x128xf32>
    %234 = arith.negf %233 : vector<1x128xf32>
    %235 = math.exp %234 : vector<1x128xf32>
    %cst_69 = arith.constant 1.000000e+00 : f32
    %236 = vector.broadcast %cst_69 : f32 to vector<1x128xf32>
    %237 = arith.addf %236, %235 : vector<1x128xf32>
    %238 = arith.divf %236, %237 : vector<1x128xf32>
    %239 = math.tanh %233 : vector<1x128xf32>
    %240 = vector.extract_strided_slice %238 {offsets = [0, 0], sizes = [1, 32], strides = [1, 1]} : vector<1x128xf32> to vector<1x32xf32>
    %241 = vector.extract_strided_slice %238 {offsets = [0, 32], sizes = [1, 32], strides = [1, 1]} : vector<1x128xf32> to vector<1x32xf32>
    %242 = vector.extract_strided_slice %238 {offsets = [0, 64], sizes = [1, 32], strides = [1, 1]} : vector<1x128xf32> to vector<1x32xf32>
    %243 = vector.extract_strided_slice %239 {offsets = [0, 96], sizes = [1, 32], strides = [1, 1]} : vector<1x128xf32> to vector<1x32xf32>
    %244 = arith.mulf %240, %187 : vector<1x32xf32>
    %245 = arith.mulf %241, %243 : vector<1x32xf32>
    %246 = arith.addf %244, %245 : vector<1x32xf32>
    %247 = math.tanh %246 : vector<1x32xf32>
    %248 = arith.mulf %242, %247 : vector<1x32xf32>
    %cst_70 = arith.constant dense<0.000000e+00> : vector<1x32xf32>
    %249 = tpu.matmul %248, %8, %cst_70 {dimension_numbers = #tpu.dot_dimension_numbers<[1], [0], [0], [1], [0, 0, 1, 1], [], []>} : vector<1x32xf32>, vector<32x32xf32>, vector<1x32xf32> -> vector<1x32xf32>
    %250 = vector.broadcast %249 : vector<1x32xf32> to vector<8x32xf32>
    %251 = arith.addf %250, %1 : vector<8x32xf32>
    %252 = math.tanh %251 : vector<8x32xf32>
    %253 = vector.broadcast %9 : vector<1x32xf32> to vector<8x32xf32>
    %254 = arith.mulf %252, %253 : vector<8x32xf32>
    %cst_71 = arith.constant dense<0.000000e+00> : vector<8xf32>
    %255 = vector.multi_reduction <add>, %254, %cst_71 [1] : vector<8x32xf32> to vector<8xf32>
    %256 = vector.shape_cast %255 : vector<8xf32> to vector<8x1xf32>
    %cst_72 = arith.constant dense<0xFF800000> : vector<1xf32>
    %257 = vector.multi_reduction <maximumf>, %256, %cst_72 [0] : vector<8x1xf32> to vector<1xf32>
    %258 = vector.shape_cast %257 : vector<1xf32> to vector<1x1xf32>
    %259 = vector.broadcast %258 : vector<1x1xf32> to vector<8x1xf32>
    %260 = arith.subf %256, %259 : vector<8x1xf32>
    %261 = math.exp %260 : vector<8x1xf32>
    %cst_73 = arith.constant dense<0.000000e+00> : vector<1xf32>
    %262 = vector.multi_reduction <add>, %261, %cst_73 [0] : vector<8x1xf32> to vector<1xf32>
    %263 = vector.shape_cast %262 : vector<1xf32> to vector<1x1xf32>
    %264 = vector.broadcast %263 : vector<1x1xf32> to vector<8x1xf32>
    %265 = arith.divf %261, %264 : vector<8x1xf32>
    %266 = vector.broadcast %265 : vector<8x1xf32> to vector<8x32xf32>
    %267 = arith.mulf %1, %266 : vector<8x32xf32>
    %cst_74 = arith.constant dense<0.000000e+00> : vector<32xf32>
    %268 = vector.multi_reduction <add>, %267, %cst_74 [0] : vector<8x32xf32> to vector<32xf32>
    %269 = vector.shape_cast %268 : vector<32xf32> to vector<1x32xf32>
    %cst_75 = arith.constant dense<0.000000e+00> : vector<1x32xf32>
    %270 = tpu.matmul %269, %10, %cst_75 {dimension_numbers = #tpu.dot_dimension_numbers<[1], [0], [0], [1], [0, 0, 1, 1], [], []>} : vector<1x32xf32>, vector<32x32xf32>, vector<1x32xf32> -> vector<1x32xf32>
    %271 = vector.broadcast %270 : vector<1x32xf32> to vector<8x32xf32>
    %272 = arith.addf %271, %170 : vector<8x32xf32>
    %273 = math.tanh %272 : vector<8x32xf32>
    %274 = vector.broadcast %12 : vector<1x32xf32> to vector<8x32xf32>
    %275 = arith.mulf %273, %274 : vector<8x32xf32>
    %cst_76 = arith.constant dense<0.000000e+00> : vector<8xf32>
    %276 = vector.multi_reduction <add>, %275, %cst_76 [1] : vector<8x32xf32> to vector<8xf32>
    %277 = vector.shape_cast %276 : vector<8xf32> to vector<8x1xf32>
    %cst_77 = arith.constant dense<0xFF800000> : vector<1xf32>
    %278 = vector.multi_reduction <maximumf>, %277, %cst_77 [0] : vector<8x1xf32> to vector<1xf32>
    %279 = vector.shape_cast %278 : vector<1xf32> to vector<1x1xf32>
    %280 = vector.broadcast %279 : vector<1x1xf32> to vector<8x1xf32>
    %281 = arith.cmpf oge, %277, %280 : vector<8x1xf32>
    %c8_i32_78 = arith.constant 8 : i32
    %282 = vector.broadcast %c8_i32_78 : i32 to vector<8x1xi32>
    %283 = arith.select %281, %171, %282 : vector<8x1xi1>, vector<8x1xi32>
    %cst_79 = arith.constant dense<2147483647> : vector<1xi32>
    %284 = vector.multi_reduction <minsi>, %283, %cst_79 [0] : vector<8x1xi32> to vector<1xi32>
    %285 = vector.shape_cast %284 : vector<1xi32> to vector<1x1xi32>
    %c0_80 = arith.constant 0 : index
    %286 = arith.index_cast %c1_i32_67 : i32 to index
    %c0_81 = arith.constant 0 : index
    %287 = vector.load %arg13[%c0_80, %286, %c0_81] : memref<1x8x1xi32, #tpu.memory_space<vmem>>, vector<1x1x1xi32>
    %288 = vector.shape_cast %287 : vector<1x1x1xi32> to vector<1x1xi32>
    %289 = vector.shape_cast %285 : vector<1x1xi32> to vector<1x1x1xi32>
    tpu.vector_store %arg13[%c0_80, %286, %c0_81], %289 {strides = array<i32>} : memref<1x8x1xi32, #tpu.memory_space<vmem>>, vector<1x1x1xi32>,
    %c2_i32_82 = arith.constant 2 : i32
    %290 = tpu.concatenate %248, %269 in 1 : vector<1x32xf32>, vector<1x32xf32> -> vector<1x64xf32>
    %cst_83 = arith.constant dense<0.000000e+00> : vector<1x128xf32>
    %291 = tpu.matmul %290, %4, %cst_83 {dimension_numbers = #tpu.dot_dimension_numbers<[1], [0], [0], [1], [0, 0, 1, 1], [], []>} : vector<1x64xf32>, vector<64x128xf32>, vector<1x128xf32> -> vector<1x128xf32>
    %292 = arith.addf %291, %5 : vector<1x128xf32>
    %293 = arith.negf %292 : vector<1x128xf32>
    %294 = math.exp %293 : vector<1x128xf32>
    %cst_84 = arith.constant 1.000000e+00 : f32
    %295 = vector.broadcast %cst_84 : f32 to vector<1x128xf32>
    %296 = arith.addf %295, %294 : vector<1x128xf32>
    %297 = arith.divf %295, %296 : vector<1x128xf32>
    %298 = math.tanh %292 : vector<1x128xf32>
    %299 = vector.extract_strided_slice %297 {offsets = [0, 0], sizes = [1, 32], strides = [1, 1]} : vector<1x128xf32> to vector<1x32xf32>
    %300 = vector.extract_strided_slice %297 {offsets = [0, 32], sizes = [1, 32], strides = [1, 1]} : vector<1x128xf32> to vector<1x32xf32>
    %301 = vector.extract_strided_slice %297 {offsets = [0, 64], sizes = [1, 32], strides = [1, 1]} : vector<1x128xf32> to vector<1x32xf32>
    %302 = vector.extract_strided_slice %298 {offsets = [0, 96], sizes = [1, 32], strides = [1, 1]} : vector<1x128xf32> to vector<1x32xf32>
    %303 = arith.mulf %299, %246 : vector<1x32xf32>
    %304 = arith.mulf %300, %302 : vector<1x32xf32>
    %305 = arith.addf %303, %304 : vector<1x32xf32>
    %306 = math.tanh %305 : vector<1x32xf32>
    %307 = arith.mulf %301, %306 : vector<1x32xf32>
    %cst_85 = arith.constant dense<0.000000e+00> : vector<1x32xf32>
    %308 = tpu.matmul %307, %8, %cst_85 {dimension_numbers = #tpu.dot_dimension_numbers<[1], [0], [0], [1], [0, 0, 1, 1], [], []>} : vector<1x32xf32>, vector<32x32xf32>, vector<1x32xf32> -> vector<1x32xf32>
    %309 = vector.broadcast %308 : vector<1x32xf32> to vector<8x32xf32>
    %310 = arith.addf %309, %1 : vector<8x32xf32>
    %311 = math.tanh %310 : vector<8x32xf32>
    %312 = vector.broadcast %9 : vector<1x32xf32> to vector<8x32xf32>
    %313 = arith.mulf %311, %312 : vector<8x32xf32>
    %cst_86 = arith.constant dense<0.000000e+00> : vector<8xf32>
    %314 = vector.multi_reduction <add>, %313, %cst_86 [1] : vector<8x32xf32> to vector<8xf32>
    %315 = vector.shape_cast %314 : vector<8xf32> to vector<8x1xf32>
    %cst_87 = arith.constant dense<0xFF800000> : vector<1xf32>
    %316 = vector.multi_reduction <maximumf>, %315, %cst_87 [0] : vector<8x1xf32> to vector<1xf32>
    %317 = vector.shape_cast %316 : vector<1xf32> to vector<1x1xf32>
    %318 = vector.broadcast %317 : vector<1x1xf32> to vector<8x1xf32>
    %319 = arith.subf %315, %318 : vector<8x1xf32>
    %320 = math.exp %319 : vector<8x1xf32>
    %cst_88 = arith.constant dense<0.000000e+00> : vector<1xf32>
    %321 = vector.multi_reduction <add>, %320, %cst_88 [0] : vector<8x1xf32> to vector<1xf32>
    %322 = vector.shape_cast %321 : vector<1xf32> to vector<1x1xf32>
    %323 = vector.broadcast %322 : vector<1x1xf32> to vector<8x1xf32>
    %324 = arith.divf %320, %323 : vector<8x1xf32>
    %325 = vector.broadcast %324 : vector<8x1xf32> to vector<8x32xf32>
    %326 = arith.mulf %1, %325 : vector<8x32xf32>
    %cst_89 = arith.constant dense<0.000000e+00> : vector<32xf32>
    %327 = vector.multi_reduction <add>, %326, %cst_89 [0] : vector<8x32xf32> to vector<32xf32>
    %328 = vector.shape_cast %327 : vector<32xf32> to vector<1x32xf32>
    %cst_90 = arith.constant dense<0.000000e+00> : vector<1x32xf32>
    %329 = tpu.matmul %328, %10, %cst_90 {dimension_numbers = #tpu.dot_dimension_numbers<[1], [0], [0], [1], [0, 0, 1, 1], [], []>} : vector<1x32xf32>, vector<32x32xf32>, vector<1x32xf32> -> vector<1x32xf32>
    %330 = vector.broadcast %329 : vector<1x32xf32> to vector<8x32xf32>
    %331 = arith.addf %330, %170 : vector<8x32xf32>
    %332 = math.tanh %331 : vector<8x32xf32>
    %333 = vector.broadcast %12 : vector<1x32xf32> to vector<8x32xf32>
    %334 = arith.mulf %332, %333 : vector<8x32xf32>
    %cst_91 = arith.constant dense<0.000000e+00> : vector<8xf32>
    %335 = vector.multi_reduction <add>, %334, %cst_91 [1] : vector<8x32xf32> to vector<8xf32>
    %336 = vector.shape_cast %335 : vector<8xf32> to vector<8x1xf32>
    %cst_92 = arith.constant dense<0xFF800000> : vector<1xf32>
    %337 = vector.multi_reduction <maximumf>, %336, %cst_92 [0] : vector<8x1xf32> to vector<1xf32>
    %338 = vector.shape_cast %337 : vector<1xf32> to vector<1x1xf32>
    %339 = vector.broadcast %338 : vector<1x1xf32> to vector<8x1xf32>
    %340 = arith.cmpf oge, %336, %339 : vector<8x1xf32>
    %c8_i32_93 = arith.constant 8 : i32
    %341 = vector.broadcast %c8_i32_93 : i32 to vector<8x1xi32>
    %342 = arith.select %340, %171, %341 : vector<8x1xi1>, vector<8x1xi32>
    %cst_94 = arith.constant dense<2147483647> : vector<1xi32>
    %343 = vector.multi_reduction <minsi>, %342, %cst_94 [0] : vector<8x1xi32> to vector<1xi32>
    %344 = vector.shape_cast %343 : vector<1xi32> to vector<1x1xi32>
    %c0_95 = arith.constant 0 : index
    %345 = arith.index_cast %c2_i32_82 : i32 to index
    %c0_96 = arith.constant 0 : index
    %346 = vector.load %arg13[%c0_95, %345, %c0_96] : memref<1x8x1xi32, #tpu.memory_space<vmem>>, vector<1x1x1xi32>
    %347 = vector.shape_cast %346 : vector<1x1x1xi32> to vector<1x1xi32>
    %348 = vector.shape_cast %344 : vector<1x1xi32> to vector<1x1x1xi32>
    tpu.vector_store %arg13[%c0_95, %345, %c0_96], %348 {strides = array<i32>} : memref<1x8x1xi32, #tpu.memory_space<vmem>>, vector<1x1x1xi32>,
    %c3_i32_97 = arith.constant 3 : i32
    %349 = tpu.concatenate %307, %328 in 1 : vector<1x32xf32>, vector<1x32xf32> -> vector<1x64xf32>
    %cst_98 = arith.constant dense<0.000000e+00> : vector<1x128xf32>
    %350 = tpu.matmul %349, %4, %cst_98 {dimension_numbers = #tpu.dot_dimension_numbers<[1], [0], [0], [1], [0, 0, 1, 1], [], []>} : vector<1x64xf32>, vector<64x128xf32>, vector<1x128xf32> -> vector<1x128xf32>
    %351 = arith.addf %350, %5 : vector<1x128xf32>
    %352 = arith.negf %351 : vector<1x128xf32>
    %353 = math.exp %352 : vector<1x128xf32>
    %cst_99 = arith.constant 1.000000e+00 : f32
    %354 = vector.broadcast %cst_99 : f32 to vector<1x128xf32>
    %355 = arith.addf %354, %353 : vector<1x128xf32>
    %356 = arith.divf %354, %355 : vector<1x128xf32>
    %357 = math.tanh %351 : vector<1x128xf32>
    %358 = vector.extract_strided_slice %356 {offsets = [0, 0], sizes = [1, 32], strides = [1, 1]} : vector<1x128xf32> to vector<1x32xf32>
    %359 = vector.extract_strided_slice %356 {offsets = [0, 32], sizes = [1, 32], strides = [1, 1]} : vector<1x128xf32> to vector<1x32xf32>
    %360 = vector.extract_strided_slice %356 {offsets = [0, 64], sizes = [1, 32], strides = [1, 1]} : vector<1x128xf32> to vector<1x32xf32>
    %361 = vector.extract_strided_slice %357 {offsets = [0, 96], sizes = [1, 32], strides = [1, 1]} : vector<1x128xf32> to vector<1x32xf32>
    %362 = arith.mulf %358, %305 : vector<1x32xf32>
    %363 = arith.mulf %359, %361 : vector<1x32xf32>
    %364 = arith.addf %362, %363 : vector<1x32xf32>
    %365 = math.tanh %364 : vector<1x32xf32>
    %366 = arith.mulf %360, %365 : vector<1x32xf32>
    %cst_100 = arith.constant dense<0.000000e+00> : vector<1x32xf32>
    %367 = tpu.matmul %366, %8, %cst_100 {dimension_numbers = #tpu.dot_dimension_numbers<[1], [0], [0], [1], [0, 0, 1, 1], [], []>} : vector<1x32xf32>, vector<32x32xf32>, vector<1x32xf32> -> vector<1x32xf32>
    %368 = vector.broadcast %367 : vector<1x32xf32> to vector<8x32xf32>
    %369 = arith.addf %368, %1 : vector<8x32xf32>
    %370 = math.tanh %369 : vector<8x32xf32>
    %371 = vector.broadcast %9 : vector<1x32xf32> to vector<8x32xf32>
    %372 = arith.mulf %370, %371 : vector<8x32xf32>
    %cst_101 = arith.constant dense<0.000000e+00> : vector<8xf32>
    %373 = vector.multi_reduction <add>, %372, %cst_101 [1] : vector<8x32xf32> to vector<8xf32>
    %374 = vector.shape_cast %373 : vector<8xf32> to vector<8x1xf32>
    %cst_102 = arith.constant dense<0xFF800000> : vector<1xf32>
    %375 = vector.multi_reduction <maximumf>, %374, %cst_102 [0] : vector<8x1xf32> to vector<1xf32>
    %376 = vector.shape_cast %375 : vector<1xf32> to vector<1x1xf32>
    %377 = vector.broadcast %376 : vector<1x1xf32> to vector<8x1xf32>
    %378 = arith.subf %374, %377 : vector<8x1xf32>
    %379 = math.exp %378 : vector<8x1xf32>
    %cst_103 = arith.constant dense<0.000000e+00> : vector<1xf32>
    %380 = vector.multi_reduction <add>, %379, %cst_103 [0] : vector<8x1xf32> to vector<1xf32>
    %381 = vector.shape_cast %380 : vector<1xf32> to vector<1x1xf32>
    %382 = vector.broadcast %381 : vector<1x1xf32> to vector<8x1xf32>
    %383 = arith.divf %379, %382 : vector<8x1xf32>
    %384 = vector.broadcast %383 : vector<8x1xf32> to vector<8x32xf32>
    %385 = arith.mulf %1, %384 : vector<8x32xf32>
    %cst_104 = arith.constant dense<0.000000e+00> : vector<32xf32>
    %386 = vector.multi_reduction <add>, %385, %cst_104 [0] : vector<8x32xf32> to vector<32xf32>
    %387 = vector.shape_cast %386 : vector<32xf32> to vector<1x32xf32>
    %cst_105 = arith.constant dense<0.000000e+00> : vector<1x32xf32>
    %388 = tpu.matmul %387, %10, %cst_105 {dimension_numbers = #tpu.dot_dimension_numbers<[1], [0], [0], [1], [0, 0, 1, 1], [], []>} : vector<1x32xf32>, vector<32x32xf32>, vector<1x32xf32> -> vector<1x32xf32>
    %389 = vector.broadcast %388 : vector<1x32xf32> to vector<8x32xf32>
    %390 = arith.addf %389, %170 : vector<8x32xf32>
    %391 = math.tanh %390 : vector<8x32xf32>
    %392 = vector.broadcast %12 : vector<1x32xf32> to vector<8x32xf32>
    %393 = arith.mulf %391, %392 : vector<8x32xf32>
    %cst_106 = arith.constant dense<0.000000e+00> : vector<8xf32>
    %394 = vector.multi_reduction <add>, %393, %cst_106 [1] : vector<8x32xf32> to vector<8xf32>
    %395 = vector.shape_cast %394 : vector<8xf32> to vector<8x1xf32>
    %cst_107 = arith.constant dense<0xFF800000> : vector<1xf32>
    %396 = vector.multi_reduction <maximumf>, %395, %cst_107 [0] : vector<8x1xf32> to vector<1xf32>
    %397 = vector.shape_cast %396 : vector<1xf32> to vector<1x1xf32>
    %398 = vector.broadcast %397 : vector<1x1xf32> to vector<8x1xf32>
    %399 = arith.cmpf oge, %395, %398 : vector<8x1xf32>
    %c8_i32_108 = arith.constant 8 : i32
    %400 = vector.broadcast %c8_i32_108 : i32 to vector<8x1xi32>
    %401 = arith.select %399, %171, %400 : vector<8x1xi1>, vector<8x1xi32>
    %cst_109 = arith.constant dense<2147483647> : vector<1xi32>
    %402 = vector.multi_reduction <minsi>, %401, %cst_109 [0] : vector<8x1xi32> to vector<1xi32>
    %403 = vector.shape_cast %402 : vector<1xi32> to vector<1x1xi32>
    %c0_110 = arith.constant 0 : index
    %404 = arith.index_cast %c3_i32_97 : i32 to index
    %c0_111 = arith.constant 0 : index
    %405 = vector.load %arg13[%c0_110, %404, %c0_111] : memref<1x8x1xi32, #tpu.memory_space<vmem>>, vector<1x1x1xi32>
    %406 = vector.shape_cast %405 : vector<1x1x1xi32> to vector<1x1xi32>
    %407 = vector.shape_cast %403 : vector<1x1xi32> to vector<1x1x1xi32>
    tpu.vector_store %arg13[%c0_110, %404, %c0_111], %407 {strides = array<i32>} : memref<1x8x1xi32, #tpu.memory_space<vmem>>, vector<1x1x1xi32>,
    %c4_i32 = arith.constant 4 : i32
    %408 = tpu.concatenate %366, %387 in 1 : vector<1x32xf32>, vector<1x32xf32> -> vector<1x64xf32>
    %cst_112 = arith.constant dense<0.000000e+00> : vector<1x128xf32>
    %409 = tpu.matmul %408, %4, %cst_112 {dimension_numbers = #tpu.dot_dimension_numbers<[1], [0], [0], [1], [0, 0, 1, 1], [], []>} : vector<1x64xf32>, vector<64x128xf32>, vector<1x128xf32> -> vector<1x128xf32>
    %410 = arith.addf %409, %5 : vector<1x128xf32>
    %411 = arith.negf %410 : vector<1x128xf32>
    %412 = math.exp %411 : vector<1x128xf32>
    %cst_113 = arith.constant 1.000000e+00 : f32
    %413 = vector.broadcast %cst_113 : f32 to vector<1x128xf32>
    %414 = arith.addf %413, %412 : vector<1x128xf32>
    %415 = arith.divf %413, %414 : vector<1x128xf32>
    %416 = math.tanh %410 : vector<1x128xf32>
    %417 = vector.extract_strided_slice %415 {offsets = [0, 0], sizes = [1, 32], strides = [1, 1]} : vector<1x128xf32> to vector<1x32xf32>
    %418 = vector.extract_strided_slice %415 {offsets = [0, 32], sizes = [1, 32], strides = [1, 1]} : vector<1x128xf32> to vector<1x32xf32>
    %419 = vector.extract_strided_slice %415 {offsets = [0, 64], sizes = [1, 32], strides = [1, 1]} : vector<1x128xf32> to vector<1x32xf32>
    %420 = vector.extract_strided_slice %416 {offsets = [0, 96], sizes = [1, 32], strides = [1, 1]} : vector<1x128xf32> to vector<1x32xf32>
    %421 = arith.mulf %417, %364 : vector<1x32xf32>
    %422 = arith.mulf %418, %420 : vector<1x32xf32>
    %423 = arith.addf %421, %422 : vector<1x32xf32>
    %424 = math.tanh %423 : vector<1x32xf32>
    %425 = arith.mulf %419, %424 : vector<1x32xf32>
    %cst_114 = arith.constant dense<0.000000e+00> : vector<1x32xf32>
    %426 = tpu.matmul %425, %8, %cst_114 {dimension_numbers = #tpu.dot_dimension_numbers<[1], [0], [0], [1], [0, 0, 1, 1], [], []>} : vector<1x32xf32>, vector<32x32xf32>, vector<1x32xf32> -> vector<1x32xf32>
    %427 = vector.broadcast %426 : vector<1x32xf32> to vector<8x32xf32>
    %428 = arith.addf %427, %1 : vector<8x32xf32>
    %429 = math.tanh %428 : vector<8x32xf32>
    %430 = vector.broadcast %9 : vector<1x32xf32> to vector<8x32xf32>
    %431 = arith.mulf %429, %430 : vector<8x32xf32>
    %cst_115 = arith.constant dense<0.000000e+00> : vector<8xf32>
    %432 = vector.multi_reduction <add>, %431, %cst_115 [1] : vector<8x32xf32> to vector<8xf32>
    %433 = vector.shape_cast %432 : vector<8xf32> to vector<8x1xf32>
    %cst_116 = arith.constant dense<0xFF800000> : vector<1xf32>
    %434 = vector.multi_reduction <maximumf>, %433, %cst_116 [0] : vector<8x1xf32> to vector<1xf32>
    %435 = vector.shape_cast %434 : vector<1xf32> to vector<1x1xf32>
    %436 = vector.broadcast %435 : vector<1x1xf32> to vector<8x1xf32>
    %437 = arith.subf %433, %436 : vector<8x1xf32>
    %438 = math.exp %437 : vector<8x1xf32>
    %cst_117 = arith.constant dense<0.000000e+00> : vector<1xf32>
    %439 = vector.multi_reduction <add>, %438, %cst_117 [0] : vector<8x1xf32> to vector<1xf32>
    %440 = vector.shape_cast %439 : vector<1xf32> to vector<1x1xf32>
    %441 = vector.broadcast %440 : vector<1x1xf32> to vector<8x1xf32>
    %442 = arith.divf %438, %441 : vector<8x1xf32>
    %443 = vector.broadcast %442 : vector<8x1xf32> to vector<8x32xf32>
    %444 = arith.mulf %1, %443 : vector<8x32xf32>
    %cst_118 = arith.constant dense<0.000000e+00> : vector<32xf32>
    %445 = vector.multi_reduction <add>, %444, %cst_118 [0] : vector<8x32xf32> to vector<32xf32>
    %446 = vector.shape_cast %445 : vector<32xf32> to vector<1x32xf32>
    %cst_119 = arith.constant dense<0.000000e+00> : vector<1x32xf32>
    %447 = tpu.matmul %446, %10, %cst_119 {dimension_numbers = #tpu.dot_dimension_numbers<[1], [0], [0], [1], [0, 0, 1, 1], [], []>} : vector<1x32xf32>, vector<32x32xf32>, vector<1x32xf32> -> vector<1x32xf32>
    %448 = vector.broadcast %447 : vector<1x32xf32> to vector<8x32xf32>
    %449 = arith.addf %448, %170 : vector<8x32xf32>
    %450 = math.tanh %449 : vector<8x32xf32>
    %451 = vector.broadcast %12 : vector<1x32xf32> to vector<8x32xf32>
    %452 = arith.mulf %450, %451 : vector<8x32xf32>
    %cst_120 = arith.constant dense<0.000000e+00> : vector<8xf32>
    %453 = vector.multi_reduction <add>, %452, %cst_120 [1] : vector<8x32xf32> to vector<8xf32>
    %454 = vector.shape_cast %453 : vector<8xf32> to vector<8x1xf32>
    %cst_121 = arith.constant dense<0xFF800000> : vector<1xf32>
    %455 = vector.multi_reduction <maximumf>, %454, %cst_121 [0] : vector<8x1xf32> to vector<1xf32>
    %456 = vector.shape_cast %455 : vector<1xf32> to vector<1x1xf32>
    %457 = vector.broadcast %456 : vector<1x1xf32> to vector<8x1xf32>
    %458 = arith.cmpf oge, %454, %457 : vector<8x1xf32>
    %c8_i32_122 = arith.constant 8 : i32
    %459 = vector.broadcast %c8_i32_122 : i32 to vector<8x1xi32>
    %460 = arith.select %458, %171, %459 : vector<8x1xi1>, vector<8x1xi32>
    %cst_123 = arith.constant dense<2147483647> : vector<1xi32>
    %461 = vector.multi_reduction <minsi>, %460, %cst_123 [0] : vector<8x1xi32> to vector<1xi32>
    %462 = vector.shape_cast %461 : vector<1xi32> to vector<1x1xi32>
    %c0_124 = arith.constant 0 : index
    %463 = arith.index_cast %c4_i32 : i32 to index
    %c0_125 = arith.constant 0 : index
    %464 = vector.load %arg13[%c0_124, %463, %c0_125] : memref<1x8x1xi32, #tpu.memory_space<vmem>>, vector<1x1x1xi32>
    %465 = vector.shape_cast %464 : vector<1x1x1xi32> to vector<1x1xi32>
    %466 = vector.shape_cast %462 : vector<1x1xi32> to vector<1x1x1xi32>
    tpu.vector_store %arg13[%c0_124, %463, %c0_125], %466 {strides = array<i32>} : memref<1x8x1xi32, #tpu.memory_space<vmem>>, vector<1x1x1xi32>,
    %c5_i32 = arith.constant 5 : i32
    %467 = tpu.concatenate %425, %446 in 1 : vector<1x32xf32>, vector<1x32xf32> -> vector<1x64xf32>
    %cst_126 = arith.constant dense<0.000000e+00> : vector<1x128xf32>
    %468 = tpu.matmul %467, %4, %cst_126 {dimension_numbers = #tpu.dot_dimension_numbers<[1], [0], [0], [1], [0, 0, 1, 1], [], []>} : vector<1x64xf32>, vector<64x128xf32>, vector<1x128xf32> -> vector<1x128xf32>
    %469 = arith.addf %468, %5 : vector<1x128xf32>
    %470 = arith.negf %469 : vector<1x128xf32>
    %471 = math.exp %470 : vector<1x128xf32>
    %cst_127 = arith.constant 1.000000e+00 : f32
    %472 = vector.broadcast %cst_127 : f32 to vector<1x128xf32>
    %473 = arith.addf %472, %471 : vector<1x128xf32>
    %474 = arith.divf %472, %473 : vector<1x128xf32>
    %475 = math.tanh %469 : vector<1x128xf32>
    %476 = vector.extract_strided_slice %474 {offsets = [0, 0], sizes = [1, 32], strides = [1, 1]} : vector<1x128xf32> to vector<1x32xf32>
    %477 = vector.extract_strided_slice %474 {offsets = [0, 32], sizes = [1, 32], strides = [1, 1]} : vector<1x128xf32> to vector<1x32xf32>
    %478 = vector.extract_strided_slice %474 {offsets = [0, 64], sizes = [1, 32], strides = [1, 1]} : vector<1x128xf32> to vector<1x32xf32>
    %479 = vector.extract_strided_slice %475 {offsets = [0, 96], sizes = [1, 32], strides = [1, 1]} : vector<1x128xf32> to vector<1x32xf32>
    %480 = arith.mulf %476, %423 : vector<1x32xf32>
    %481 = arith.mulf %477, %479 : vector<1x32xf32>
    %482 = arith.addf %480, %481 : vector<1x32xf32>
    %483 = math.tanh %482 : vector<1x32xf32>
    %484 = arith.mulf %478, %483 : vector<1x32xf32>
    %cst_128 = arith.constant dense<0.000000e+00> : vector<1x32xf32>
    %485 = tpu.matmul %484, %8, %cst_128 {dimension_numbers = #tpu.dot_dimension_numbers<[1], [0], [0], [1], [0, 0, 1, 1], [], []>} : vector<1x32xf32>, vector<32x32xf32>, vector<1x32xf32> -> vector<1x32xf32>
    %486 = vector.broadcast %485 : vector<1x32xf32> to vector<8x32xf32>
    %487 = arith.addf %486, %1 : vector<8x32xf32>
    %488 = math.tanh %487 : vector<8x32xf32>
    %489 = vector.broadcast %9 : vector<1x32xf32> to vector<8x32xf32>
    %490 = arith.mulf %488, %489 : vector<8x32xf32>
    %cst_129 = arith.constant dense<0.000000e+00> : vector<8xf32>
    %491 = vector.multi_reduction <add>, %490, %cst_129 [1] : vector<8x32xf32> to vector<8xf32>
    %492 = vector.shape_cast %491 : vector<8xf32> to vector<8x1xf32>
    %cst_130 = arith.constant dense<0xFF800000> : vector<1xf32>
    %493 = vector.multi_reduction <maximumf>, %492, %cst_130 [0] : vector<8x1xf32> to vector<1xf32>
    %494 = vector.shape_cast %493 : vector<1xf32> to vector<1x1xf32>
    %495 = vector.broadcast %494 : vector<1x1xf32> to vector<8x1xf32>
    %496 = arith.subf %492, %495 : vector<8x1xf32>
    %497 = math.exp %496 : vector<8x1xf32>
    %cst_131 = arith.constant dense<0.000000e+00> : vector<1xf32>
    %498 = vector.multi_reduction <add>, %497, %cst_131 [0] : vector<8x1xf32> to vector<1xf32>
    %499 = vector.shape_cast %498 : vector<1xf32> to vector<1x1xf32>
    %500 = vector.broadcast %499 : vector<1x1xf32> to vector<8x1xf32>
    %501 = arith.divf %497, %500 : vector<8x1xf32>
    %502 = vector.broadcast %501 : vector<8x1xf32> to vector<8x32xf32>
    %503 = arith.mulf %1, %502 : vector<8x32xf32>
    %cst_132 = arith.constant dense<0.000000e+00> : vector<32xf32>
    %504 = vector.multi_reduction <add>, %503, %cst_132 [0] : vector<8x32xf32> to vector<32xf32>
    %505 = vector.shape_cast %504 : vector<32xf32> to vector<1x32xf32>
    %cst_133 = arith.constant dense<0.000000e+00> : vector<1x32xf32>
    %506 = tpu.matmul %505, %10, %cst_133 {dimension_numbers = #tpu.dot_dimension_numbers<[1], [0], [0], [1], [0, 0, 1, 1], [], []>} : vector<1x32xf32>, vector<32x32xf32>, vector<1x32xf32> -> vector<1x32xf32>
    %507 = vector.broadcast %506 : vector<1x32xf32> to vector<8x32xf32>
    %508 = arith.addf %507, %170 : vector<8x32xf32>
    %509 = math.tanh %508 : vector<8x32xf32>
    %510 = vector.broadcast %12 : vector<1x32xf32> to vector<8x32xf32>
    %511 = arith.mulf %509, %510 : vector<8x32xf32>
    %cst_134 = arith.constant dense<0.000000e+00> : vector<8xf32>
    %512 = vector.multi_reduction <add>, %511, %cst_134 [1] : vector<8x32xf32> to vector<8xf32>
    %513 = vector.shape_cast %512 : vector<8xf32> to vector<8x1xf32>
    %cst_135 = arith.constant dense<0xFF800000> : vector<1xf32>
    %514 = vector.multi_reduction <maximumf>, %513, %cst_135 [0] : vector<8x1xf32> to vector<1xf32>
    %515 = vector.shape_cast %514 : vector<1xf32> to vector<1x1xf32>
    %516 = vector.broadcast %515 : vector<1x1xf32> to vector<8x1xf32>
    %517 = arith.cmpf oge, %513, %516 : vector<8x1xf32>
    %c8_i32_136 = arith.constant 8 : i32
    %518 = vector.broadcast %c8_i32_136 : i32 to vector<8x1xi32>
    %519 = arith.select %517, %171, %518 : vector<8x1xi1>, vector<8x1xi32>
    %cst_137 = arith.constant dense<2147483647> : vector<1xi32>
    %520 = vector.multi_reduction <minsi>, %519, %cst_137 [0] : vector<8x1xi32> to vector<1xi32>
    %521 = vector.shape_cast %520 : vector<1xi32> to vector<1x1xi32>
    %c0_138 = arith.constant 0 : index
    %522 = arith.index_cast %c5_i32 : i32 to index
    %c0_139 = arith.constant 0 : index
    %523 = vector.load %arg13[%c0_138, %522, %c0_139] : memref<1x8x1xi32, #tpu.memory_space<vmem>>, vector<1x1x1xi32>
    %524 = vector.shape_cast %523 : vector<1x1x1xi32> to vector<1x1xi32>
    %525 = vector.shape_cast %521 : vector<1x1xi32> to vector<1x1x1xi32>
    tpu.vector_store %arg13[%c0_138, %522, %c0_139], %525 {strides = array<i32>} : memref<1x8x1xi32, #tpu.memory_space<vmem>>, vector<1x1x1xi32>,
    %c6_i32 = arith.constant 6 : i32
    %526 = tpu.concatenate %484, %505 in 1 : vector<1x32xf32>, vector<1x32xf32> -> vector<1x64xf32>
    %cst_140 = arith.constant dense<0.000000e+00> : vector<1x128xf32>
    %527 = tpu.matmul %526, %4, %cst_140 {dimension_numbers = #tpu.dot_dimension_numbers<[1], [0], [0], [1], [0, 0, 1, 1], [], []>} : vector<1x64xf32>, vector<64x128xf32>, vector<1x128xf32> -> vector<1x128xf32>
    %528 = arith.addf %527, %5 : vector<1x128xf32>
    %529 = arith.negf %528 : vector<1x128xf32>
    %530 = math.exp %529 : vector<1x128xf32>
    %cst_141 = arith.constant 1.000000e+00 : f32
    %531 = vector.broadcast %cst_141 : f32 to vector<1x128xf32>
    %532 = arith.addf %531, %530 : vector<1x128xf32>
    %533 = arith.divf %531, %532 : vector<1x128xf32>
    %534 = math.tanh %528 : vector<1x128xf32>
    %535 = vector.extract_strided_slice %533 {offsets = [0, 0], sizes = [1, 32], strides = [1, 1]} : vector<1x128xf32> to vector<1x32xf32>
    %536 = vector.extract_strided_slice %533 {offsets = [0, 32], sizes = [1, 32], strides = [1, 1]} : vector<1x128xf32> to vector<1x32xf32>
    %537 = vector.extract_strided_slice %533 {offsets = [0, 64], sizes = [1, 32], strides = [1, 1]} : vector<1x128xf32> to vector<1x32xf32>
    %538 = vector.extract_strided_slice %534 {offsets = [0, 96], sizes = [1, 32], strides = [1, 1]} : vector<1x128xf32> to vector<1x32xf32>
    %539 = arith.mulf %535, %482 : vector<1x32xf32>
    %540 = arith.mulf %536, %538 : vector<1x32xf32>
    %541 = arith.addf %539, %540 : vector<1x32xf32>
    %542 = math.tanh %541 : vector<1x32xf32>
    %543 = arith.mulf %537, %542 : vector<1x32xf32>
    %cst_142 = arith.constant dense<0.000000e+00> : vector<1x32xf32>
    %544 = tpu.matmul %543, %8, %cst_142 {dimension_numbers = #tpu.dot_dimension_numbers<[1], [0], [0], [1], [0, 0, 1, 1], [], []>} : vector<1x32xf32>, vector<32x32xf32>, vector<1x32xf32> -> vector<1x32xf32>
    %545 = vector.broadcast %544 : vector<1x32xf32> to vector<8x32xf32>
    %546 = arith.addf %545, %1 : vector<8x32xf32>
    %547 = math.tanh %546 : vector<8x32xf32>
    %548 = vector.broadcast %9 : vector<1x32xf32> to vector<8x32xf32>
    %549 = arith.mulf %547, %548 : vector<8x32xf32>
    %cst_143 = arith.constant dense<0.000000e+00> : vector<8xf32>
    %550 = vector.multi_reduction <add>, %549, %cst_143 [1] : vector<8x32xf32> to vector<8xf32>
    %551 = vector.shape_cast %550 : vector<8xf32> to vector<8x1xf32>
    %cst_144 = arith.constant dense<0xFF800000> : vector<1xf32>
    %552 = vector.multi_reduction <maximumf>, %551, %cst_144 [0] : vector<8x1xf32> to vector<1xf32>
    %553 = vector.shape_cast %552 : vector<1xf32> to vector<1x1xf32>
    %554 = vector.broadcast %553 : vector<1x1xf32> to vector<8x1xf32>
    %555 = arith.subf %551, %554 : vector<8x1xf32>
    %556 = math.exp %555 : vector<8x1xf32>
    %cst_145 = arith.constant dense<0.000000e+00> : vector<1xf32>
    %557 = vector.multi_reduction <add>, %556, %cst_145 [0] : vector<8x1xf32> to vector<1xf32>
    %558 = vector.shape_cast %557 : vector<1xf32> to vector<1x1xf32>
    %559 = vector.broadcast %558 : vector<1x1xf32> to vector<8x1xf32>
    %560 = arith.divf %556, %559 : vector<8x1xf32>
    %561 = vector.broadcast %560 : vector<8x1xf32> to vector<8x32xf32>
    %562 = arith.mulf %1, %561 : vector<8x32xf32>
    %cst_146 = arith.constant dense<0.000000e+00> : vector<32xf32>
    %563 = vector.multi_reduction <add>, %562, %cst_146 [0] : vector<8x32xf32> to vector<32xf32>
    %564 = vector.shape_cast %563 : vector<32xf32> to vector<1x32xf32>
    %cst_147 = arith.constant dense<0.000000e+00> : vector<1x32xf32>
    %565 = tpu.matmul %564, %10, %cst_147 {dimension_numbers = #tpu.dot_dimension_numbers<[1], [0], [0], [1], [0, 0, 1, 1], [], []>} : vector<1x32xf32>, vector<32x32xf32>, vector<1x32xf32> -> vector<1x32xf32>
    %566 = vector.broadcast %565 : vector<1x32xf32> to vector<8x32xf32>
    %567 = arith.addf %566, %170 : vector<8x32xf32>
    %568 = math.tanh %567 : vector<8x32xf32>
    %569 = vector.broadcast %12 : vector<1x32xf32> to vector<8x32xf32>
    %570 = arith.mulf %568, %569 : vector<8x32xf32>
    %cst_148 = arith.constant dense<0.000000e+00> : vector<8xf32>
    %571 = vector.multi_reduction <add>, %570, %cst_148 [1] : vector<8x32xf32> to vector<8xf32>
    %572 = vector.shape_cast %571 : vector<8xf32> to vector<8x1xf32>
    %cst_149 = arith.constant dense<0xFF800000> : vector<1xf32>
    %573 = vector.multi_reduction <maximumf>, %572, %cst_149 [0] : vector<8x1xf32> to vector<1xf32>
    %574 = vector.shape_cast %573 : vector<1xf32> to vector<1x1xf32>
    %575 = vector.broadcast %574 : vector<1x1xf32> to vector<8x1xf32>
    %576 = arith.cmpf oge, %572, %575 : vector<8x1xf32>
    %c8_i32_150 = arith.constant 8 : i32
    %577 = vector.broadcast %c8_i32_150 : i32 to vector<8x1xi32>
    %578 = arith.select %576, %171, %577 : vector<8x1xi1>, vector<8x1xi32>
    %cst_151 = arith.constant dense<2147483647> : vector<1xi32>
    %579 = vector.multi_reduction <minsi>, %578, %cst_151 [0] : vector<8x1xi32> to vector<1xi32>
    %580 = vector.shape_cast %579 : vector<1xi32> to vector<1x1xi32>
    %c0_152 = arith.constant 0 : index
    %581 = arith.index_cast %c6_i32 : i32 to index
    %c0_153 = arith.constant 0 : index
    %582 = vector.load %arg13[%c0_152, %581, %c0_153] : memref<1x8x1xi32, #tpu.memory_space<vmem>>, vector<1x1x1xi32>
    %583 = vector.shape_cast %582 : vector<1x1x1xi32> to vector<1x1xi32>
    %584 = vector.shape_cast %580 : vector<1x1xi32> to vector<1x1x1xi32>
    tpu.vector_store %arg13[%c0_152, %581, %c0_153], %584 {strides = array<i32>} : memref<1x8x1xi32, #tpu.memory_space<vmem>>, vector<1x1x1xi32>,
    %c7_i32 = arith.constant 7 : i32
    %585 = tpu.concatenate %543, %564 in 1 : vector<1x32xf32>, vector<1x32xf32> -> vector<1x64xf32>
    %cst_154 = arith.constant dense<0.000000e+00> : vector<1x128xf32>
    %586 = tpu.matmul %585, %4, %cst_154 {dimension_numbers = #tpu.dot_dimension_numbers<[1], [0], [0], [1], [0, 0, 1, 1], [], []>} : vector<1x64xf32>, vector<64x128xf32>, vector<1x128xf32> -> vector<1x128xf32>
    %587 = arith.addf %586, %5 : vector<1x128xf32>
    %588 = arith.negf %587 : vector<1x128xf32>
    %589 = math.exp %588 : vector<1x128xf32>
    %cst_155 = arith.constant 1.000000e+00 : f32
    %590 = vector.broadcast %cst_155 : f32 to vector<1x128xf32>
    %591 = arith.addf %590, %589 : vector<1x128xf32>
    %592 = arith.divf %590, %591 : vector<1x128xf32>
    %593 = math.tanh %587 : vector<1x128xf32>
    %594 = vector.extract_strided_slice %592 {offsets = [0, 0], sizes = [1, 32], strides = [1, 1]} : vector<1x128xf32> to vector<1x32xf32>
    %595 = vector.extract_strided_slice %592 {offsets = [0, 32], sizes = [1, 32], strides = [1, 1]} : vector<1x128xf32> to vector<1x32xf32>
    %596 = vector.extract_strided_slice %592 {offsets = [0, 64], sizes = [1, 32], strides = [1, 1]} : vector<1x128xf32> to vector<1x32xf32>
    %597 = vector.extract_strided_slice %593 {offsets = [0, 96], sizes = [1, 32], strides = [1, 1]} : vector<1x128xf32> to vector<1x32xf32>
    %598 = arith.mulf %594, %541 : vector<1x32xf32>
    %599 = arith.mulf %595, %597 : vector<1x32xf32>
    %600 = arith.addf %598, %599 : vector<1x32xf32>
    %601 = math.tanh %600 : vector<1x32xf32>
    %602 = arith.mulf %596, %601 : vector<1x32xf32>
    %cst_156 = arith.constant dense<0.000000e+00> : vector<1x32xf32>
    %603 = tpu.matmul %602, %8, %cst_156 {dimension_numbers = #tpu.dot_dimension_numbers<[1], [0], [0], [1], [0, 0, 1, 1], [], []>} : vector<1x32xf32>, vector<32x32xf32>, vector<1x32xf32> -> vector<1x32xf32>
    %604 = vector.broadcast %603 : vector<1x32xf32> to vector<8x32xf32>
    %605 = arith.addf %604, %1 : vector<8x32xf32>
    %606 = math.tanh %605 : vector<8x32xf32>
    %607 = vector.broadcast %9 : vector<1x32xf32> to vector<8x32xf32>
    %608 = arith.mulf %606, %607 : vector<8x32xf32>
    %cst_157 = arith.constant dense<0.000000e+00> : vector<8xf32>
    %609 = vector.multi_reduction <add>, %608, %cst_157 [1] : vector<8x32xf32> to vector<8xf32>
    %610 = vector.shape_cast %609 : vector<8xf32> to vector<8x1xf32>
    %cst_158 = arith.constant dense<0xFF800000> : vector<1xf32>
    %611 = vector.multi_reduction <maximumf>, %610, %cst_158 [0] : vector<8x1xf32> to vector<1xf32>
    %612 = vector.shape_cast %611 : vector<1xf32> to vector<1x1xf32>
    %613 = vector.broadcast %612 : vector<1x1xf32> to vector<8x1xf32>
    %614 = arith.subf %610, %613 : vector<8x1xf32>
    %615 = math.exp %614 : vector<8x1xf32>
    %cst_159 = arith.constant dense<0.000000e+00> : vector<1xf32>
    %616 = vector.multi_reduction <add>, %615, %cst_159 [0] : vector<8x1xf32> to vector<1xf32>
    %617 = vector.shape_cast %616 : vector<1xf32> to vector<1x1xf32>
    %618 = vector.broadcast %617 : vector<1x1xf32> to vector<8x1xf32>
    %619 = arith.divf %615, %618 : vector<8x1xf32>
    %620 = vector.broadcast %619 : vector<8x1xf32> to vector<8x32xf32>
    %621 = arith.mulf %1, %620 : vector<8x32xf32>
    %cst_160 = arith.constant dense<0.000000e+00> : vector<32xf32>
    %622 = vector.multi_reduction <add>, %621, %cst_160 [0] : vector<8x32xf32> to vector<32xf32>
    %623 = vector.shape_cast %622 : vector<32xf32> to vector<1x32xf32>
    %cst_161 = arith.constant dense<0.000000e+00> : vector<1x32xf32>
    %624 = tpu.matmul %623, %10, %cst_161 {dimension_numbers = #tpu.dot_dimension_numbers<[1], [0], [0], [1], [0, 0, 1, 1], [], []>} : vector<1x32xf32>, vector<32x32xf32>, vector<1x32xf32> -> vector<1x32xf32>
    %625 = vector.broadcast %624 : vector<1x32xf32> to vector<8x32xf32>
    %626 = arith.addf %625, %170 : vector<8x32xf32>
    %627 = math.tanh %626 : vector<8x32xf32>
    %628 = vector.broadcast %12 : vector<1x32xf32> to vector<8x32xf32>
    %629 = arith.mulf %627, %628 : vector<8x32xf32>
    %cst_162 = arith.constant dense<0.000000e+00> : vector<8xf32>
    %630 = vector.multi_reduction <add>, %629, %cst_162 [1] : vector<8x32xf32> to vector<8xf32>
    %631 = vector.shape_cast %630 : vector<8xf32> to vector<8x1xf32>
    %cst_163 = arith.constant dense<0xFF800000> : vector<1xf32>
    %632 = vector.multi_reduction <maximumf>, %631, %cst_163 [0] : vector<8x1xf32> to vector<1xf32>
    %633 = vector.shape_cast %632 : vector<1xf32> to vector<1x1xf32>
    %634 = vector.broadcast %633 : vector<1x1xf32> to vector<8x1xf32>
    %635 = arith.cmpf oge, %631, %634 : vector<8x1xf32>
    %c8_i32_164 = arith.constant 8 : i32
    %636 = vector.broadcast %c8_i32_164 : i32 to vector<8x1xi32>
    %637 = arith.select %635, %171, %636 : vector<8x1xi1>, vector<8x1xi32>
    %cst_165 = arith.constant dense<2147483647> : vector<1xi32>
    %638 = vector.multi_reduction <minsi>, %637, %cst_165 [0] : vector<8x1xi32> to vector<1xi32>
    %639 = vector.shape_cast %638 : vector<1xi32> to vector<1x1xi32>
    %c0_166 = arith.constant 0 : index
    %640 = arith.index_cast %c7_i32 : i32 to index
    %c0_167 = arith.constant 0 : index
    %641 = vector.load %arg13[%c0_166, %640, %c0_167] : memref<1x8x1xi32, #tpu.memory_space<vmem>>, vector<1x1x1xi32>
    %642 = vector.shape_cast %641 : vector<1x1x1xi32> to vector<1x1xi32>
    %643 = vector.shape_cast %639 : vector<1x1xi32> to vector<1x1x1xi32>
    tpu.vector_store %arg13[%c0_166, %640, %c0_167], %643 {strides = array<i32>} : memref<1x8x1xi32, #tpu.memory_space<vmem>>, vector<1x1x1xi32>,
    %c8_i32_168 = arith.constant 8 : i32
    return
  }
  func.func @transform_0(%arg0: i32) -> (i32, i32, i32) {
    %c0_i32 = arith.constant 0 : i32
    %c0_i32_0 = arith.constant 0 : i32
    %c0_i32_1 = arith.constant 0 : i32
    return %arg0, %c0_i32, %c0_i32_0 : i32, i32, i32
  }
  func.func @transform_1(%arg0: i32) -> (i32, i32) {
    %c0_i32 = arith.constant 0 : i32
    %c0_i32_0 = arith.constant 0 : i32
    %c0_i32_1 = arith.constant 0 : i32
    return %c0_i32, %c0_i32_0 : i32, i32
  }
  func.func @transform_2(%arg0: i32) -> (i32, i32) {
    %c0_i32 = arith.constant 0 : i32
    %c0_i32_0 = arith.constant 0 : i32
    %c0_i32_1 = arith.constant 0 : i32
    return %c0_i32, %c0_i32_0 : i32, i32
  }
  func.func @transform_3(%arg0: i32) -> (i32, i32) {
    %c0_i32 = arith.constant 0 : i32
    %c0_i32_0 = arith.constant 0 : i32
    %c0_i32_1 = arith.constant 0 : i32
    return %c0_i32, %c0_i32_0 : i32, i32
  }
  func.func @transform_4(%arg0: i32) -> (i32, i32) {
    %c0_i32 = arith.constant 0 : i32
    %c0_i32_0 = arith.constant 0 : i32
    %c0_i32_1 = arith.constant 0 : i32
    return %c0_i32, %c0_i32_0 : i32, i32
  }
  func.func @transform_5(%arg0: i32) -> (i32, i32) {
    %c0_i32 = arith.constant 0 : i32
    %c0_i32_0 = arith.constant 0 : i32
    %c0_i32_1 = arith.constant 0 : i32
    return %c0_i32, %c0_i32_0 : i32, i32
  }
  func.func @transform_6(%arg0: i32) -> (i32, i32) {
    %c0_i32 = arith.constant 0 : i32
    %c0_i32_0 = arith.constant 0 : i32
    %c0_i32_1 = arith.constant 0 : i32
    return %c0_i32, %c0_i32_0 : i32, i32
  }
  func.func @transform_7(%arg0: i32) -> (i32, i32) {
    %c0_i32 = arith.constant 0 : i32
    %c0_i32_0 = arith.constant 0 : i32
    %c0_i32_1 = arith.constant 0 : i32
    return %c0_i32, %c0_i32_0 : i32, i32
  }
  func.func @transform_8(%arg0: i32) -> (i32, i32) {
    %c0_i32 = arith.constant 0 : i32
    %c0_i32_0 = arith.constant 0 : i32
    %c0_i32_1 = arith.constant 0 : i32
    return %c0_i32, %c0_i32_0 : i32, i32
  }
  func.func @transform_9(%arg0: i32) -> (i32, i32) {
    %c0_i32 = arith.constant 0 : i32
    %c0_i32_0 = arith.constant 0 : i32
    %c0_i32_1 = arith.constant 0 : i32
    return %c0_i32, %c0_i32_0 : i32, i32
  }
  func.func @transform_10(%arg0: i32) -> (i32, i32) {
    %c0_i32 = arith.constant 0 : i32
    %c0_i32_0 = arith.constant 0 : i32
    %c0_i32_1 = arith.constant 0 : i32
    return %c0_i32, %c0_i32_0 : i32, i32
  }
  func.func @transform_11(%arg0: i32) -> (i32, i32) {
    %c0_i32 = arith.constant 0 : i32
    %c0_i32_0 = arith.constant 0 : i32
    %c0_i32_1 = arith.constant 0 : i32
    return %c0_i32, %c0_i32_0 : i32, i32
  }
  func.func @transform_12(%arg0: i32) -> (i32, i32, i32) {
    %c0_i32 = arith.constant 0 : i32
    %c0_i32_0 = arith.constant 0 : i32
    %c0_i32_1 = arith.constant 0 : i32
    return %arg0, %c0_i32, %c0_i32_0 : i32, i32, i32
  }
}

</mosaic_0001>

<bundles_post_ra>
// kernel: tpu_custom_call.1
= control target key start
LH: loop header
LB: loop body
LE: loop exit
PB: predicated region body
PF: predicated region fallthrough
CT: control target
= control target key end

     0   :  { %s6764_s0 = inlined_call_operand.hbm [shape: f32[2,8,32], index: 0, kind: input, shape index: {}]   ;;  %s6765_s1 = inlined_call_operand.hbm [shape: f32[64,128], index: 1, kind: input, shape index: {}]   ;;  %s6766_s2 = inlined_call_operand.vmem [shape: f32[1,128], index: 2, kind: input, shape index: {}]   ;;  %s6767_s3 = inlined_call_operand.hbm [shape: f32[64,128], index: 3, kind: input, shape index: {}]   ;;  %s6768_s4 = inlined_call_operand.vmem [shape: f32[1,128], index: 4, kind: input, shape index: {}]   ;;  %s6769_s5 = inlined_call_operand.hbm [shape: f32[32,32], index: 5, kind: input, shape index: {}]   ;;  %s6770_s6 = inlined_call_operand.hbm [shape: f32[1,32], index: 6, kind: input, shape index: {}]   ;;  %s6771_s7 = inlined_call_operand.hbm [shape: f32[32,32], index: 7, kind: input, shape index: {}]   ;;  %s6772_s8 = inlined_call_operand.hbm [shape: f32[1,32], index: 8, kind: input, shape index: {}]   ;;  %s6773_s9 = inlined_call_operand.vmem [shape: f32[32,32], index: 9, kind: input, shape index: {}]   ;;  %s6774_s10 = inlined_call_operand.hbm [shape: f32[32,32], index: 10, kind: input, shape index: {}]   ;;  %s6775_s11 = inlined_call_operand.vmem [shape: f32[1,32], index: 11, kind: input, shape index: {}]   ;;  %s6776_s12 = inlined_call_operand.vmem [shape: s32[2,8,1], index: 12, kind: output, shape index: {}]  }
   0x1   :  { %6781 = sst [smem:[#allocation20_spill]] %s6765_s1 }
   0x2   :  { %6782 = sst [smem:[#allocation21_spill]] %s6768_s4 }
   0x3   :  { %6783 = sst [smem:[#allocation22_spill]] %s6773_s9 }
   0x4   :  { %6784 = sst [smem:[#allocation23_spill]] %s6775_s11 }
   0x5   :  { %6785 = sst [smem:[#allocation24_spill]] %s6776_s12 }
   0x6   :  { %17 = vsyncpa [#allocation3], 0 }
   0x7   :  { %19 = vsyncpa [#allocation3 + $0x1], 0 }
   0x8   :  { %20 = vsyncpa [#allocation5], 0 }
   0x9   :  { %21 = vsyncpa [#allocation8], 0 }
   0xa   :  { %22 = vsyncpa [#allocation11], 0 }
   0xb   :  { %23 = vsyncpa [#allocation14], 0  ;;  %s5822_s21 = smov 0   ;;  %s5824_s22 = smov 0  }
   0xc   :  { %s5826_s23 = smov 0   ;;  %s5828_s24 = smov 0  }
   0xd LB: > { %s5741_s25 = smov [#allocation4]   ;;  %s5843_s27 = sadd.s32 4294967295, %s5739_s24   ;;  %s5739_s24 = sphi %s5828_s24, %s6809_s24   ;;  %s5735_s23 = sphi %s5826_s23, %s6808_s23   ;;  %s5731_s22 = sphi %s5824_s22, %s6807_s22   ;;  %s5727_s21 = sphi %s5822_s21, %s6806_s21  }
   0xe   : > { %s329_s26 = sshll.u32 %s5741_s25, 4  ;;  %p4145_p0 = scmp.ge.s32.totalorder %s5739_s24, 1  ;;  %s5848_s26 = int_to_ptr.vmem [resolvable:$true] %s329_s26 }
   0xf   : > { %p6779_p1 = scmp.eq.s32.totalorder %s5843_s27, 0  ;;  %p317_p2 = scmp.lt.s32.totalorder %s5739_s24, 3 }
  0x10   : > { %s5742_s29 = smov [#allocation7]   ;;  %s5743_s14 = smov [#allocation10]  }
  0x11   : > { %p5850_p3 = pnand %p4145_p0, %p317_p2  ;;  %s361_s30 = sshll.u32 %s5742_s29, 4  ;;  %s5862_s30 = int_to_ptr.vmem [resolvable:$true] %s361_s30 }
  0x12   : > { %s385_s15 = sshll.u32 %s5743_s14, 4  ;;  %s6788_s1 = sld [smem:[#allocation20_spill]]  ;;  %s5864_s15 = int_to_ptr.vmem [resolvable:$true] %s385_s15 }
  0x13   : > { %s6786_s28 = scalar_select %p5850_p3, 1, 0 }
  0x14   : > { %p5187_p4 = pneg %p5850_p3 }
  0x16   : > { %p5858_p5 = pnand %p5187_p4, %p6779_p1 }
  0x18   : > { %s5463_s18 = scalar_lea.hbm %s6788_s1, 1024  ;;  %p5874_p7 = pneg %p5858_p5 }
  0x19   : > { %p5464_p6 = scmp.ne.s32.totalorder %s6788_s1, %s5463_s18  ;;  %p5470_p10 = scmp.lt.u32.totalorder %s5463_s18, %s6788_s1 }
  0x1b   : > { %p5466_p8 = pnand %p5874_p7, %p5464_p6 }
  0x1d   : > { %p5467_p9 = pneg %p5466_p8 }
  0x1f   : > { %p5472_p11 = pnand %p5470_p10, %p5467_p9 }
  0x21   : > { %5475 = shalt.err (!%p5472_p11)
}
  0x22   : > { %s5476_s16 = scalar_lea.vmem %s5848_s26, 1024  ;;  %p5484_p2 = scmp.lt.s32.totalorder %s5848_s26, %s5848_s26 }
  0x23   : > { %p5477_p12 = scmp.ne.s32.totalorder %s5848_s26, %s5476_s16  ;;  %p5485_p4 = scmp.lt.s32.totalorder %s5476_s16, %s5476_s16 }
  0x25   : > { %p5479_p13 = pnand %p5477_p12, %p5874_p7  ;;  %p5486_p6 = por %p5485_p4, %p5484_p2 }
  0x27   : > { %p5480_p0 = pneg %p5479_p13 }
  0x29   : > { %p5487_p8 = pnand %p5486_p6, %p5480_p0 }
  0x2b   : > { %5490 = shalt.err (!%p5487_p8)
}
  0x2c   : > { %s5744_s17 = smov 128   ;;  %s5745_s18 = smov 8  }
  0x2d   : > { %5190 = dma.hbm_to_vmem [thread:$0]  (!%p5858_p5), %s6788_s1, 1024, %s5848_s26, [#allocation5], %s5744_s17, %s5744_s17, %s5745_s18  }
  0x2e   : > { %s5491_s16 = scalar_lea.hbm %s6769_s5, 512 }
  0x2f   : > { %p5492_p9 = scmp.ne.s32.totalorder %s6769_s5, %s5491_s16  ;;  %p5498_p12 = scmp.lt.u32.totalorder %s5491_s16, %s6769_s5 }
  0x31   : > { %p5494_p10 = pnand %p5492_p9, %p5874_p7 }
  0x33   : > { %p5495_p11 = pneg %p5494_p10 }
  0x35   : > { %p5500_p13 = pnand %p5498_p12, %p5495_p11 }
  0x37   : > { %5503 = shalt.err (!%p5500_p13)
}
  0x38   : > { %s5504_s26 = scalar_lea.vmem %s5862_s30, 512  ;;  %p5512_p6 = scmp.lt.s32.totalorder %s5862_s30, %s5862_s30 }
  0x39   : > { %p5505_p0 = scmp.ne.s32.totalorder %s5862_s30, %s5504_s26  ;;  %p5513_p8 = scmp.lt.s32.totalorder %s5504_s26, %s5504_s26 }
  0x3b   : > { %p5507_p2 = pnand %p5505_p0, %p5874_p7  ;;  %p5514_p9 = por %p5513_p8, %p5512_p6 }
  0x3d   : > { %p5508_p4 = pneg %p5507_p2 }
  0x3f   : > { %p5515_p10 = pnand %p5514_p9, %p5508_p4 }
  0x41   : > { %5518 = shalt.err (!%p5515_p10)
}
  0x42   : > { %5196 = dma.hbm_to_vmem [thread:$0]  (!%p5858_p5), %s6769_s5, 512, %s5862_s30, [#allocation8], %s5744_s17, %s5744_s17, %s5745_s18  }
  0x43   : > { %s5519_s19 = scalar_lea.hbm %s6771_s7, 512 }
  0x44   : > { %p5520_p11 = scmp.ne.s32.totalorder %s6771_s7, %s5519_s19  ;;  %p5526_p0 = scmp.lt.u32.totalorder %s5519_s19, %s6771_s7 }
  0x46   : > { %p5522_p12 = pnand %p5520_p11, %p5874_p7 }
  0x48   : > { %p5523_p13 = pneg %p5522_p12 }
  0x4a   : > { %p5528_p2 = pnand %p5526_p0, %p5523_p13 }
  0x4c   : > { %5531 = shalt.err (!%p5528_p2)
}
  0x4d   : > { %s5532_s30 = scalar_lea.vmem %s5864_s15, 512  ;;  %p5540_p9 = scmp.lt.s32.totalorder %s5864_s15, %s5864_s15 }
  0x4e   : > { %p5533_p4 = scmp.ne.s32.totalorder %s5864_s15, %s5532_s30  ;;  %p5541_p10 = scmp.lt.s32.totalorder %s5532_s30, %s5532_s30 }
  0x50   : > { %p5535_p6 = pnand %p5533_p4, %p5874_p7  ;;  %p5542_p11 = por %p5541_p10, %p5540_p9 }
  0x52   : > { %p5536_p8 = pneg %p5535_p6 }
  0x54   : > { %p5543_p12 = pnand %p5542_p11, %p5536_p8 }
  0x56   : > { %5546 = shalt.err (!%p5543_p12)
}
  0x57   : > { %5202 = dma.hbm_to_vmem [thread:$0]  (!%p5858_p5), %s6771_s7, 512, %s5864_s15, [#allocation11], %s5744_s17, %s5744_s17, %s5745_s18  }
  0x58   : > { %s5746_s9 = smov [#allocation6]   ;;  %s5747_s12 = smov [#allocation9]  }
  0x59   : > { %s345_s11 = sshll.u32 %s5746_s9, 4  ;;  %s375_s19 = sshll.u32 %s5747_s12, 4  ;;  %s346_s11 = int_to_ptr.vmem [resolvable:$true] %s345_s11  ;;  %s376_s19 = int_to_ptr.vmem [resolvable:$true] %s375_s19 }
  0x5a   : > { %s5547_s14 = scalar_lea.hbm %s6767_s3, 1024 }
  0x5b   : > { %p5548_p13 = scmp.ne.s32.totalorder %s6767_s3, %s5547_s14  ;;  %p5554_p4 = scmp.lt.u32.totalorder %s5547_s14, %s6767_s3 }
  0x5d   : > { %p5550_p0 = pnand %p5548_p13, %p5874_p7 }
  0x5f   : > { %p5551_p2 = pneg %p5550_p0 }
  0x61   : > { %p5556_p6 = pnand %p5554_p4, %p5551_p2 }
  0x63   : > { %5559 = shalt.err (!%p5556_p6)
}
  0x64   : > { %s5560_s15 = scalar_lea.vmem %s346_s11, 1024  ;;  %p5568_p11 = scmp.lt.s32.totalorder %s346_s11, %s346_s11 }
  0x65   : > { %p5561_p8 = scmp.ne.s32.totalorder %s346_s11, %s5560_s15  ;;  %p5569_p12 = scmp.lt.s32.totalorder %s5560_s15, %s5560_s15 }
  0x67   : > { %p5563_p9 = pnand %p5561_p8, %p5874_p7  ;;  %p5570_p1 = por %p5569_p12, %p5568_p11 }
  0x69   : > { %p5564_p10 = pneg %p5563_p9 }
  0x6b   : > { %p5571_p3 = pnand %p5570_p1, %p5564_p10 }
  0x6d   : > { %5574 = shalt.err (!%p5571_p3)
}
  0x6e   : > { %5193 = dma.hbm_to_vmem [thread:$0]  (!%p5858_p5), %s6767_s3, 1024, %s346_s11, [#allocation5], %s5744_s17, %s5744_s17, %s5745_s18  }
  0x6f   : > { %s5575_s20 = scalar_lea.hbm %s6770_s6, 16 }
  0x70   : > { %p5576_p1 = scmp.ne.s32.totalorder %s6770_s6, %s5575_s20  ;;  %p5582_p0 = scmp.lt.u32.totalorder %s5575_s20, %s6770_s6 }
  0x72   : > { %p5578_p3 = pnand %p5576_p1, %p5874_p7 }
  0x74   : > { %p5579_p13 = pneg %p5578_p3 }
  0x76   : > { %p5584_p2 = pnand %p5582_p0, %p5579_p13 }
  0x78   : > { %5587 = shalt.err (!%p5584_p2)
}
  0x79   : > { %s5588_s26 = scalar_lea.vmem %s376_s19, 16  ;;  %s5595_s11 = scalar_lea.vmem %s376_s19, 32 }
  0x7a   : > { %p5589_p4 = scmp.ne.s32.totalorder %s376_s19, %s5588_s26  ;;  %p5596_p9 = scmp.lt.s32.totalorder %s376_s19, %s376_s19 }
  0x7b   : > { %p5597_p10 = scmp.lt.s32.totalorder %s5595_s11, %s5588_s26 }
  0x7c   : > { %p5591_p6 = pnand %p5589_p4, %p5874_p7 }
  0x7d   : > { %p5598_p11 = por %p5597_p10, %p5596_p9 }
  0x7e   : > { %p5592_p8 = pneg %p5591_p6 }
  0x80   : > { %p5599_p12 = pnand %p5598_p11, %p5592_p8 }
  0x82   : > { %5602 = shalt.err (!%p5599_p12)
}
  0x83   : > { %5199 = dma.hbm_to_vmem [thread:$0]  (!%p5858_p5), %s6770_s6, 16, %s376_s19, [#allocation8]  }
  0x84   : > { %s5748_s4 = smov [#allocation12]   ;;  %s5749_s12 = smov [#allocation13]  }
  0x85   : > { %s399_s9 = sshll.u32 %s5748_s4, 4  ;;  %s412_s20 = sshll.u32 %s5749_s12, 4  ;;  %s400_s9 = int_to_ptr.vmem [resolvable:$true] %s399_s9  ;;  %s413_s20 = int_to_ptr.vmem [resolvable:$true] %s412_s20 }
  0x86   : > { %s5603_s16 = scalar_lea.hbm %s6772_s8, 16 }
  0x87   : > { %p5604_p1 = scmp.ne.s32.totalorder %s6772_s8, %s5603_s16  ;;  %p5610_p0 = scmp.lt.u32.totalorder %s5603_s16, %s6772_s8 }
  0x89   : > { %p5606_p3 = pnand %p5604_p1, %p5874_p7 }
  0x8b   : > { %p5607_p13 = pneg %p5606_p3 }
  0x8d   : > { %p5612_p2 = pnand %p5610_p0, %p5607_p13 }
  0x8f   : > { %5615 = shalt.err (!%p5612_p2)
}
  0x90   : > { %s5616_s19 = scalar_lea.vmem %s400_s9, 16  ;;  %s5623_s1 = scalar_lea.vmem %s400_s9, 32 }
  0x91   : > { %p5617_p4 = scmp.ne.s32.totalorder %s400_s9, %s5616_s19  ;;  %p5624_p9 = scmp.lt.s32.totalorder %s400_s9, %s400_s9 }
  0x92   : > { %p5625_p10 = scmp.lt.s32.totalorder %s5623_s1, %s5616_s19 }
  0x93   : > { %p5619_p6 = pnand %p5617_p4, %p5874_p7 }
  0x94   : > { %p5626_p11 = por %p5625_p10, %p5624_p9 }
  0x95   : > { %p5620_p8 = pneg %p5619_p6 }
  0x97   : > { %p5627_p12 = pnand %p5626_p11, %p5620_p8 }
  0x99   : > { %5630 = shalt.err (!%p5627_p12)
}
  0x9a   : > { %5205 = dma.hbm_to_vmem [thread:$0]  (!%p5858_p5), %s6772_s8, 16, %s400_s9, [#allocation11]  }
  0x9b   : > { %s5631_s16 = scalar_lea.hbm %s6774_s10, 512 }
  0x9c   : > { %p5632_p1 = scmp.ne.s32.totalorder %s6774_s10, %s5631_s16  ;;  %p5638_p0 = scmp.lt.u32.totalorder %s5631_s16, %s6774_s10 }
  0x9e   : > { %p5634_p3 = pnand %p5632_p1, %p5874_p7 }
  0xa0   : > { %p5635_p13 = pneg %p5634_p3 }
  0xa2   : > { %p5640_p2 = pnand %p5638_p0, %p5635_p13 }
  0xa4   : > { %5643 = shalt.err (!%p5640_p2)
}
  0xa5   : > { %s5644_s19 = scalar_lea.vmem %s413_s20, 512  ;;  %p5652_p9 = scmp.lt.s32.totalorder %s413_s20, %s413_s20 }
  0xa6   : > { %p5645_p4 = scmp.ne.s32.totalorder %s413_s20, %s5644_s19  ;;  %p5653_p10 = scmp.lt.s32.totalorder %s5644_s19, %s5644_s19 }
  0xa8   : > { %p5647_p6 = pnand %p5645_p4, %p5874_p7  ;;  %p5654_p11 = por %p5653_p10, %p5652_p9 }
  0xaa   : > { %p5648_p8 = pneg %p5647_p6 }
  0xac   : > { %p5655_p12 = pnand %p5654_p11, %p5648_p8 }
  0xae   : > { %5658 = shalt.err (!%p5655_p12)
}
  0xaf   : > { %5208 = dma.hbm_to_vmem [thread:$0]  (!%p5858_p5), %s6774_s10, 512, %s413_s20, [#allocation14], %s5744_s17, %s5744_s17, %s5745_s18  }
  0xb0   : > { %s6029_s13 = sadd.s32 1, %s5739_s24   ;;  %s36_s4 = sadd.s32 1, %s5735_s23 }
  0xb1   : > { %s33_s25 = ssub.s32 %s5739_s24, %s6029_s13  ;;  %p43_p1 = scmp.ne.s32.totalorder %s5735_s23, %s5731_s22 }
  0xb2   : > { %p34_p7 = scmp.eq.s32.totalorder %s33_s25, 0  ;;  %p44_p3 = scmp.eq.s32.totalorder %s5739_s24, 0 }
  0xb3   : > { %p49_p13 = scmp.ne.s32.totalorder %s5731_s22, %s5727_s21  ;;  %p6790_p2 = scmp.eq.s32.totalorder %s5843_s27, 0 }
  0xb4   : > { %s6040_s12 = scalar_select %p34_p7, %s5735_s23, %s36_s4  }
  0xb5   : > { %p45_p0 = por %p44_p3, %p43_p1  ;;  %p6044_p4 = por %p6790_p2, %p49_p13 }
  0xb6   : > { %p5220_p6 = scmp.lt.s32.totalorder %s5739_s24, 2  ;;  %s429_s14 = sand.u32 1, %s5735_s23  }
  0xb7   : > { %s4154_s17 = sshll.u32 %s429_s14, 3  ;;  %s4155_s18 = sshll.u32 %s5739_s24, 7 }
  0xb8   : > { %s6054_s30 = scalar_lea.hbm %s6764_s0, %s4155_s18  ;;  %s433_s21 = scalar_lea.vmem [#allocation2], %s4154_s17 }
  0xb9   : > { %s440_s26 = sshll.u32 %s433_s21, 4  ;;  %p6058_p5 = pnand %p5220_p6, %p45_p0  ;;  %s6056_s26 = int_to_ptr.vmem [resolvable:$true] %s440_s26 }
  0xba   : > { %s430_s24 = scalar_lea.sflag [#allocation3], %s429_s14  ;;  %s5659_s15 = scalar_lea.hbm %s6054_s30, 128 }
  0xbb   : > { %p5660_p8 = scmp.ne.s32.totalorder %s6054_s30, %s5659_s15  ;;  %p5661_p9 = pneg %p6058_p5 }
  0xbc   : > { %s5664_s1 = scalar_lea.hbm %s6764_s0, 256  ;;  %p5665_p12 = scmp.lt.u32.totalorder %s6054_s30, %s6764_s0 }
  0xbd   : > { %p5662_p10 = pnand %p5661_p9, %p5660_p8  ;;  %p5666_p7 = scmp.lt.u32.totalorder %s5664_s1, %s5659_s15 }
  0xbe   : > { %p5668_p3 = scmp.lt.u32.totalorder %s5659_s15, %s6054_s30 }
  0xbf   : > { %p5663_p11 = pneg %p5662_p10  ;;  %p5667_p1 = por %p5666_p7, %p5665_p12 }
  0xc1   : > { %p5669_p13 = por %p5668_p3, %p5667_p1 }
  0xc3   : > { %p5670_p0 = pnand %p5669_p13, %p5663_p11 }
  0xc5   : > { %5673 = shalt.err (!%p5670_p0)
}
  0xc6   : > { %s5674_s14 = scalar_lea.vmem %s6056_s26, 128  ;;  %s5750_s17 = smov [#allocation2]  }
  0xc7   : > { %p5675_p2 = scmp.ne.s32.totalorder %s6056_s26, %s5674_s14  ;;  %s5679_s18 = sshll.u32 %s5750_s17, 4  ;;  %s5680_s18 = int_to_ptr.vmem [resolvable:$false] %s5679_s18 }
  0xc8   : > { %s5681_s20 = scalar_lea.vmem %s5680_s18, 256  ;;  %p5682_p10 = scmp.lt.s32.totalorder %s6056_s26, %s5680_s18 }
  0xc9   : > { %p5677_p6 = pnand %p5675_p2, %p5661_p9  ;;  %p5683_p12 = scmp.lt.s32.totalorder %s5681_s20, %s5674_s14 }
  0xcb   : > { %p5678_p8 = pneg %p5677_p6  ;;  %p5684_p7 = por %p5683_p12, %p5682_p10 }
  0xcd   : > { %p5685_p1 = pnand %p5684_p7, %p5678_p8 }
  0xcf   : > { %5688 = shalt.err (!%p5685_p1)
}
  0xd0   : > { %5212 = dma.hbm_to_vmem [thread:$0]  (!%p6058_p5), %s6054_s30, 128, %s6056_s26, %s430_s24  }
  0xd1   : > { %p6793_p11 = scmp.ne.s32.totalorder %s6786_s28, 0 }
  0xd2   : > { %s451_s16 = sand.u32 (!%p6793_p11), 1, %s5731_s22  }
  0xd3   : > { %449 = sbr.rel (%p6793_p11) target bundleno = 15617 (0x3d01), region = 68  ;;  %s4157_s21 = sshll.u32 (!%p6793_p11), %s451_s16, 3 }
  0xd4   : > { %s452_s15 = scalar_lea.sflag (!%p6793_p11), [#allocation3], %s451_s16  ;;  %s6090_s19 = scalar_lea.vmem (!%p6793_p11), [#allocation2], %s4157_s21 }
  0xda   : > { %5706 = dma.done.wait (%p6044_p4), %s452_s15, 128  }
  0xdb   : > { %5708 = vsyncadd (%p6044_p4), %s452_s15, 4294967168  ;;  %p6794_p9 = scmp.eq.s32.totalorder %s5843_s27, 0 }
  0xdd   : > { %5710 = dma.done.wait (%p6794_p9), [#allocation5], 2048   ;;  %p6795_p5 = pmov %p6794_p9 }
  0xdf   : > { %5712 = vsyncadd (%p6795_p5), [#allocation5], 4294965248  ;;  %p6796_p3 = pmov %p6795_p5 }
  0xe1   : > { %5714 = dma.done.wait (%p6796_p3), [#allocation8], 528   ;;  %p6797_p13 = pmov %p6796_p3 }
  0xe2   : > { %p6798_p0 = pmov %p6796_p3 }
  0xe3   : > { %5716 = vsyncadd (%p6797_p13), [#allocation8], 4294966768 }
  0xe4   : > { %5718 = dma.done.wait (%p6798_p0), [#allocation11], 528   ;;  %p6799_p2 = pmov %p6798_p0 }
  0xe5   : > { %p6800_p4 = pmov %p6798_p0 }
  0xe6   : > { %5720 = vsyncadd (%p6799_p2), [#allocation11], 4294966768 }
  0xe7   : > { %5722 = dma.done.wait (%p6800_p4), [#allocation14], 512   ;;  %p6801_p6 = pmov %p6798_p0 }
  0xe8   : > { %v5751_v0 = vmov 0.0|0.0   ;;  %vm5752_vm0 = vmmov 0   ;;  %v5753_v1 = vmov 0.0   ;;  %v528_v2 = vld [vmem:[#allocation4] sm:$0xff]  ;;  %v529_v3 = vld [vmem:[#allocation4 + $0x8] sm:$0xff]  ;;  %v530_v4 = vld [vmem:[#allocation4 + $0x10] sm:$0xff]  ;;  %v739_v38 = vlaneseq }
  0xe9   : > { %5724 = vsyncadd (%p6801_p6), [#allocation14], 4294966784  ;;  %4887 = vmatprep.subr.bf16.mxu0 %v5751_v0  ;;  %4444 = vmatprep.mubr.msk.f32.mxu0 %vm5752_vm0, %v5753_v1  ;;  %v6118_v5 = vpack.c.bf16 %v529_v3, %v528_v2  ;;  %v531_v6 = vld [vmem:[#allocation4 + $0x18] sm:$0xff]  ;;  %v532_v8 = vld [vmem:[#allocation4 + $0x20] sm:$0xff]  ;;  %s5754_s30 = smov 64   ;;  %s5755_s26 = smov 96  }
  0xea   : > { %4899 = vmatprep.subr.bf16.mxu1 %v5751_v0  ;;  %4455 = vmatprep.mubr.msk.f32.mxu1 %vm5752_vm0, %v5753_v1  ;;  %v6121_v7 = vpack.c.bf16 %v531_v6, %v530_v4  ;;  %v533_v9 = vld [vmem:[#allocation4 + $0x28] sm:$0xff]  ;;  %v534_v11 = vld [vmem:[#allocation4 + $0x30] sm:$0xff]  ;;  %v535_v12 = vld [vmem:[#allocation4 + $0x38] sm:$0xff]  ;;  %vm666_vm1 = vcmask 261120   ;;  %v6173_v39 = vshrl.u32 %v739_v38, 7  ;;  %s5756_s11 = smov 32  }
  0xeb   : > { %4889 = vmatpush3.bf16.msra.mxu0 %v6118_v5  ;;  %v6125_v10 = vpack.c.bf16 %v533_v9, %v532_v8  ;;  %v6129_v13 = vpack.c.bf16 %v535_v12, %v534_v11  ;;  %v6140_v14 = vld [vmem:[%s6766_s2] sm:$0x1]  ;;  %v547_v29 = vld [vmem:[#allocation7 + $0x8] sm:$0xff]  ;;  %v548_v30 = vld [vmem:[#allocation7 + $0x10] sm:$0xff]  ;;  %vm565_vm2 = vcmask 523264   ;;  %s6802_s1 = sld [smem:[#allocation21_spill]] }
  0xec   : > { %4890 = vmatprep.subr.bf16.mxu0 %v5751_v0  ;;  %v546_v28 = vld [vmem:[#allocation7] sm:$0xff]  ;;  %v549_v32 = vld [vmem:[#allocation7 + $0x18] sm:$0xff]  ;;  %v6176_v40 = vsub.s32 0, %v6173_v39  ;;  %s6803_s14 = sld [smem:[#allocation22_spill]]  ;;  %p523_p8 = scmp.lt.s32.totalorder %s5843_s27, 1  ;;  %vm1819_vm8 = vcmask 0  }
  0xed   : > { %v6148_v31 = vpack.c.bf16 %v547_v29, %v546_v28  ;;  %v6151_v33 = vpack.c.bf16 %v549_v32, %v548_v30  ;;  %v6179_v41 = vld [vmem:[%s6090_s19] sm:$0xff]  ;;  %v6183_v46 = vld [vmem:[#allocation9] ss:$0 sm:$0xff]  ;;  %s6805_s4 = sld [smem:[#allocation24_spill]] }
  0xee   : > { %s6811_s27 = smov (!%p523_p8, %s5843_s27), 1 }
  0xef   : > { %4892 = vmatpush3.bf16.msra.mxu0 %v6121_v7  ;;  %4901 = vmatpush3.bf16.msra.mxu1 %v6148_v31 }
  0xf0   : > { %4893 = vmatprep.subr.bf16.mxu0 %v5751_v0  ;;  %4902 = vmatprep.subr.bf16.mxu1 %v5751_v0 }
  0xf3   : > { %4895 = vmatpush3.bf16.msra.mxu0 %v6125_v10  ;;  %4904 = vmatpush3.bf16.msra.mxu1 %v6151_v33 }
  0xf4   : > { %4896 = vmatprep.subr.bf16.mxu0 %v5751_v0  ;;  %4905 = vmatprep.subr.bf16.mxu1 %v5751_v0 }
  0xf7   : > { %4898 = vmatpush3.bf16.msra.mxu0 %v6129_v13 }
  0xf8   : > { %4917 = vmatprep.subr.bf16.mxu0 %v5751_v0 }
  0xfa   : > { %4445 = vmatmul.mubr.f32.vlgmr.msra.gmra.mrb[0].mxu0 %v5753_v1 }
  0xfb   : > { %4485 = vmatprep.mubr.msk.f32.mxu0 %vm5752_vm0, %v5753_v1  ;;  %4919 = vmatpush3.bf16.msra.mxu0 %v6148_v31 }
  0xfc   : > { %4920 = vmatprep.subr.bf16.mxu0 %v5751_v0 }
  0xff   : > { %4922 = vmatpush3.bf16.msra.mxu0 %v6151_v33 }
 0x100   : > { %4923 = vmatprep.subr.bf16.mxu0 %v5751_v0 }
 0x1cd   : > { %v635_v15 = vpop.f32.mrb[0].mxu0 }
 0x1ce   : > { %v636_v16 = vadd.f32 %v635_v15, %v6140_v14  ;;  %v4446_v17 = vpop.f32.mrb[1].mxu0 }
 0x1d0   : > { %5275 = vtanh.f32 %v636_v16  ;;  %v4166_v19 = vmul.f32 -1.442695, %v636_v16 }
 0x1d2   : > { %5277 = vpow2.f32 %v4166_v19 }
 0x1da   : > { %v5276_v18 = vpop.eup %5275 }
 0x1db   : > { %648 = vrot.lane.b32.xlu0 %v5276_v18, %s5754_s30 }
 0x1dc   : > { %v5278_v20 = vpop.eup %5277 }
 0x1dd   : > { %v642_v21 = vadd.f32 1.0, %v5278_v20 }
 0x1df   : > { %5279 = vrcp.f32 %v642_v21 }
 0x1e9   : > { %v5280_v22 = vpop.eup %5279 }
 0x1ea   : > { %v646_v25 = vmul.f32 0.0, %v5280_v22 }
 0x24d   : > { %v649_v23 = vpop.permute.xlu0 %648 }
 0x24e   : > { %v651_v24 = vmul.f32 %v5280_v22, %v649_v23 }
 0x250   : > { %653 = vrot.lane.b32.xlu0 %v651_v24, %s5755_s26 }
 0x2c2   : > { %v654_v26 = vpop.permute.xlu0 %653 }
 0x2c3   : > { %v6145_v27 = vadd.f32 %v654_v26, %v646_v25 }
 0x2c5   : > { %5281 = vtanh.f32 %v6145_v27 }
 0x2cf   : > { %v5282_v34 = vpop.eup %5281 }
 0x2d0   : > { %659 = vrot.lane.b32.xlu1 %v5282_v34, %s5754_s30 }
 0x342   : > { %v660_v35 = vpop.permute.xlu1 %659 }
 0x343   : > { %v662_v36 = vmul.f32 %v5280_v22, %v660_v35 }
 0x345   : > { %664 = vrot.lane.b32.xlu1 %v662_v36, %s5754_s30 }
 0x3b7   : > { %v665_v37 = vpop.permute.xlu1 %664 }
 0x3b8   : > { %4456 = vmatmul.mubr.msk.f32.vlgmr.msra.gmra.mrb[0].mxu1 %vm666_vm1, %v665_v37 }
 0x3b9   : > { %4907 = vmatpush3.bf16.msra.mxu1 %v6118_v5  ;;  %4474 = vmatprep.mubr.msk.f32.mxu1 %vm5752_vm0, %v5753_v1 }
 0x3ba   : > { %4908 = vmatprep.subr.bf16.mxu1 %v5751_v0 }
 0x3bd   : > { %4910 = vmatpush3.bf16.msra.mxu1 %v6121_v7 }
 0x3be   : > { %4911 = vmatprep.subr.bf16.mxu1 %v5751_v0 }
 0x3c1   : > { %4913 = vmatpush3.bf16.msra.mxu1 %v6125_v10 }
 0x3c2   : > { %4914 = vmatprep.subr.bf16.mxu1 %v5751_v0 }
 0x3c5   : > { %4916 = vmatpush3.bf16.msra.mxu1 %v6129_v13 }
 0x3c6   : > { %4935 = vmatprep.subr.bf16.mxu1 %v5751_v0 }
 0x48b   : > { %v735_v42 = vpop.f32.mrb[0].mxu1 }
 0x48c   : > { %v742_v43 = vrot.slane %v735_v42, %v6176_v40  ;;  %v4457_v44 = vpop.f32.mrb[1].mxu1 }
 0x48e   : > { %v743_v45 = vadd.f32 %v742_v43, %v6179_v41 }
 0x490   : > { %5283 = vtanh.f32 %v743_v45 }
 0x49a   : > { %v5284_v47 = vpop.eup %5283 }
 0x49b   : > { %v751_v48 = vmul.f32 %v5284_v47, %v6183_v46 }
 0x49d   : > { %v752_v49 = vsel %vm666_vm1, %v751_v48, 0.0 }
 0x49e   : > { %753 = vadd.xlane.f32.xlu0 %v752_v49 }
 0x52b   : > { %v754_v50 = vpop.xlane.xlu0 %753 }
 0x52c   : > { %v755_v51 = vrot.slane %v754_v50, 4 }
 0x52e   : > { %v756_v52 = vmax.f32 %v754_v50, %v755_v51 }
 0x530   : > { %v757_v53 = vrot.slane %v756_v52, 2 }
 0x532   : > { %v758_v54 = vmax.f32 %v756_v52, %v757_v53 }
 0x534   : > { %v759_v55 = vrot.slane %v758_v54, 1 }
 0x536   : > { %v760_v56 = vmax.f32 %v758_v54, %v759_v55 }
 0x538   : > { %v761_v57 = vsub.f32 %v754_v50, %v760_v56 }
 0x53a   : > { %v762_v58 = vmul.f32 1.442695, %v761_v57 }
 0x53c   : > { %5285 = vpow2.f32 %v762_v58 }
 0x546   : > { %v5286_v59 = vpop.eup %5285 }
 0x547   : > { %v764_v60 = vrot.slane %v5286_v59, 4 }
 0x549   : > { %v765_v61 = vadd.f32 %v5286_v59, %v764_v60 }
 0x54b   : > { %v766_v62 = vrot.slane %v765_v61, 2 }
 0x54d   : > { %v767_v63 = vadd.f32 %v766_v62, %v765_v61 }
 0x54f   : > { %v768_v2 = vrot.slane %v767_v63, 1 }
 0x551   : > { %v769_v3 = vadd.f32 %v768_v2, %v767_v63 }
 0x553   : > { %5287 = vrcp.f32 %v769_v3 }
 0x55d   : > { %v5288_v4 = vpop.eup %5287 }
 0x55e   : > { %v771_v6 = vmul.f32 %v5288_v4, %v5286_v59 }
 0x560   : > { %v772_v8 = vmul.f32 %v771_v6, %v6179_v41 }
 0x562   : > { %v773_v9 = vsel %vm666_vm1, %v772_v8, 0.0 }
 0x563   : > { %v774_v11 = vrot.slane %v773_v9, 4 }
 0x565   : > { %v775_v12 = vadd.f32 %v774_v11, %v773_v9 }
 0x567   : > { %v776_v15 = vrot.slane %v775_v12, 2 }
 0x569   : > { %v777_v16 = vadd.f32 %v776_v15, %v775_v12 }
 0x56b   : > { %v778_v17 = vrot.slane %v777_v16, 1 }
 0x56d   : > { %v779_v18 = vadd.f32 %v778_v17, %v777_v16 }
 0x56f   : > { %782 = vrot.lane.b32.xlu1 %v779_v18, %s5756_s11 }
 0x5e1   : > { %v783_v19 = vpop.permute.xlu1 %782 }
 0x5e2   : > { %v785_v20 = vsel %vm666_vm1, %v665_v37, %v783_v19 }
 0x5e3   : > { %4475 = vmatmul.mubr.msk.f32.vlgmr.msra.gmra.mrb[2].mxu1 %vm565_vm2, %v785_v20 }
 0x5e4   : > { %4937 = vmatpush3.bf16.msra.mxu1 %v6148_v31  ;;  %4515 = vmatprep.mubr.msk.f32.mxu1 %vm5752_vm0, %v5753_v1 }
 0x5e5   : > { %4938 = vmatprep.subr.bf16.mxu1 %v5751_v0 }
 0x5e8   : > { %4940 = vmatpush3.bf16.msra.mxu1 %v6151_v33 }
 0x5e9   : > { %4941 = vmatprep.subr.bf16.mxu1 %v5751_v0 }
 0x6b6   : > { %v855_v21 = vpop.f32.mrb[2].mxu1 }
 0x6b7   : > { %v856_v22 = vadd.f32 %v855_v21, %v6140_v14  ;;  %v4476_v23 = vpop.f32.mrb[3].mxu1 }
 0x6b9   : > { %5289 = vtanh.f32 %v856_v22  ;;  %v4170_v25 = vmul.f32 -1.442695, %v856_v22 }
 0x6bb   : > { %5291 = vpow2.f32 %v4170_v25 }
 0x6c3   : > { %v5290_v24 = vpop.eup %5289 }
 0x6c4   : > { %868 = vrot.lane.b32.xlu1 %v5290_v24, %s5754_s30 }
 0x6c5   : > { %v5292_v26 = vpop.eup %5291 }
 0x6c6   : > { %v862_v28 = vadd.f32 1.0, %v5292_v26 }
 0x6c8   : > { %5293 = vrcp.f32 %v862_v28 }
 0x6d2   : > { %v5294_v29 = vpop.eup %5293 }
 0x6d3   : > { %v866_v34 = vmul.f32 %v5294_v29, %v6145_v27 }
 0x736   : > { %v869_v30 = vpop.permute.xlu1 %868 }
 0x737   : > { %v871_v32 = vmul.f32 %v5294_v29, %v869_v30 }
 0x739   : > { %873 = vrot.lane.b32.xlu1 %v871_v32, %s5755_s26 }
 0x7ab   : > { %v874_v35 = vpop.permute.xlu1 %873 }
 0x7ac   : > { %v6202_v36 = vadd.f32 %v874_v35, %v866_v34 }
 0x7ae   : > { %5295 = vtanh.f32 %v6202_v36 }
 0x7b8   : > { %v5296_v37 = vpop.eup %5295 }
 0x7b9   : > { %879 = vrot.lane.b32.xlu1 %v5296_v37, %s5754_s30 }
 0x82b   : > { %v880_v38 = vpop.permute.xlu1 %879 }
 0x82c   : > { %v882_v42 = vmul.f32 %v5294_v29, %v880_v38 }
 0x82e   : > { %884 = vrot.lane.b32.xlu1 %v882_v42, %s5754_s30 }
 0x8a0   : > { %v885_v43 = vpop.permute.xlu1 %884 }
 0x8a1   : > { %4486 = vmatmul.mubr.msk.f32.vlgmr.msra.gmra.mrb[2].mxu0 %vm666_vm1, %v885_v43 }
 0x8a2   : > { %4925 = vmatpush3.bf16.msra.mxu0 %v6118_v5  ;;  %4504 = vmatprep.mubr.msk.f32.mxu0 %vm5752_vm0, %v5753_v1 }
 0x8a3   : > { %4926 = vmatprep.subr.bf16.mxu0 %v5751_v0 }
 0x8a6   : > { %4928 = vmatpush3.bf16.msra.mxu0 %v6121_v7 }
 0x8a7   : > { %4929 = vmatprep.subr.bf16.mxu0 %v5751_v0 }
 0x8aa   : > { %4931 = vmatpush3.bf16.msra.mxu0 %v6125_v10 }
 0x8ab   : > { %4932 = vmatprep.subr.bf16.mxu0 %v5751_v0 }
 0x8ae   : > { %4934 = vmatpush3.bf16.msra.mxu0 %v6129_v13 }
 0x8af   : > { %4953 = vmatprep.subr.bf16.mxu0 %v5751_v0 }
 0x974   : > { %v954_v27 = vpop.f32.mrb[2].mxu0 }
 0x975   : > { %v961_v44 = vrot.slane %v954_v27, %v6176_v40  ;;  %v4487_v45 = vpop.f32.mrb[3].mxu0 }
 0x977   : > { %v962_v47 = vadd.f32 %v961_v44, %v6179_v41 }
 0x979   : > { %5297 = vtanh.f32 %v962_v47 }
 0x983   : > { %v5298_v48 = vpop.eup %5297 }
 0x984   : > { %v964_v49 = vmul.f32 %v5298_v48, %v6183_v46 }
 0x986   : > { %v965_v50 = vsel %vm666_vm1, %v964_v49, 0.0 }
 0x987   : > { %966 = vadd.xlane.f32.xlu1 %v965_v50 }
 0xa14   : > { %v967_v51 = vpop.xlane.xlu1 %966 }
 0xa15   : > { %v968_v52 = vrot.slane %v967_v51, 4 }
 0xa17   : > { %v969_v53 = vmax.f32 %v967_v51, %v968_v52 }
 0xa19   : > { %v970_v54 = vrot.slane %v969_v53, 2 }
 0xa1b   : > { %v971_v55 = vmax.f32 %v969_v53, %v970_v54 }
 0xa1d   : > { %v972_v56 = vrot.slane %v971_v55, 1 }
 0xa1f   : > { %v973_v57 = vmax.f32 %v971_v55, %v972_v56 }
 0xa21   : > { %v974_v58 = vsub.f32 %v967_v51, %v973_v57 }
 0xa23   : > { %v975_v59 = vmul.f32 1.442695, %v974_v58 }
 0xa25   : > { %5299 = vpow2.f32 %v975_v59 }
 0xa2f   : > { %v5300_v60 = vpop.eup %5299 }
 0xa30   : > { %v977_v61 = vrot.slane %v5300_v60, 4 }
 0xa32   : > { %v978_v62 = vadd.f32 %v5300_v60, %v977_v61 }
 0xa34   : > { %v979_v63 = vrot.slane %v978_v62, 2 }
 0xa36   : > { %v980_v2 = vadd.f32 %v979_v63, %v978_v62 }
 0xa38   : > { %v981_v3 = vrot.slane %v980_v2, 1 }
 0xa3a   : > { %v982_v4 = vadd.f32 %v981_v3, %v980_v2 }
 0xa3c   : > { %5301 = vrcp.f32 %v982_v4 }
 0xa46   : > { %v5302_v6 = vpop.eup %5301 }
 0xa47   : > { %v984_v8 = vmul.f32 %v5302_v6, %v5300_v60 }
 0xa49   : > { %v985_v9 = vmul.f32 %v984_v8, %v6179_v41 }
 0xa4b   : > { %v986_v11 = vsel %vm666_vm1, %v985_v9, 0.0 }
 0xa4c   : > { %v987_v12 = vrot.slane %v986_v11, 4 }
 0xa4e   : > { %v988_v15 = vadd.f32 %v987_v12, %v986_v11 }
 0xa50   : > { %v989_v16 = vrot.slane %v988_v15, 2 }
 0xa52   : > { %v990_v17 = vadd.f32 %v989_v16, %v988_v15 }
 0xa54   : > { %v991_v18 = vrot.slane %v990_v17, 1 }
 0xa56   : > { %v992_v19 = vadd.f32 %v991_v18, %v990_v17 }
 0xa58   : > { %995 = vrot.lane.b32.xlu0 %v992_v19, %s5756_s11 }
 0xaca   : > { %v996_v20 = vpop.permute.xlu0 %995 }
 0xacb   : > { %v998_v21 = vsel %vm666_vm1, %v885_v43, %v996_v20 }
 0xacc   : > { %4505 = vmatmul.mubr.msk.f32.vlgmr.msra.gmra.mrb[4].mxu0 %vm565_vm2, %v998_v21 }
 0xacd   : > { %4955 = vmatpush3.bf16.msra.mxu0 %v6148_v31  ;;  %4545 = vmatprep.mubr.msk.f32.mxu0 %vm5752_vm0, %v5753_v1 }
 0xace   : > { %4956 = vmatprep.subr.bf16.mxu0 %v5751_v0 }
 0xad1   : > { %4958 = vmatpush3.bf16.msra.mxu0 %v6151_v33 }
 0xad2   : > { %4959 = vmatprep.subr.bf16.mxu0 %v5751_v0 }
 0xb9f   : > { %v1068_v22 = vpop.f32.mrb[4].mxu0 }
 0xba0   : > { %v1069_v23 = vadd.f32 %v1068_v22, %v6140_v14  ;;  %v4506_v24 = vpop.f32.mrb[5].mxu0 }
 0xba2   : > { %5303 = vtanh.f32 %v1069_v23  ;;  %v4173_v26 = vmul.f32 -1.442695, %v1069_v23 }
 0xba4   : > { %5305 = vpow2.f32 %v4173_v26 }
 0xbac   : > { %v5304_v25 = vpop.eup %5303 }
 0xbad   : > { %1081 = vrot.lane.b32.xlu0 %v5304_v25, %s5754_s30 }
 0xbae   : > { %v5306_v31 = vpop.eup %5305 }
 0xbaf   : > { %v1075_v28 = vadd.f32 1.0, %v5306_v31 }
 0xbb1   : > { %5307 = vrcp.f32 %v1075_v28 }
 0xbbb   : > { %v5308_v29 = vpop.eup %5307 }
 0xbbc   : > { %v1079_v33 = vmul.f32 %v5308_v29, %v6202_v36 }
 0xc1f   : > { %v1082_v30 = vpop.permute.xlu0 %1081 }
 0xc20   : > { %v1084_v32 = vmul.f32 %v5308_v29, %v1082_v30 }
 0xc22   : > { %1086 = vrot.lane.b32.xlu1 %v1084_v32, %s5755_s26 }
 0xc94   : > { %v1087_v34 = vpop.permute.xlu1 %1086 }
 0xc95   : > { %v6237_v35 = vadd.f32 %v1087_v34, %v1079_v33 }
 0xc97   : > { %5309 = vtanh.f32 %v6237_v35 }
 0xca1   : > { %v5310_v37 = vpop.eup %5309 }
 0xca2   : > { %1092 = vrot.lane.b32.xlu0 %v5310_v37, %s5754_s30 }
 0xd14   : > { %v1093_v38 = vpop.permute.xlu0 %1092 }
 0xd15   : > { %v1095_v42 = vmul.f32 %v5308_v29, %v1093_v38 }
 0xd17   : > { %1097 = vrot.lane.b32.xlu0 %v1095_v42, %s5754_s30 }
 0xd89   : > { %v1098_v43 = vpop.permute.xlu0 %1097 }
 0xd8a   : > { %4516 = vmatmul.mubr.msk.f32.vlgmr.msra.gmra.mrb[4].mxu1 %vm666_vm1, %v1098_v43 }
 0xd8b   : > { %4943 = vmatpush3.bf16.msra.mxu1 %v6118_v5  ;;  %4534 = vmatprep.mubr.msk.f32.mxu1 %vm5752_vm0, %v5753_v1 }
 0xd8c   : > { %4944 = vmatprep.subr.bf16.mxu1 %v5751_v0 }
 0xd8f   : > { %4946 = vmatpush3.bf16.msra.mxu1 %v6121_v7 }
 0xd90   : > { %4947 = vmatprep.subr.bf16.mxu1 %v5751_v0 }
 0xd93   : > { %4949 = vmatpush3.bf16.msra.mxu1 %v6125_v10 }
 0xd94   : > { %4950 = vmatprep.subr.bf16.mxu1 %v5751_v0 }
 0xd97   : > { %4952 = vmatpush3.bf16.msra.mxu1 %v6129_v13 }
 0xd98   : > { %4965 = vmatprep.subr.bf16.mxu1 %v5751_v0 }
 0xe5d   : > { %v1167_v36 = vpop.f32.mrb[4].mxu1 }
 0xe5e   : > { %v1174_v5 = vrot.slane %v1167_v36, %v6176_v40  ;;  %v4517_v27 = vpop.f32.mrb[5].mxu1 }
 0xe5f   : > { %v538_v27 = vld [vmem:[#allocation6 + $0x8] sm:$0xff] }
 0xe60   : > { %v1175_v44 = vadd.f32 %v1174_v5, %v6179_v41  ;;  %v537_v5 = vld [vmem:[#allocation6] sm:$0xff] }
 0xe62   : > { %5311 = vtanh.f32 %v1175_v44  ;;  %v539_v44 = vld [vmem:[#allocation6 + $0x10] sm:$0xff] }
 0xe6c   : > { %v5312_v45 = vpop.eup %5311 }
 0xe6d   : > { %v1177_v7 = vmul.f32 %v5312_v45, %v6183_v46  ;;  %v6280_v45 = vpack.c.bf16 %v538_v27, %v537_v5  ;;  %v551_v27 = vld [vmem:[#allocation10] sm:$0xff] }
 0xe6f   : > { %v1178_v47 = vsel %vm666_vm1, %v1177_v7, 0.0  ;;  %v540_v7 = vld [vmem:[#allocation6 + $0x18] sm:$0xff] }
 0xe70   : > { %1179 = vadd.xlane.f32.xlu0 %v1178_v47  ;;  %v6283_v47 = vpack.c.bf16 %v540_v7, %v539_v44  ;;  %v552_v44 = vld [vmem:[#allocation10 + $0x8] sm:$0xff] }
 0xe71   : > { %v6324_v7 = vpack.c.bf16 %v552_v44, %v551_v27 }
 0xefd   : > { %v1180_v10 = vpop.xlane.xlu0 %1179 }
 0xefe   : > { %v1181_v48 = vrot.slane %v1180_v10, 4 }
 0xf00   : > { %v1182_v49 = vmax.f32 %v1180_v10, %v1181_v48  ;;  %v542_v48 = vld [vmem:[#allocation6 + $0x28] sm:$0xff] }
 0xf02   : > { %v1183_v50 = vrot.slane %v1182_v49, 2 }
 0xf04   : > { %v1184_v13 = vmax.f32 %v1182_v49, %v1183_v50  ;;  %v543_v49 = vld [vmem:[#allocation6 + $0x30] sm:$0xff]  ;;  %v544_v50 = vld [vmem:[#allocation6 + $0x38] sm:$0xff] }
 0xf06   : > { %v1185_v51 = vrot.slane %v1184_v13, 1 }
 0xf08   : > { %v1186_v52 = vmax.f32 %v1184_v13, %v1185_v51  ;;  %v6291_v13 = vpack.c.bf16 %v544_v50, %v543_v49 }
 0xf0a   : > { %v1187_v53 = vsub.f32 %v1180_v10, %v1186_v52  ;;  %v541_v10 = vld [vmem:[#allocation6 + $0x20] sm:$0xff] }
 0xf0c   : > { %v1188_v54 = vmul.f32 1.442695, %v1187_v53 }
 0xf0e   : > { %5313 = vpow2.f32 %v1188_v54 }
 0xf18   : > { %v5314_v55 = vpop.eup %5313 }
 0xf19   : > { %v1190_v56 = vrot.slane %v5314_v55, 4 }
 0xf1b   : > { %v1191_v57 = vadd.f32 %v5314_v55, %v1190_v56 }
 0xf1d   : > { %v1192_v58 = vrot.slane %v1191_v57, 2 }
 0xf1f   : > { %v1193_v59 = vadd.f32 %v1192_v58, %v1191_v57 }
 0xf21   : > { %v1194_v60 = vrot.slane %v1193_v59, 1 }
 0xf23   : > { %v1195_v61 = vadd.f32 %v1194_v60, %v1193_v59 }
 0xf25   : > { %5315 = vrcp.f32 %v1195_v61 }
 0xf2f   : > { %v5316_v62 = vpop.eup %5315 }
 0xf30   : > { %v1197_v63 = vmul.f32 %v5316_v62, %v5314_v55 }
 0xf32   : > { %v1198_v2 = vmul.f32 %v1197_v63, %v6179_v41 }
 0xf34   : > { %v1199_v3 = vsel %vm666_vm1, %v1198_v2, 0.0 }
 0xf35   : > { %v1200_v4 = vrot.slane %v1199_v3, 4 }
 0xf37   : > { %v1201_v6 = vadd.f32 %v1200_v4, %v1199_v3 }
 0xf39   : > { %v1202_v8 = vrot.slane %v1201_v6, 2 }
 0xf3b   : > { %v1203_v9 = vadd.f32 %v1202_v8, %v1201_v6 }
 0xf3d   : > { %v1204_v11 = vrot.slane %v1203_v9, 1 }
 0xf3f   : > { %v1205_v12 = vadd.f32 %v1204_v11, %v1203_v9 }
 0xf41   : > { %1208 = vrot.lane.b32.xlu1 %v1205_v12, %s5756_s11 }
 0xfb3   : > { %v1209_v15 = vpop.permute.xlu1 %1208 }
 0xfb4   : > { %v1211_v16 = vsel %vm666_vm1, %v1098_v43, %v1209_v15 }
 0xfb5   : > { %4535 = vmatmul.mubr.msk.f32.vlgmr.msra.gmra.mrb[6].mxu1 %vm565_vm2, %v1211_v16 }
 0xfb6   : > { %4575 = vmatprep.mubr.msk.f32.mxu1 %vm5752_vm0, %v5753_v1  ;;  %4967 = vmatpush3.bf16.msra.mxu1 %v6280_v45 }
 0xfb7   : > { %4968 = vmatprep.subr.bf16.mxu1 %v5751_v0 }
 0xfba   : > { %4970 = vmatpush3.bf16.msra.mxu1 %v6283_v47 }
 0xfbb   : > { %4971 = vmatprep.subr.bf16.mxu1 %v5751_v0 }
0x1088   : > { %v1281_v17 = vpop.f32.mrb[6].mxu1 }
0x1089   : > { %v1282_v18 = vadd.f32 %v1281_v17, %v6140_v14  ;;  %v4536_v19 = vpop.f32.mrb[7].mxu1 }
0x108b   : > { %5317 = vtanh.f32 %v1282_v18  ;;  %v4176_v21 = vmul.f32 -1.442695, %v1282_v18 }
0x108d   : > { %5319 = vpow2.f32 %v4176_v21 }
0x1095   : > { %v5318_v20 = vpop.eup %5317 }
0x1096   : > { %1294 = vrot.lane.b32.xlu1 %v5318_v20, %s5754_s30 }
0x1097   : > { %v5320_v22 = vpop.eup %5319 }
0x1098   : > { %v1288_v23 = vadd.f32 1.0, %v5320_v22  ;;  %v6315_v22 = vld [vmem:[%s6802_s1] sm:$0x1] }
0x109a   : > { %5321 = vrcp.f32 %v1288_v23 }
0x10a4   : > { %v5322_v24 = vpop.eup %5321 }
0x10a5   : > { %v1292_v31 = vmul.f32 %v5322_v24, %v6237_v35 }
0x1108   : > { %v1295_v25 = vpop.permute.xlu1 %1294 }
0x1109   : > { %v1297_v26 = vmul.f32 %v5322_v24, %v1295_v25 }
0x110b   : > { %1299 = vrot.lane.b32.xlu1 %v1297_v26, %s5755_s26 }
0x117d   : > { %v1300_v28 = vpop.permute.xlu1 %1299 }
0x117e   : > { %v1302_v29 = vadd.f32 %v1300_v28, %v1292_v31 }
0x1180   : > { %5323 = vtanh.f32 %v1302_v29 }
0x118a   : > { %v5324_v14 = vpop.eup %5323 }
0x118b   : > { %1305 = vrot.lane.b32.xlu1 %v5324_v14, %s5754_s30 }
0x11fd   : > { %v1306_v30 = vpop.permute.xlu1 %1305 }
0x11fe   : > { %v1308_v32 = vmul.f32 %v5322_v24, %v1306_v30 }
0x1200   : > { %1310 = vrot.lane.b32.xlu1 %v1308_v32, %s5754_s30 }
0x1272   : > { %v6270_v33 = vpop.permute.xlu1 %1310 }
0x1273   : > { %4546 = vmatmul.mubr.msk.f32.vlgmr.msra.gmra.mrb[6].mxu0 %vm666_vm1, %v6270_v33 }
0x1274   : > { %4556 = vmatprep.mubr.msk.f32.mxu0 %vm5752_vm0, %v5753_v1 }
0x1346   : > { %v1380_v34 = vpop.f32.mrb[6].mxu0 }
0x1347   : > { %v1387_v35 = vrot.slane %v1380_v34, %v6176_v40  ;;  %v4547_v37 = vpop.f32.mrb[7].mxu0 }
0x1348   : > { %v560_v37 = vld [vmem:[#allocation13] sm:$0xff] }
0x1349   : > { %v1388_v38 = vadd.f32 %v1387_v35, %v6179_v41 }
0x134b   : > { %5325 = vtanh.f32 %v1388_v38  ;;  %v561_v38 = vld [vmem:[#allocation13 + $0x8] sm:$0xff] }
0x1355   : > { %v5326_v42 = vpop.eup %5325 }
0x1356   : > { %v1390_v43 = vmul.f32 %v5326_v42, %v6183_v46  ;;  %v6287_v46 = vpack.c.bf16 %v542_v48, %v541_v10  ;;  %v562_v42 = vld [vmem:[#allocation13 + $0x10] sm:$0xff] }
0x1357   : > { %v553_v10 = vld [vmem:[#allocation10 + $0x10] sm:$0xff]  ;;  %v554_v48 = vld [vmem:[#allocation10 + $0x18] sm:$0xff] }
0x1358   : > { %v1391_v36 = vsel %vm666_vm1, %v1390_v43, 0.0  ;;  %4973 = vmatpush3.bf16.msra.mxu1 %v6287_v46  ;;  %v4960_v43 = vpack.c.bf16 %v561_v38, %v560_v37  ;;  %v6331_v50 = vpack.c.bf16 %v554_v48, %v553_v10 }
0x1359   : > { %1392 = vadd.xlane.f32.xlu1 %v1391_v36  ;;  %4974 = vmatprep.subr.bf16.mxu1 %v5751_v0  ;;  %v563_v36 = vld [vmem:[#allocation13 + $0x18] sm:$0xff] }
0x135a   : > { %4961 = vmatpush3.bf16.msra.mxu0 %v4960_v43  ;;  %v4963_v5 = vpack.c.bf16 %v563_v36, %v562_v42 }
0x135b   : > { %4962 = vmatprep.subr.bf16.mxu0 %v5751_v0 }
0x135c   : > { %4976 = vmatpush3.bf16.msra.mxu1 %v6291_v13 }
0x135d   : > { %4989 = vmatprep.subr.bf16.mxu1 %v5751_v0 }
0x135e   : > { %4964 = vmatpush3.bf16.msra.mxu0 %v4963_v5 }
0x135f   : > { %4977 = vmatprep.subr.bf16.mxu0 %v5751_v0 }
0x1361   : > { %4557 = vmatmul.mubr.msk.f32.vlgmr.msra.gmra.mrb[8].mxu0 %vm666_vm1, %v6179_v41 }
0x1362   : > { %4979 = vmatpush3.bf16.msra.mxu0 %v6324_v7  ;;  %4586 = vmatprep.mubr.msk.f32.mxu0 %vm5752_vm0, %v5753_v1 }
0x1363   : > { %4980 = vmatprep.subr.bf16.mxu0 %v5751_v0 }
0x1366   : > { %4982 = vmatpush3.bf16.msra.mxu0 %v6331_v50 }
0x1367   : > { %4983 = vmatprep.subr.bf16.mxu0 %v5751_v0 }
0x13e6   : > { %v1393_v51 = vpop.xlane.xlu1 %1392 }
0x13e7   : > { %v1394_v52 = vrot.slane %v1393_v51, 4 }
0x13e9   : > { %v1395_v53 = vmax.f32 %v1393_v51, %v1394_v52 }
0x13eb   : > { %v1396_v54 = vrot.slane %v1395_v53, 2 }
0x13ed   : > { %v1397_v55 = vmax.f32 %v1395_v53, %v1396_v54 }
0x13ef   : > { %v1398_v56 = vrot.slane %v1397_v55, 1 }
0x13f1   : > { %v1399_v57 = vmax.f32 %v1397_v55, %v1398_v56 }
0x13f3   : > { %v1400_v58 = vsub.f32 %v1393_v51, %v1399_v57 }
0x13f5   : > { %v1401_v59 = vmul.f32 1.442695, %v1400_v58 }
0x13f7   : > { %5327 = vpow2.f32 %v1401_v59 }
0x1401   : > { %v5328_v60 = vpop.eup %5327 }
0x1402   : > { %v1403_v61 = vrot.slane %v5328_v60, 4 }
0x1404   : > { %v1404_v62 = vadd.f32 %v5328_v60, %v1403_v61 }
0x1406   : > { %v1405_v63 = vrot.slane %v1404_v62, 2 }
0x1408   : > { %v1406_v2 = vadd.f32 %v1405_v63, %v1404_v62 }
0x140a   : > { %v1407_v3 = vrot.slane %v1406_v2, 1 }
0x140c   : > { %v1408_v4 = vadd.f32 %v1407_v3, %v1406_v2  ;;  %v556_v2 = vld [vmem:[%s6803_s14] sm:$0xff]  ;;  %v557_v3 = vld [vmem:[%s6803_s14 + $0x8] sm:$0xff] }
0x140e   : > { %5329 = vrcp.f32 %v1408_v4  ;;  %v558_v4 = vld [vmem:[%s6803_s14 + $0x10] sm:$0xff] }
0x1418   : > { %v5330_v6 = vpop.eup %5329 }
0x1419   : > { %v1410_v8 = vmul.f32 %v5330_v6, %v5328_v60  ;;  %v6346_v60 = vld [vmem:[#allocation12] ss:$0 sm:$0xff]  ;;  %v6359_v6 = vpack.c.bf16 %v557_v3, %v556_v2 }
0x141b   : > { %v1411_v9 = vmul.f32 %v1410_v8, %v6179_v41  ;;  %v559_v8 = vld [vmem:[%s6803_s14 + $0x18] sm:$0xff] }
0x141d   : > { %v1412_v11 = vsel %vm666_vm1, %v1411_v9, 0.0  ;;  %v6365_v9 = vpack.c.bf16 %v559_v8, %v558_v4 }
0x141e   : > { %v1413_v12 = vrot.slane %v1412_v11, 4 }
0x1420   : > { %v1414_v15 = vadd.f32 %v1413_v12, %v1412_v11 }
0x1422   : > { %v1415_v16 = vrot.slane %v1414_v15, 2 }
0x1424   : > { %v1416_v17 = vadd.f32 %v1415_v16, %v1414_v15 }
0x1426   : > { %v1417_v18 = vrot.slane %v1416_v17, 1 }
0x1428   : > { %v1418_v19 = vadd.f32 %v1417_v18, %v1416_v17 }
0x142a   : > { %1496 = vrot.lane.b32.xlu0 %v1418_v19, %s5756_s11 }
0x1434   : > { %v6339_v53 = vpop.f32.mrb[8].mxu0 }
0x1435   : > { %v4558_v54 = vpop.f32.mrb[9].mxu0 }
0x149c   : > { %v1497_v20 = vpop.permute.xlu0 %1496 }
0x149d   : > { %v1499_v21 = vsel %vm666_vm1, %v6270_v33, %v1497_v20 }
0x149e   : > { %4576 = vmatmul.mubr.msk.f32.vlgmr.msra.gmra.mrb[8].mxu1 %vm565_vm2, %v1499_v21 }
0x149f   : > { %4991 = vmatpush3.bf16.msra.mxu1 %v6280_v45  ;;  %4616 = vmatprep.mubr.msk.f32.mxu1 %vm5752_vm0, %v5753_v1 }
0x14a0   : > { %4992 = vmatprep.subr.bf16.mxu1 %v5751_v0 }
0x14a3   : > { %4994 = vmatpush3.bf16.msra.mxu1 %v6283_v47 }
0x14a4   : > { %4995 = vmatprep.subr.bf16.mxu1 %v5751_v0 }
0x14a7   : > { %4997 = vmatpush3.bf16.msra.mxu1 %v6287_v46 }
0x14a8   : > { %4998 = vmatprep.subr.bf16.mxu1 %v5751_v0 }
0x14ab   : > { %5000 = vmatpush3.bf16.msra.mxu1 %v6291_v13 }
0x14ac   : > { %5013 = vmatprep.subr.bf16.mxu1 %v5751_v0 }
0x1571   : > { %v1569_v23 = vpop.f32.mrb[8].mxu1 }
0x1572   : > { %v1570_v24 = vadd.f32 %v1569_v23, %v6315_v22  ;;  %v4577_v25 = vpop.f32.mrb[9].mxu1 }
0x1574   : > { %5331 = vtanh.f32 %v1570_v24  ;;  %v4180_v31 = vmul.f32 -1.442695, %v1570_v24 }
0x1576   : > { %5333 = vpow2.f32 %v4180_v31 }
0x157e   : > { %v5332_v26 = vpop.eup %5331 }
0x157f   : > { %1582 = vrot.lane.b32.xlu0 %v5332_v26, %s5754_s30 }
0x1580   : > { %v5334_v28 = vpop.eup %5333 }
0x1581   : > { %v1576_v29 = vadd.f32 1.0, %v5334_v28 }
0x1583   : > { %5335 = vrcp.f32 %v1576_v29 }
0x158d   : > { %v5336_v14 = vpop.eup %5335 }
0x158e   : > { %v1580_v33 = vmul.f32 0.0, %v5336_v14 }
0x15f1   : > { %v1583_v30 = vpop.permute.xlu0 %1582 }
0x15f2   : > { %v1585_v32 = vmul.f32 %v5336_v14, %v1583_v30 }
0x15f4   : > { %1587 = vrot.lane.b32.xlu0 %v1585_v32, %s5755_s26 }
0x1666   : > { %v1588_v34 = vpop.permute.xlu0 %1587 }
0x1667   : > { %v6320_v35 = vadd.f32 %v1588_v34, %v1580_v33 }
0x1669   : > { %5337 = vtanh.f32 %v6320_v35 }
0x1673   : > { %v5338_v49 = vpop.eup %5337 }
0x1674   : > { %1593 = vrot.lane.b32.xlu0 %v5338_v49, %s5754_s30 }
0x16e6   : > { %v1594_v51 = vpop.permute.xlu0 %1593 }
0x16e7   : > { %v1596_v52 = vmul.f32 %v5336_v14, %v1594_v51 }
0x16e9   : > { %1598 = vrot.lane.b32.xlu1 %v1596_v52, %s5754_s30 }
0x175b   : > { %v1599_v55 = vpop.permute.xlu1 %1598 }
0x175c   : > { %4587 = vmatmul.mubr.msk.f32.vlgmr.msra.gmra.mrb[10].mxu0 %vm666_vm1, %v1599_v55 }
0x175d   : > { %4597 = vmatprep.mubr.msk.f32.mxu0 %vm5752_vm0, %v5753_v1  ;;  %4985 = vmatpush3.bf16.msra.mxu0 %v6359_v6 }
0x175e   : > { %4986 = vmatprep.subr.bf16.mxu0 %v5751_v0 }
0x1761   : > { %4988 = vmatpush3.bf16.msra.mxu0 %v6365_v9 }
0x1762   : > { %5001 = vmatprep.subr.bf16.mxu0 %v5751_v0 }
0x182f   : > { %v1668_v56 = vpop.f32.mrb[10].mxu0 }
0x1830   : > { %v1675_v57 = vrot.slane %v1668_v56, %v6176_v40  ;;  %v4588_v58 = vpop.f32.mrb[11].mxu0 }
0x1832   : > { %v1676_v59 = vadd.f32 %v1675_v57, %v6179_v41 }
0x1834   : > { %5339 = vtanh.f32 %v1676_v59 }
0x183e   : > { %v5340_v61 = vpop.eup %5339 }
0x183f   : > { %v1684_v62 = vmul.f32 %v5340_v61, %v6346_v60 }
0x1841   : > { %v1685_v63 = vsel %vm666_vm1, %v1684_v62, 0.0 }
0x1842   : > { %1686 = vadd.xlane.f32.xlu0 %v1685_v63 }
0x18cf   : > { %v1687_v11 = vpop.xlane.xlu0 %1686 }
0x18d0   : > { %v1688_v12 = vrot.slane %v1687_v11, 4 }
0x18d2   : > { %v1689_v15 = vmax.f32 %v1687_v11, %v1688_v12 }
0x18d4   : > { %v1690_v16 = vrot.slane %v1689_v15, 2 }
0x18d6   : > { %v1691_v17 = vmax.f32 %v1689_v15, %v1690_v16 }
0x18d8   : > { %v1692_v18 = vrot.slane %v1691_v17, 1 }
0x18da   : > { %v1693_v19 = vmax.f32 %v1691_v17, %v1692_v18 }
0x18dc   : > { %v1694_v20 = vsub.f32 %v1687_v11, %v1693_v19 }
0x18de   : > { %v1695_v21 = vmul.f32 1.442695, %v1694_v20 }
0x18e0   : > { %5341 = vpow2.f32 %v1695_v21 }
0x18ea   : > { %v5342_v23 = vpop.eup %5341 }
0x18eb   : > { %v1697_v24 = vrot.slane %v5342_v23, 4 }
0x18ed   : > { %v1698_v25 = vadd.f32 %v5342_v23, %v1697_v24 }
0x18ef   : > { %v1699_v26 = vrot.slane %v1698_v25, 2 }
0x18f1   : > { %v1700_v31 = vadd.f32 %v1699_v26, %v1698_v25 }
0x18f3   : > { %v1701_v28 = vrot.slane %v1700_v31, 1 }
0x18f5   : > { %v1702_v29 = vadd.f32 %v1701_v28, %v1700_v31 }
0x18f7   : > { %5343 = vrcp.f32 %v1702_v29 }
0x1901   : > { %v5344_v14 = vpop.eup %5343 }
0x1902   : > { %v1704_v30 = vmul.f32 %v5344_v14, %v5342_v23 }
0x1904   : > { %v1705_v32 = vmul.f32 %v1704_v30, %v6179_v41 }
0x1906   : > { %v1706_v33 = vsel %vm666_vm1, %v1705_v32, 0.0 }
0x1907   : > { %v1707_v34 = vrot.slane %v1706_v33, 4 }
0x1909   : > { %v1708_v37 = vadd.f32 %v1707_v34, %v1706_v33 }
0x190b   : > { %v1709_v38 = vrot.slane %v1708_v37, 2 }
0x190d   : > { %v1710_v42 = vadd.f32 %v1709_v38, %v1708_v37 }
0x190f   : > { %v1711_v43 = vrot.slane %v1710_v42, 1 }
0x1911   : > { %v1712_v36 = vadd.f32 %v1711_v43, %v1710_v42 }
0x1913   : > { %1822 = vrot.lane.b32.xlu1 %v1712_v36, %s5756_s11  ;;  %4598 = vmatmul.mubr.msk.f32.vlgmr.msra.gmra.mrb[12].mxu0 %vm666_vm1, %v1712_v36 }
0x1914   : > { %5003 = vmatpush3.bf16.msra.mxu0 %v6324_v7  ;;  %4627 = vmatprep.mubr.msk.f32.mxu0 %vm5752_vm0, %v5753_v1 }
0x1915   : > { %5004 = vmatprep.subr.bf16.mxu0 %v5751_v0 }
0x1918   : > { %5006 = vmatpush3.bf16.msra.mxu0 %v6331_v50 }
0x1919   : > { %5007 = vmatprep.subr.bf16.mxu0 %v5751_v0 }
0x1985   : > { %v1823_v5 = vpop.permute.xlu1 %1822 }
0x1986   : > { %v1825_v27 = vsel %vm666_vm1, %v1599_v55, %v1823_v5 }
0x1987   : > { %4617 = vmatmul.mubr.msk.f32.vlgmr.msra.gmra.mrb[10].mxu1 %vm565_vm2, %v1825_v27 }
0x1988   : > { %5015 = vmatpush3.bf16.msra.mxu1 %v6280_v45  ;;  %4657 = vmatprep.mubr.msk.f32.mxu1 %vm5752_vm0, %v5753_v1 }
0x1989   : > { %5016 = vmatprep.subr.bf16.mxu1 %v5751_v0 }
0x198c   : > { %5018 = vmatpush3.bf16.msra.mxu1 %v6283_v47 }
0x198d   : > { %5019 = vmatprep.subr.bf16.mxu1 %v5751_v0 }
0x1990   : > { %5021 = vmatpush3.bf16.msra.mxu1 %v6287_v46 }
0x1991   : > { %5022 = vmatprep.subr.bf16.mxu1 %v5751_v0 }
0x1994   : > { %5024 = vmatpush3.bf16.msra.mxu1 %v6291_v13 }
0x1995   : > { %5037 = vmatprep.subr.bf16.mxu1 %v5751_v0 }
0x19e6   : > { %v1782_v44 = vpop.f32.mrb[12].mxu0 }
0x19e7   : > { %v1789_v10 = vrot.slane %v1782_v44, %v6176_v40  ;;  %v4599_v48 = vpop.f32.mrb[13].mxu0 }
0x19e9   : > { %v6394_v49 = vadd.f32 %v1789_v10, %v6339_v53 }
0x1a5a   : > { %v1895_v51 = vpop.f32.mrb[10].mxu1 }
0x1a5b   : > { %v1896_v52 = vadd.f32 %v1895_v51, %v6315_v22  ;;  %v4618_v54 = vpop.f32.mrb[11].mxu1 }
0x1a5d   : > { %5345 = vtanh.f32 %v1896_v52  ;;  %v4186_v56 = vmul.f32 -1.442695, %v1896_v52 }
0x1a5f   : > { %5347 = vpow2.f32 %v4186_v56 }
0x1a67   : > { %v5346_v55 = vpop.eup %5345 }
0x1a68   : > { %1908 = vrot.lane.b32.xlu1 %v5346_v55, %s5754_s30 }
0x1a69   : > { %v5348_v57 = vpop.eup %5347 }
0x1a6a   : > { %v1902_v58 = vadd.f32 1.0, %v5348_v57 }
0x1a6c   : > { %5349 = vrcp.f32 %v1902_v58 }
0x1a76   : > { %v5350_v59 = vpop.eup %5349 }
0x1a77   : > { %v1906_v63 = vmul.f32 %v5350_v59, %v6320_v35 }
0x1ada   : > { %v1909_v61 = vpop.permute.xlu1 %1908 }
0x1adb   : > { %v1911_v62 = vmul.f32 %v5350_v59, %v1909_v61 }
0x1add   : > { %1913 = vrot.lane.b32.xlu1 %v1911_v62, %s5755_s26 }
0x1b4f   : > { %v1914_v2 = vpop.permute.xlu1 %1913 }
0x1b50   : > { %v6400_v3 = vadd.f32 %v1914_v2, %v1906_v63 }
0x1b52   : > { %5351 = vtanh.f32 %v6400_v3 }
0x1b5c   : > { %v5352_v4 = vpop.eup %5351 }
0x1b5d   : > { %1919 = vrot.lane.b32.xlu1 %v5352_v4, %s5754_s30 }
0x1bcf   : > { %v1920_v8 = vpop.permute.xlu1 %1919 }
0x1bd0   : > { %v1922_v11 = vmul.f32 %v5350_v59, %v1920_v8 }
0x1bd2   : > { %1924 = vrot.lane.b32.xlu0 %v1922_v11, %s5754_s30 }
0x1c44   : > { %v1925_v12 = vpop.permute.xlu0 %1924 }
0x1c45   : > { %4628 = vmatmul.mubr.msk.f32.vlgmr.msra.gmra.mrb[14].mxu0 %vm666_vm1, %v1925_v12 }
0x1c46   : > { %5009 = vmatpush3.bf16.msra.mxu0 %v6359_v6  ;;  %4638 = vmatprep.mubr.msk.f32.mxu0 %vm5752_vm0, %v5753_v1 }
0x1c47   : > { %5010 = vmatprep.subr.bf16.mxu0 %v5751_v0 }
0x1c4a   : > { %5012 = vmatpush3.bf16.msra.mxu0 %v6365_v9 }
0x1c4b   : > { %5025 = vmatprep.subr.bf16.mxu0 %v5751_v0 }
0x1d18   : > { %v1994_v35 = vpop.f32.mrb[14].mxu0 }
0x1d19   : > { %v2001_v15 = vrot.slane %v1994_v35, %v6176_v40  ;;  %v4629_v16 = vpop.f32.mrb[15].mxu0 }
0x1d1b   : > { %v2002_v17 = vadd.f32 %v2001_v15, %v6179_v41 }
0x1d1d   : > { %5353 = vtanh.f32 %v2002_v17 }
0x1d27   : > { %v5354_v18 = vpop.eup %5353 }
0x1d28   : > { %v2004_v19 = vmul.f32 %v5354_v18, %v6346_v60 }
0x1d2a   : > { %v2005_v20 = vsel %vm666_vm1, %v2004_v19, 0.0 }
0x1d2b   : > { %2006 = vadd.xlane.f32.xlu1 %v2005_v20 }
0x1db8   : > { %v2007_v21 = vpop.xlane.xlu1 %2006 }
0x1db9   : > { %v2008_v23 = vrot.slane %v2007_v21, 4 }
0x1dbb   : > { %v2009_v24 = vmax.f32 %v2007_v21, %v2008_v23 }
0x1dbd   : > { %v2010_v25 = vrot.slane %v2009_v24, 2 }
0x1dbf   : > { %v2011_v26 = vmax.f32 %v2009_v24, %v2010_v25 }
0x1dc1   : > { %v2012_v31 = vrot.slane %v2011_v26, 1 }
0x1dc3   : > { %v2013_v28 = vmax.f32 %v2011_v26, %v2012_v31  ;;  %v6460_v26 = vld [vmem:[%s6090_s19] sm:$0xff] }
0x1dc5   : > { %v2014_v29 = vsub.f32 %v2007_v21, %v2013_v28 }
0x1dc7   : > { %v2015_v14 = vmul.f32 1.442695, %v2014_v29 }
0x1dc9   : > { %5355 = vpow2.f32 %v2015_v14 }
0x1dd3   : > { %v5356_v30 = vpop.eup %5355 }
0x1dd4   : > { %v2017_v32 = vrot.slane %v5356_v30, 4 }
0x1dd6   : > { %v2018_v33 = vadd.f32 %v5356_v30, %v2017_v32 }
0x1dd8   : > { %v2019_v34 = vrot.slane %v2018_v33, 2 }
0x1dda   : > { %v2020_v37 = vadd.f32 %v2019_v34, %v2018_v33 }
0x1ddc   : > { %v2021_v38 = vrot.slane %v2020_v37, 1 }
0x1dde   : > { %v2022_v42 = vadd.f32 %v2021_v38, %v2020_v37 }
0x1de0   : > { %5357 = vrcp.f32 %v2022_v42 }
0x1dea   : > { %v5358_v43 = vpop.eup %5357 }
0x1deb   : > { %v2024_v36 = vmul.f32 %v5358_v43, %v5356_v30 }
0x1ded   : > { %v2025_v5 = vmul.f32 %v2024_v36, %v6179_v41 }
0x1def   : > { %v2026_v27 = vsel %vm666_vm1, %v2025_v5, 0.0 }
0x1df0   : > { %v2027_v44 = vrot.slane %v2026_v27, 4 }
0x1df2   : > { %v2028_v10 = vadd.f32 %v2027_v44, %v2026_v27 }
0x1df4   : > { %v2029_v48 = vrot.slane %v2028_v10, 2 }
0x1df6   : > { %v2030_v51 = vadd.f32 %v2029_v48, %v2028_v10 }
0x1df8   : > { %v2031_v52 = vrot.slane %v2030_v51, 1 }
0x1dfa   : > { %v2032_v54 = vadd.f32 %v2031_v52, %v2030_v51 }
0x1dfc   : > { %2135 = vrot.lane.b32.xlu0 %v2032_v54, %s5756_s11  ;;  %4639 = vmatmul.mubr.msk.f32.vlgmr.msra.gmra.mrb[16].mxu0 %vm666_vm1, %v2032_v54 }
0x1dfd   : > { %5027 = vmatpush3.bf16.msra.mxu0 %v6324_v7  ;;  %4668 = vmatprep.mubr.msk.f32.mxu0 %vm5752_vm0, %v5753_v1 }
0x1dfe   : > { %5028 = vmatprep.subr.bf16.mxu0 %v5751_v0 }
0x1e01   : > { %5030 = vmatpush3.bf16.msra.mxu0 %v6331_v50 }
0x1e02   : > { %5031 = vmatprep.subr.bf16.mxu0 %v5751_v0 }
0x1e6e   : > { %v2136_v41 = vpop.permute.xlu0 %2135 }
0x1e6f   : > { %v2138_v55 = vsel %vm666_vm1, %v1925_v12, %v2136_v41 }
0x1e70   : > { %4658 = vmatmul.mubr.msk.f32.vlgmr.msra.gmra.mrb[12].mxu1 %vm565_vm2, %v2138_v55 }
0x1e71   : > { %5039 = vmatpush3.bf16.msra.mxu1 %v6280_v45  ;;  %4698 = vmatprep.mubr.msk.f32.mxu1 %vm5752_vm0, %v5753_v1 }
0x1e72   : > { %5040 = vmatprep.subr.bf16.mxu1 %v5751_v0 }
0x1e75   : > { %5042 = vmatpush3.bf16.msra.mxu1 %v6283_v47 }
0x1e76   : > { %5043 = vmatprep.subr.bf16.mxu1 %v5751_v0 }
0x1e79   : > { %5045 = vmatpush3.bf16.msra.mxu1 %v6287_v46 }
0x1e7a   : > { %5046 = vmatprep.subr.bf16.mxu1 %v5751_v0 }
0x1e7d   : > { %5048 = vmatpush3.bf16.msra.mxu1 %v6291_v13 }
0x1e7e   : > { %5061 = vmatprep.subr.bf16.mxu1 %v5751_v0 }
0x1ecf   : > { %v2102_v56 = vpop.f32.mrb[16].mxu0 }
0x1ed0   : > { %v2109_v57 = vrot.slane %v2102_v56, %v6176_v40  ;;  %v4640_v58 = vpop.f32.mrb[17].mxu0 }
0x1ed2   : > { %v6440_v59 = vadd.f32 %v2109_v57, %v6339_v53 }
0x1f43   : > { %v2208_v61 = vpop.f32.mrb[12].mxu1 }
0x1f44   : > { %v2209_v62 = vadd.f32 %v2208_v61, %v6315_v22  ;;  %v4659_v63 = vpop.f32.mrb[13].mxu1 }
0x1f46   : > { %5359 = vtanh.f32 %v2209_v62  ;;  %v4190_v4 = vmul.f32 -1.442695, %v2209_v62 }
0x1f48   : > { %5361 = vpow2.f32 %v4190_v4 }
0x1f50   : > { %v5360_v2 = vpop.eup %5359 }
0x1f51   : > { %2221 = vrot.lane.b32.xlu0 %v5360_v2, %s5754_s30 }
0x1f52   : > { %v5362_v8 = vpop.eup %5361 }
0x1f53   : > { %v2215_v11 = vadd.f32 1.0, %v5362_v8 }
0x1f55   : > { %5363 = vrcp.f32 %v2215_v11 }
0x1f5f   : > { %v5364_v12 = vpop.eup %5363 }
0x1f60   : > { %v2219_v16 = vmul.f32 %v5364_v12, %v6400_v3 }
0x1fc3   : > { %v2222_v35 = vpop.permute.xlu0 %2221 }
0x1fc4   : > { %v2224_v15 = vmul.f32 %v5364_v12, %v2222_v35 }
0x1fc6   : > { %2226 = vrot.lane.b32.xlu0 %v2224_v15, %s5755_s26 }
0x2038   : > { %v2227_v17 = vpop.permute.xlu0 %2226 }
0x2039   : > { %v6446_v18 = vadd.f32 %v2227_v17, %v2219_v16 }
0x203b   : > { %5365 = vtanh.f32 %v6446_v18 }
0x2045   : > { %v5366_v19 = vpop.eup %5365 }
0x2046   : > { %2232 = vrot.lane.b32.xlu0 %v5366_v19, %s5754_s30 }
0x20b8   : > { %v2233_v20 = vpop.permute.xlu0 %2232 }
0x20b9   : > { %v2235_v21 = vmul.f32 %v5364_v12, %v2233_v20 }
0x20bb   : > { %2237 = vrot.lane.b32.xlu1 %v2235_v21, %s5754_s30 }
0x212d   : > { %v2238_v23 = vpop.permute.xlu1 %2237 }
0x212e   : > { %4669 = vmatmul.mubr.msk.f32.vlgmr.msra.gmra.mrb[18].mxu0 %vm666_vm1, %v2238_v23 }
0x212f   : > { %5033 = vmatpush3.bf16.msra.mxu0 %v6359_v6  ;;  %4679 = vmatprep.mubr.msk.f32.mxu0 %vm5752_vm0, %v5753_v1 }
0x2130   : > { %5034 = vmatprep.subr.bf16.mxu0 %v5751_v0 }
0x2133   : > { %5036 = vmatpush3.bf16.msra.mxu0 %v6365_v9 }
0x2134   : > { %5049 = vmatprep.subr.bf16.mxu0 %v5751_v0 }
0x2201   : > { %v2307_v3 = vpop.f32.mrb[18].mxu0 }
0x2202   : > { %v2314_v24 = vrot.slane %v2307_v3, %v6176_v40  ;;  %v4670_v25 = vpop.f32.mrb[19].mxu0 }
0x2204   : > { %v2315_v31 = vadd.f32 %v6460_v26, %v2314_v24 }
0x2206   : > { %5367 = vtanh.f32 %v2315_v31 }
0x2210   : > { %v5368_v28 = vpop.eup %5367 }
0x2211   : > { %v2317_v29 = vmul.f32 %v5368_v28, %v6346_v60 }
0x2213   : > { %v2318_v14 = vsel %vm666_vm1, %v2317_v29, 0.0 }
0x2214   : > { %2319 = vadd.xlane.f32.xlu0 %v2318_v14 }
0x22a1   : > { %v2320_v30 = vpop.xlane.xlu0 %2319 }
0x22a2   : > { %v2321_v32 = vrot.slane %v2320_v30, 4 }
0x22a4   : > { %v2322_v33 = vmax.f32 %v2320_v30, %v2321_v32 }
0x22a6   : > { %v2323_v34 = vrot.slane %v2322_v33, 2 }
0x22a8   : > { %v2324_v37 = vmax.f32 %v2322_v33, %v2323_v34 }
0x22aa   : > { %v2325_v38 = vrot.slane %v2324_v37, 1 }
0x22ac   : > { %v2326_v42 = vmax.f32 %v2324_v37, %v2325_v38 }
0x22ae   : > { %v2327_v43 = vsub.f32 %v2320_v30, %v2326_v42 }
0x22b0   : > { %v2328_v36 = vmul.f32 1.442695, %v2327_v43 }
0x22b2   : > { %5369 = vpow2.f32 %v2328_v36 }
0x22bc   : > { %v5370_v5 = vpop.eup %5369 }
0x22bd   : > { %v2330_v27 = vrot.slane %v5370_v5, 4 }
0x22bf   : > { %v2331_v44 = vadd.f32 %v5370_v5, %v2330_v27 }
0x22c1   : > { %v2332_v10 = vrot.slane %v2331_v44, 2 }
0x22c3   : > { %v2333_v48 = vadd.f32 %v2332_v10, %v2331_v44 }
0x22c5   : > { %v2334_v51 = vrot.slane %v2333_v48, 1 }
0x22c7   : > { %v2335_v52 = vadd.f32 %v2334_v51, %v2333_v48 }
0x22c9   : > { %5371 = vrcp.f32 %v2335_v52 }
0x22d3   : > { %v5372_v54 = vpop.eup %5371 }
0x22d4   : > { %v2337_v41 = vmul.f32 %v5372_v54, %v5370_v5 }
0x22d6   : > { %v2338_v55 = vmul.f32 %v6460_v26, %v2337_v41 }
0x22d8   : > { %v2339_v56 = vsel %vm666_vm1, %v2338_v55, 0.0 }
0x22d9   : > { %v2340_v57 = vrot.slane %v2339_v56, 4 }
0x22db   : > { %v2341_v58 = vadd.f32 %v2340_v57, %v2339_v56 }
0x22dd   : > { %v2342_v61 = vrot.slane %v2341_v58, 2 }
0x22df   : > { %v2343_v62 = vadd.f32 %v2342_v61, %v2341_v58 }
0x22e1   : > { %v2344_v63 = vrot.slane %v2343_v62, 1 }
0x22e3   : > { %v2345_v2 = vadd.f32 %v2344_v63, %v2343_v62 }
0x22e5   : > { %2448 = vrot.lane.b32.xlu1 %v2345_v2, %s5756_s11  ;;  %4680 = vmatmul.mubr.msk.f32.vlgmr.msra.gmra.mrb[20].mxu0 %vm666_vm1, %v2345_v2 }
0x22e6   : > { %5051 = vmatpush3.bf16.msra.mxu0 %v6324_v7  ;;  %4709 = vmatprep.mubr.msk.f32.mxu0 %vm5752_vm0, %v5753_v1 }
0x22e7   : > { %5052 = vmatprep.subr.bf16.mxu0 %v5751_v0 }
0x22ea   : > { %5054 = vmatpush3.bf16.msra.mxu0 %v6331_v50 }
0x22eb   : > { %5055 = vmatprep.subr.bf16.mxu0 %v5751_v0 }
0x2357   : > { %v2449_v4 = vpop.permute.xlu1 %2448 }
0x2358   : > { %v2451_v8 = vsel %vm666_vm1, %v2238_v23, %v2449_v4 }
0x2359   : > { %4699 = vmatmul.mubr.msk.f32.vlgmr.msra.gmra.mrb[14].mxu1 %vm565_vm2, %v2451_v8 }
0x235a   : > { %5063 = vmatpush3.bf16.msra.mxu1 %v6280_v45  ;;  %4739 = vmatprep.mubr.msk.f32.mxu1 %vm5752_vm0, %v5753_v1 }
0x235b   : > { %5064 = vmatprep.subr.bf16.mxu1 %v5751_v0 }
0x235e   : > { %5066 = vmatpush3.bf16.msra.mxu1 %v6283_v47 }
0x235f   : > { %5067 = vmatprep.subr.bf16.mxu1 %v5751_v0 }
0x2362   : > { %5069 = vmatpush3.bf16.msra.mxu1 %v6287_v46 }
0x2363   : > { %5070 = vmatprep.subr.bf16.mxu1 %v5751_v0 }
0x2366   : > { %5072 = vmatpush3.bf16.msra.mxu1 %v6291_v13 }
0x2367   : > { %5085 = vmatprep.subr.bf16.mxu1 %v5751_v0 }
0x23b8   : > { %v2415_v11 = vpop.f32.mrb[20].mxu0 }
0x23b9   : > { %v2422_v12 = vrot.slane %v2415_v11, %v6176_v40  ;;  %v4681_v35 = vpop.f32.mrb[21].mxu0 }
0x23bb   : > { %v6489_v15 = vadd.f32 %v2422_v12, %v6339_v53 }
0x242c   : > { %v2521_v16 = vpop.f32.mrb[14].mxu1 }
0x242d   : > { %v2522_v17 = vadd.f32 %v2521_v16, %v6315_v22  ;;  %v4700_v19 = vpop.f32.mrb[15].mxu1 }
0x242f   : > { %5373 = vtanh.f32 %v2522_v17  ;;  %v4194_v21 = vmul.f32 -1.442695, %v2522_v17 }
0x2431   : > { %5375 = vpow2.f32 %v4194_v21 }
0x2439   : > { %v5374_v20 = vpop.eup %5373 }
0x243a   : > { %2534 = vrot.lane.b32.xlu1 %v5374_v20, %s5754_s30 }
0x243b   : > { %v5376_v23 = vpop.eup %5375 }
0x243c   : > { %v2528_v3 = vadd.f32 1.0, %v5376_v23 }
0x243e   : > { %5377 = vrcp.f32 %v2528_v3 }
0x2448   : > { %v5378_v24 = vpop.eup %5377 }
0x2449   : > { %v2532_v28 = vmul.f32 %v5378_v24, %v6446_v18 }
0x24ac   : > { %v2535_v25 = vpop.permute.xlu1 %2534 }
0x24ad   : > { %v2537_v31 = vmul.f32 %v5378_v24, %v2535_v25 }
0x24af   : > { %2539 = vrot.lane.b32.xlu1 %v2537_v31, %s5755_s26 }
0x2521   : > { %v2540_v29 = vpop.permute.xlu1 %2539 }
0x2522   : > { %v6495_v14 = vadd.f32 %v2540_v29, %v2532_v28 }
0x2524   : > { %5379 = vtanh.f32 %v6495_v14 }
0x252e   : > { %v5380_v30 = vpop.eup %5379 }
0x252f   : > { %2545 = vrot.lane.b32.xlu1 %v5380_v30, %s5754_s30 }
0x25a1   : > { %v2546_v32 = vpop.permute.xlu1 %2545 }
0x25a2   : > { %v2548_v33 = vmul.f32 %v5378_v24, %v2546_v32 }
0x25a4   : > { %2550 = vrot.lane.b32.xlu0 %v2548_v33, %s5754_s30 }
0x2616   : > { %v2551_v34 = vpop.permute.xlu0 %2550 }
0x2617   : > { %4710 = vmatmul.mubr.msk.f32.vlgmr.msra.gmra.mrb[22].mxu0 %vm666_vm1, %v2551_v34 }
0x2618   : > { %5057 = vmatpush3.bf16.msra.mxu0 %v6359_v6  ;;  %4720 = vmatprep.mubr.msk.f32.mxu0 %vm5752_vm0, %v5753_v1 }
0x2619   : > { %5058 = vmatprep.subr.bf16.mxu0 %v5751_v0 }
0x261c   : > { %5060 = vmatpush3.bf16.msra.mxu0 %v6365_v9 }
0x261d   : > { %5073 = vmatprep.subr.bf16.mxu0 %v5751_v0 }
0x26ea   : > { %v2620_v18 = vpop.f32.mrb[22].mxu0 }
0x26eb   : > { %v2627_v37 = vrot.slane %v2620_v18, %v6176_v40  ;;  %v4711_v38 = vpop.f32.mrb[23].mxu0 }
0x26ed   : > { %v2628_v42 = vadd.f32 %v6460_v26, %v2627_v37 }
0x26ef   : > { %5381 = vtanh.f32 %v2628_v42 }
0x26f9   : > { %v5382_v43 = vpop.eup %5381 }
0x26fa   : > { %v2630_v36 = vmul.f32 %v5382_v43, %v6346_v60 }
0x26fc   : > { %v2631_v5 = vsel %vm666_vm1, %v2630_v36, 0.0 }
0x26fd   : > { %2632 = vadd.xlane.f32.xlu1 %v2631_v5 }
0x278a   : > { %v2633_v27 = vpop.xlane.xlu1 %2632 }
0x278b   : > { %v2634_v44 = vrot.slane %v2633_v27, 4 }
0x278d   : > { %v2635_v10 = vmax.f32 %v2633_v27, %v2634_v44 }
0x278f   : > { %v2636_v48 = vrot.slane %v2635_v10, 2 }
0x2791   : > { %v2637_v51 = vmax.f32 %v2635_v10, %v2636_v48 }
0x2793   : > { %v2638_v52 = vrot.slane %v2637_v51, 1 }
0x2795   : > { %v2639_v54 = vmax.f32 %v2637_v51, %v2638_v52 }
0x2797   : > { %v2640_v41 = vsub.f32 %v2633_v27, %v2639_v54 }
0x2799   : > { %v2641_v55 = vmul.f32 1.442695, %v2640_v41 }
0x279b   : > { %5383 = vpow2.f32 %v2641_v55 }
0x27a5   : > { %v5384_v56 = vpop.eup %5383 }
0x27a6   : > { %v2643_v57 = vrot.slane %v5384_v56, 4 }
0x27a8   : > { %v2644_v58 = vadd.f32 %v5384_v56, %v2643_v57 }
0x27aa   : > { %v2645_v61 = vrot.slane %v2644_v58, 2 }
0x27ac   : > { %v2646_v62 = vadd.f32 %v2645_v61, %v2644_v58 }
0x27ae   : > { %v2647_v63 = vrot.slane %v2646_v62, 1 }
0x27b0   : > { %v2648_v2 = vadd.f32 %v2647_v63, %v2646_v62 }
0x27b2   : > { %5385 = vrcp.f32 %v2648_v2 }
0x27bc   : > { %v5386_v4 = vpop.eup %5385 }
0x27bd   : > { %v2650_v8 = vmul.f32 %v5386_v4, %v5384_v56 }
0x27bf   : > { %v2651_v11 = vmul.f32 %v6460_v26, %v2650_v8 }
0x27c1   : > { %v2652_v12 = vsel %vm666_vm1, %v2651_v11, 0.0 }
0x27c2   : > { %v2653_v35 = vrot.slane %v2652_v12, 4 }
0x27c4   : > { %v2654_v16 = vadd.f32 %v2653_v35, %v2652_v12 }
0x27c6   : > { %v2655_v17 = vrot.slane %v2654_v16, 2 }
0x27c8   : > { %v2656_v19 = vadd.f32 %v2655_v17, %v2654_v16 }
0x27ca   : > { %v2657_v20 = vrot.slane %v2656_v19, 1 }
0x27cc   : > { %v2658_v21 = vadd.f32 %v2657_v20, %v2656_v19 }
0x27ce   : > { %2761 = vrot.lane.b32.xlu0 %v2658_v21, %s5756_s11  ;;  %4721 = vmatmul.mubr.msk.f32.vlgmr.msra.gmra.mrb[24].mxu0 %vm666_vm1, %v2658_v21 }
0x27cf   : > { %5075 = vmatpush3.bf16.msra.mxu0 %v6324_v7  ;;  %4750 = vmatprep.mubr.msk.f32.mxu0 %vm5752_vm0, %v5753_v1 }
0x27d0   : > { %5076 = vmatprep.subr.bf16.mxu0 %v5751_v0 }
0x27d3   : > { %5078 = vmatpush3.bf16.msra.mxu0 %v6331_v50 }
0x27d4   : > { %5079 = vmatprep.subr.bf16.mxu0 %v5751_v0 }
0x2840   : > { %v2762_v23 = vpop.permute.xlu0 %2761 }
0x2841   : > { %v2764_v3 = vsel %vm666_vm1, %v2551_v34, %v2762_v23 }
0x2842   : > { %4740 = vmatmul.mubr.msk.f32.vlgmr.msra.gmra.mrb[16].mxu1 %vm565_vm2, %v2764_v3 }
0x2843   : > { %5087 = vmatpush3.bf16.msra.mxu1 %v6280_v45  ;;  %4780 = vmatprep.mubr.msk.f32.mxu1 %vm5752_vm0, %v5753_v1 }
0x2844   : > { %5088 = vmatprep.subr.bf16.mxu1 %v5751_v0 }
0x2847   : > { %5090 = vmatpush3.bf16.msra.mxu1 %v6283_v47 }
0x2848   : > { %5091 = vmatprep.subr.bf16.mxu1 %v5751_v0 }
0x284b   : > { %5093 = vmatpush3.bf16.msra.mxu1 %v6287_v46 }
0x284c   : > { %5094 = vmatprep.subr.bf16.mxu1 %v5751_v0 }
0x284f   : > { %5096 = vmatpush3.bf16.msra.mxu1 %v6291_v13 }
0x2850   : > { %5109 = vmatprep.subr.bf16.mxu1 %v5751_v0 }
0x28a1   : > { %v2728_v24 = vpop.f32.mrb[24].mxu0 }
0x28a2   : > { %v2735_v25 = vrot.slane %v2728_v24, %v6176_v40  ;;  %v4722_v31 = vpop.f32.mrb[25].mxu0 }
0x28a4   : > { %v6535_v28 = vadd.f32 %v2735_v25, %v6339_v53 }
0x2915   : > { %v2834_v29 = vpop.f32.mrb[16].mxu1 }
0x2916   : > { %v2835_v30 = vadd.f32 %v2834_v29, %v6315_v22  ;;  %v4741_v32 = vpop.f32.mrb[17].mxu1 }
0x2918   : > { %5387 = vtanh.f32 %v2835_v30  ;;  %v4198_v34 = vmul.f32 -1.442695, %v2835_v30 }
0x291a   : > { %5389 = vpow2.f32 %v4198_v34 }
0x2922   : > { %v5388_v33 = vpop.eup %5387 }
0x2923   : > { %2847 = vrot.lane.b32.xlu0 %v5388_v33, %s5754_s30 }
0x2924   : > { %v5390_v18 = vpop.eup %5389 }
0x2925   : > { %v2841_v37 = vadd.f32 1.0, %v5390_v18 }
0x2927   : > { %5391 = vrcp.f32 %v2841_v37 }
0x2931   : > { %v5392_v38 = vpop.eup %5391 }
0x2932   : > { %v2845_v36 = vmul.f32 %v5392_v38, %v6495_v14 }
0x2995   : > { %v2848_v42 = vpop.permute.xlu0 %2847 }
0x2996   : > { %v2850_v43 = vmul.f32 %v5392_v38, %v2848_v42 }
0x2998   : > { %2852 = vrot.lane.b32.xlu0 %v2850_v43, %s5755_s26 }
0x2a0a   : > { %v2853_v5 = vpop.permute.xlu0 %2852 }
0x2a0b   : > { %v6541_v27 = vadd.f32 %v2853_v5, %v2845_v36 }
0x2a0d   : > { %5393 = vtanh.f32 %v6541_v27 }
0x2a17   : > { %v5394_v44 = vpop.eup %5393 }
0x2a18   : > { %2858 = vrot.lane.b32.xlu0 %v5394_v44, %s5754_s30 }
0x2a8a   : > { %v2859_v10 = vpop.permute.xlu0 %2858 }
0x2a8b   : > { %v2861_v48 = vmul.f32 %v5392_v38, %v2859_v10 }
0x2a8d   : > { %2863 = vrot.lane.b32.xlu1 %v2861_v48, %s5754_s30 }
0x2aff   : > { %v2864_v51 = vpop.permute.xlu1 %2863 }
0x2b00   : > { %4751 = vmatmul.mubr.msk.f32.vlgmr.msra.gmra.mrb[26].mxu0 %vm666_vm1, %v2864_v51 }
0x2b01   : > { %5081 = vmatpush3.bf16.msra.mxu0 %v6359_v6  ;;  %4761 = vmatprep.mubr.msk.f32.mxu0 %vm5752_vm0, %v5753_v1 }
0x2b02   : > { %5082 = vmatprep.subr.bf16.mxu0 %v5751_v0 }
0x2b05   : > { %5084 = vmatpush3.bf16.msra.mxu0 %v6365_v9 }
0x2b06   : > { %5097 = vmatprep.subr.bf16.mxu0 %v5751_v0 }
0x2bd3   : > { %v2933_v14 = vpop.f32.mrb[26].mxu0 }
0x2bd4   : > { %v2940_v52 = vrot.slane %v2933_v14, %v6176_v40  ;;  %v4752_v54 = vpop.f32.mrb[27].mxu0 }
0x2bd6   : > { %v2941_v41 = vadd.f32 %v6460_v26, %v2940_v52 }
0x2bd8   : > { %5395 = vtanh.f32 %v2941_v41 }
0x2be2   : > { %v5396_v55 = vpop.eup %5395 }
0x2be3   : > { %v2943_v56 = vmul.f32 %v5396_v55, %v6346_v60 }
0x2be5   : > { %v2944_v57 = vsel %vm666_vm1, %v2943_v56, 0.0 }
0x2be6   : > { %2945 = vadd.xlane.f32.xlu0 %v2944_v57 }
0x2c73   : > { %v2946_v58 = vpop.xlane.xlu0 %2945 }
0x2c74   : > { %v2947_v61 = vrot.slane %v2946_v58, 4 }
0x2c76   : > { %v2948_v62 = vmax.f32 %v2946_v58, %v2947_v61 }
0x2c78   : > { %v2949_v63 = vrot.slane %v2948_v62, 2 }
0x2c7a   : > { %v2950_v2 = vmax.f32 %v2948_v62, %v2949_v63 }
0x2c7c   : > { %v2951_v4 = vrot.slane %v2950_v2, 1 }
0x2c7e   : > { %v2952_v8 = vmax.f32 %v2950_v2, %v2951_v4 }
0x2c80   : > { %v2953_v11 = vsub.f32 %v2946_v58, %v2952_v8 }
0x2c82   : > { %v2954_v12 = vmul.f32 1.442695, %v2953_v11 }
0x2c84   : > { %5397 = vpow2.f32 %v2954_v12 }
0x2c8e   : > { %v5398_v35 = vpop.eup %5397 }
0x2c8f   : > { %v2956_v16 = vrot.slane %v5398_v35, 4 }
0x2c91   : > { %v2957_v17 = vadd.f32 %v5398_v35, %v2956_v16 }
0x2c93   : > { %v2958_v19 = vrot.slane %v2957_v17, 2 }
0x2c95   : > { %v2959_v20 = vadd.f32 %v2958_v19, %v2957_v17 }
0x2c97   : > { %v2960_v21 = vrot.slane %v2959_v20, 1 }
0x2c99   : > { %v2961_v23 = vadd.f32 %v2960_v21, %v2959_v20 }
0x2c9b   : > { %5399 = vrcp.f32 %v2961_v23 }
0x2ca5   : > { %v5400_v3 = vpop.eup %5399 }
0x2ca6   : > { %v2963_v24 = vmul.f32 %v5400_v3, %v5398_v35 }
0x2ca8   : > { %v2964_v25 = vmul.f32 %v6460_v26, %v2963_v24 }
0x2caa   : > { %v2965_v31 = vsel %vm666_vm1, %v2964_v25, 0.0 }
0x2cab   : > { %v2966_v29 = vrot.slane %v2965_v31, 4 }
0x2cad   : > { %v2967_v30 = vadd.f32 %v2966_v29, %v2965_v31 }
0x2caf   : > { %v2968_v32 = vrot.slane %v2967_v30, 2 }
0x2cb1   : > { %v2969_v33 = vadd.f32 %v2968_v32, %v2967_v30 }
0x2cb3   : > { %v2970_v34 = vrot.slane %v2969_v33, 1 }
0x2cb5   : > { %v2971_v18 = vadd.f32 %v2970_v34, %v2969_v33 }
0x2cb7   : > { %3074 = vrot.lane.b32.xlu1 %v2971_v18, %s5756_s11  ;;  %4762 = vmatmul.mubr.msk.f32.vlgmr.msra.gmra.mrb[28].mxu0 %vm666_vm1, %v2971_v18 }
0x2cb8   : > { %5099 = vmatpush3.bf16.msra.mxu0 %v6324_v7  ;;  %4791 = vmatprep.mubr.msk.f32.mxu0 %vm5752_vm0, %v5753_v1 }
0x2cb9   : > { %5100 = vmatprep.subr.bf16.mxu0 %v5751_v0 }
0x2cbc   : > { %5102 = vmatpush3.bf16.msra.mxu0 %v6331_v50 }
0x2cbd   : > { %5103 = vmatprep.subr.bf16.mxu0 %v5751_v0 }
0x2d29   : > { %v3075_v37 = vpop.permute.xlu1 %3074 }
0x2d2a   : > { %v3077_v38 = vsel %vm666_vm1, %v2864_v51, %v3075_v37 }
0x2d2b   : > { %4781 = vmatmul.mubr.msk.f32.vlgmr.msra.gmra.mrb[18].mxu1 %vm565_vm2, %v3077_v38 }
0x2d2c   : > { %5111 = vmatpush3.bf16.msra.mxu1 %v6280_v45  ;;  %4821 = vmatprep.mubr.msk.f32.mxu1 %vm5752_vm0, %v5753_v1 }
0x2d2d   : > { %5112 = vmatprep.subr.bf16.mxu1 %v5751_v0 }
0x2d30   : > { %5114 = vmatpush3.bf16.msra.mxu1 %v6283_v47 }
0x2d31   : > { %5115 = vmatprep.subr.bf16.mxu1 %v5751_v0 }
0x2d34   : > { %5117 = vmatpush3.bf16.msra.mxu1 %v6287_v46 }
0x2d35   : > { %5118 = vmatprep.subr.bf16.mxu1 %v5751_v0 }
0x2d38   : > { %5120 = vmatpush3.bf16.msra.mxu1 %v6291_v13 }
0x2d39   : > { %5133 = vmatprep.subr.bf16.mxu1 %v5751_v0 }
0x2d8a   : > { %v3041_v42 = vpop.f32.mrb[28].mxu0 }
0x2d8b   : > { %v3048_v43 = vrot.slane %v3041_v42, %v6176_v40  ;;  %v4763_v36 = vpop.f32.mrb[29].mxu0 }
0x2d8d   : > { %v6581_v5 = vadd.f32 %v3048_v43, %v6339_v53 }
0x2dfe   : > { %v3147_v44 = vpop.f32.mrb[18].mxu1 }
0x2dff   : > { %v3148_v10 = vadd.f32 %v3147_v44, %v6315_v22  ;;  %v4782_v48 = vpop.f32.mrb[19].mxu1 }
0x2e01   : > { %5401 = vtanh.f32 %v3148_v10  ;;  %v4202_v14 = vmul.f32 -1.442695, %v3148_v10 }
0x2e03   : > { %5403 = vpow2.f32 %v4202_v14 }
0x2e0b   : > { %v5402_v51 = vpop.eup %5401 }
0x2e0c   : > { %3160 = vrot.lane.b32.xlu1 %v5402_v51, %s5754_s30 }
0x2e0d   : > { %v5404_v52 = vpop.eup %5403 }
0x2e0e   : > { %v3154_v54 = vadd.f32 1.0, %v5404_v52 }
0x2e10   : > { %5405 = vrcp.f32 %v3154_v54 }
0x2e1a   : > { %v5406_v41 = vpop.eup %5405 }
0x2e1b   : > { %v3158_v57 = vmul.f32 %v5406_v41, %v6541_v27 }
0x2e7e   : > { %v3161_v55 = vpop.permute.xlu1 %3160 }
0x2e7f   : > { %v3163_v56 = vmul.f32 %v5406_v41, %v3161_v55 }
0x2e81   : > { %3165 = vrot.lane.b32.xlu1 %v3163_v56, %s5755_s26 }
0x2ef3   : > { %v3166_v58 = vpop.permute.xlu1 %3165 }
0x2ef4   : > { %v6587_v61 = vadd.f32 %v3166_v58, %v3158_v57 }
0x2ef6   : > { %5407 = vtanh.f32 %v6587_v61 }
0x2f00   : > { %v5408_v22 = vpop.eup %5407 }
0x2f01   : > { %3171 = vrot.lane.b32.xlu1 %v5408_v22, %s5754_s30 }
0x2f73   : > { %v3172_v62 = vpop.permute.xlu1 %3171 }
0x2f74   : > { %v3174_v63 = vmul.f32 %v5406_v41, %v3172_v62 }
0x2f76   : > { %3176 = vrot.lane.b32.xlu0 %v3174_v63, %s5754_s30 }
0x2fe8   : > { %v3177_v2 = vpop.permute.xlu0 %3176 }
0x2fe9   : > { %4792 = vmatmul.mubr.msk.f32.vlgmr.msra.gmra.mrb[30].mxu0 %vm666_vm1, %v3177_v2 }
0x2fea   : > { %5105 = vmatpush3.bf16.msra.mxu0 %v6359_v6  ;;  %4802 = vmatprep.mubr.msk.f32.mxu0 %vm5752_vm0, %v5753_v1 }
0x2feb   : > { %5106 = vmatprep.subr.bf16.mxu0 %v5751_v0 }
0x2fee   : > { %5108 = vmatpush3.bf16.msra.mxu0 %v6365_v9 }
0x2fef   : > { %5121 = vmatprep.subr.bf16.mxu0 %v5751_v0 }
0x30bc   : > { %v3246_v27 = vpop.f32.mrb[30].mxu0 }
0x30bd   : > { %v3253_v4 = vrot.slane %v3246_v27, %v6176_v40  ;;  %v4793_v8 = vpop.f32.mrb[31].mxu0 }
0x30bf   : > { %v3254_v11 = vadd.f32 %v6460_v26, %v3253_v4 }
0x30c1   : > { %5409 = vtanh.f32 %v3254_v11 }
0x30cb   : > { %v5410_v12 = vpop.eup %5409 }
0x30cc   : > { %v3256_v35 = vmul.f32 %v5410_v12, %v6346_v60 }
0x30ce   : > { %v3257_v16 = vsel %vm666_vm1, %v3256_v35, 0.0 }
0x30cf   : > { %3258 = vadd.xlane.f32.xlu1 %v3257_v16 }
0x315c   : > { %v3259_v17 = vpop.xlane.xlu1 %3258 }
0x315d   : > { %v3260_v19 = vrot.slane %v3259_v17, 4 }
0x315f   : > { %v3261_v20 = vmax.f32 %v3259_v17, %v3260_v19 }
0x3161   : > { %v3262_v21 = vrot.slane %v3261_v20, 2 }
0x3163   : > { %v3263_v23 = vmax.f32 %v3261_v20, %v3262_v21 }
0x3165   : > { %v3264_v3 = vrot.slane %v3263_v23, 1 }
0x3167   : > { %v3265_v24 = vmax.f32 %v3263_v23, %v3264_v3 }
0x3169   : > { %v3266_v25 = vsub.f32 %v3259_v17, %v3265_v24  ;;  %v6651_v24 = vld [vmem:[#allocation12] ss:$0 sm:$0xff] }
0x316b   : > { %v3267_v31 = vmul.f32 1.442695, %v3266_v25 }
0x316d   : > { %5411 = vpow2.f32 %v3267_v31 }
0x3177   : > { %v5412_v29 = vpop.eup %5411 }
0x3178   : > { %v3269_v30 = vrot.slane %v5412_v29, 4 }
0x317a   : > { %v3270_v32 = vadd.f32 %v5412_v29, %v3269_v30 }
0x317c   : > { %v3271_v33 = vrot.slane %v3270_v32, 2 }
0x317e   : > { %v3272_v34 = vadd.f32 %v3271_v33, %v3270_v32 }
0x3180   : > { %v3273_v18 = vrot.slane %v3272_v34, 1 }
0x3182   : > { %v3274_v60 = vadd.f32 %v3273_v18, %v3272_v34 }
0x3184   : > { %5413 = vrcp.f32 %v3274_v60 }
0x318e   : > { %v5414_v37 = vpop.eup %5413 }
0x318f   : > { %v3276_v38 = vmul.f32 %v5414_v37, %v5412_v29 }
0x3191   : > { %v3277_v42 = vmul.f32 %v6460_v26, %v3276_v38 }
0x3193   : > { %v3278_v43 = vsel %vm666_vm1, %v3277_v42, 0.0 }
0x3194   : > { %v3279_v36 = vrot.slane %v3278_v43, 4 }
0x3196   : > { %v3280_v44 = vadd.f32 %v3279_v36, %v3278_v43 }
0x3198   : > { %v3281_v10 = vrot.slane %v3280_v44, 2 }
0x319a   : > { %v3282_v48 = vadd.f32 %v3281_v10, %v3280_v44 }
0x319c   : > { %v3283_v51 = vrot.slane %v3282_v48, 1 }
0x319e   : > { %v3284_v14 = vadd.f32 %v3283_v51, %v3282_v48 }
0x31a0   : > { %3387 = vrot.lane.b32.xlu0 %v3284_v14, %s5756_s11  ;;  %4803 = vmatmul.mubr.msk.f32.vlgmr.msra.gmra.mrb[32].mxu0 %vm666_vm1, %v3284_v14 }
0x31a1   : > { %5123 = vmatpush3.bf16.msra.mxu0 %v6324_v7  ;;  %4832 = vmatprep.mubr.msk.f32.mxu0 %vm5752_vm0, %v5753_v1 }
0x31a2   : > { %5124 = vmatprep.subr.bf16.mxu0 %v5751_v0 }
0x31a5   : > { %5126 = vmatpush3.bf16.msra.mxu0 %v6331_v50 }
0x31a6   : > { %5127 = vmatprep.subr.bf16.mxu0 %v5751_v0 }
0x3212   : > { %v3388_v52 = vpop.permute.xlu0 %3387 }
0x3213   : > { %v3390_v54 = vsel %vm666_vm1, %v3177_v2, %v3388_v52 }
0x3214   : > { %4822 = vmatmul.mubr.msk.f32.vlgmr.msra.gmra.mrb[20].mxu1 %vm565_vm2, %v3390_v54 }
0x3215   : > { %5135 = vmatpush3.bf16.msra.mxu1 %v6280_v45  ;;  %4862 = vmatprep.mubr.msk.f32.mxu1 %vm5752_vm0, %v5753_v1 }
0x3216   : > { %5136 = vmatprep.subr.bf16.mxu1 %v5751_v0 }
0x3219   : > { %5138 = vmatpush3.bf16.msra.mxu1 %v6283_v47  ;;  %v6631_v47 = vld [vmem:[%s6802_s1] sm:$0x1] }
0x321a   : > { %5139 = vmatprep.subr.bf16.mxu1 %v5751_v0 }
0x321d   : > { %5141 = vmatpush3.bf16.msra.mxu1 %v6287_v46 }
0x321e   : > { %5142 = vmatprep.subr.bf16.mxu1 %v5751_v0 }
0x3221   : > { %5144 = vmatpush3.bf16.msra.mxu1 %v6291_v13 }
0x3273   : > { %v3354_v41 = vpop.f32.mrb[32].mxu0 }
0x3274   : > { %v3361_v55 = vrot.slane %v3354_v41, %v6176_v40  ;;  %v4804_v56 = vpop.f32.mrb[33].mxu0 }
0x3276   : > { %v6626_v45 = vadd.f32 %v3361_v55, %v6339_v53 }
0x32e7   : > { %v3460_v57 = vpop.f32.mrb[20].mxu1 }
0x32e8   : > { %v3461_v58 = vadd.f32 %v6631_v47, %v3460_v57  ;;  %v4823_v46 = vpop.f32.mrb[21].mxu1 }
0x32ea   : > { %5415 = vtanh.f32 %v3461_v58  ;;  %v4206_v13 = vmul.f32 -1.442695, %v3461_v58 }
0x32ec   : > { %5417 = vpow2.f32 %v4206_v13 }
0x32f4   : > { %v5416_v22 = vpop.eup %5415 }
0x32f5   : > { %3473 = vrot.lane.b32.xlu0 %v5416_v22, %s5754_s30 }
0x32f6   : > { %v5418_v62 = vpop.eup %5417 }
0x32f7   : > { %v3467_v63 = vadd.f32 1.0, %v5418_v62 }
0x32f9   : > { %5419 = vrcp.f32 %v3467_v63 }
0x3303   : > { %v5420_v2 = vpop.eup %5419 }
0x3304   : > { %v3471_v8 = vmul.f32 %v5420_v2, %v6587_v61 }
0x3367   : > { %v3474_v27 = vpop.permute.xlu0 %3473 }
0x3368   : > { %v3476_v4 = vmul.f32 %v5420_v2, %v3474_v27 }
0x336a   : > { %3478 = vrot.lane.b32.xlu0 %v3476_v4, %s5755_s26 }
0x33dc   : > { %v3479_v11 = vpop.permute.xlu0 %3478 }
0x33dd   : > { %v6637_v12 = vadd.f32 %v3479_v11, %v3471_v8 }
0x33df   : > { %5421 = vtanh.f32 %v6637_v12 }
0x33e9   : > { %v5422_v35 = vpop.eup %5421 }
0x33ea   : > { %3484 = vrot.lane.b32.xlu0 %v5422_v35, %s5754_s30 }
0x345c   : > { %v3485_v16 = vpop.permute.xlu0 %3484 }
0x345d   : > { %v3487_v17 = vmul.f32 %v5420_v2, %v3485_v16 }
0x345f   : > { %3489 = vrot.lane.b32.xlu1 %v3487_v17, %s5754_s30 }
0x34d1   : > { %v3490_v19 = vpop.permute.xlu1 %3489 }
0x34d2   : > { %4833 = vmatmul.mubr.msk.f32.vlgmr.msra.gmra.mrb[34].mxu0 %vm666_vm1, %v3490_v19 }
0x34d3   : > { %5129 = vmatpush3.bf16.msra.mxu0 %v6359_v6  ;;  %4843 = vmatprep.mubr.msk.f32.mxu0 %vm5752_vm0, %v5753_v1 }
0x34d4   : > { %5130 = vmatprep.subr.bf16.mxu0 %v5751_v0 }
0x34d7   : > { %5132 = vmatpush3.bf16.msra.mxu0 %v6365_v9 }
0x34d8   : > { %5145 = vmatprep.subr.bf16.mxu0 %v5751_v0 }
0x35a5   : > { %v3559_v61 = vpop.f32.mrb[34].mxu0 }
0x35a6   : > { %v3566_v20 = vrot.slane %v3559_v61, %v6176_v40  ;;  %v4834_v21 = vpop.f32.mrb[35].mxu0 }
0x35a8   : > { %v3567_v23 = vadd.f32 %v6460_v26, %v3566_v20 }
0x35aa   : > { %5423 = vtanh.f32 %v3567_v23 }
0x35b4   : > { %v5424_v3 = vpop.eup %5423 }
0x35b5   : > { %v3569_v25 = vmul.f32 %v6651_v24, %v5424_v3 }
0x35b7   : > { %v3570_v31 = vsel %vm666_vm1, %v3569_v25, 0.0 }
0x35b8   : > { %3571 = vadd.xlane.f32.xlu0 %v3570_v31 }
0x3645   : > { %v3572_v29 = vpop.xlane.xlu0 %3571 }
0x3646   : > { %v3573_v30 = vrot.slane %v3572_v29, 4 }
0x3648   : > { %v3574_v32 = vmax.f32 %v3572_v29, %v3573_v30 }
0x364a   : > { %v3575_v33 = vrot.slane %v3574_v32, 2 }
0x364c   : > { %v3576_v34 = vmax.f32 %v3574_v32, %v3575_v33 }
0x364e   : > { %v3577_v18 = vrot.slane %v3576_v34, 1 }
0x3650   : > { %v3578_v60 = vmax.f32 %v3576_v34, %v3577_v18 }
0x3652   : > { %v3579_v37 = vsub.f32 %v3572_v29, %v3578_v60 }
0x3654   : > { %v3580_v38 = vmul.f32 1.442695, %v3579_v37 }
0x3656   : > { %5425 = vpow2.f32 %v3580_v38 }
0x3660   : > { %v5426_v42 = vpop.eup %5425 }
0x3661   : > { %v3582_v43 = vrot.slane %v5426_v42, 4 }
0x3663   : > { %v3583_v36 = vadd.f32 %v5426_v42, %v3582_v43 }
0x3665   : > { %v3584_v44 = vrot.slane %v3583_v36, 2 }
0x3667   : > { %v3585_v10 = vadd.f32 %v3584_v44, %v3583_v36 }
0x3669   : > { %v3586_v48 = vrot.slane %v3585_v10, 1 }
0x366b   : > { %v3587_v51 = vadd.f32 %v3586_v48, %v3585_v10 }
0x366d   : > { %5427 = vrcp.f32 %v3587_v51 }
0x3677   : > { %v5428_v14 = vpop.eup %5427 }
0x3678   : > { %v3589_v52 = vmul.f32 %v5428_v14, %v5426_v42 }
0x367a   : > { %v3590_v54 = vmul.f32 %v6460_v26, %v3589_v52 }
0x367c   : > { %v3591_v41 = vsel %vm666_vm1, %v3590_v54, 0.0 }
0x367d   : > { %v3592_v55 = vrot.slane %v3591_v41, 4 }
0x367f   : > { %v3593_v56 = vadd.f32 %v3592_v55, %v3591_v41 }
0x3681   : > { %v3594_v57 = vrot.slane %v3593_v56, 2 }
0x3683   : > { %v3595_v58 = vadd.f32 %v3594_v57, %v3593_v56 }
0x3685   : > { %v3596_v46 = vrot.slane %v3595_v58, 1 }
0x3687   : > { %v3597_v22 = vadd.f32 %v3596_v46, %v3595_v58 }
0x3689   : > { %3700 = vrot.lane.b32.xlu1 %v3597_v22, %s5756_s11  ;;  %4844 = vmatmul.mubr.msk.f32.vlgmr.msra.gmra.mrb[36].mxu0 %vm666_vm1, %v3597_v22 }
0x368a   : > { %5147 = vmatpush3.bf16.msra.mxu0 %v6324_v7  ;;  %4873 = vmatprep.mubr.msk.f32.mxu0 %vm5752_vm0, %v5753_v1 }
0x368b   : > { %5148 = vmatprep.subr.bf16.mxu0 %v5751_v0 }
0x368e   : > { %5150 = vmatpush3.bf16.msra.mxu0 %v6331_v50 }
0x368f   : > { %5151 = vmatprep.subr.bf16.mxu0 %v5751_v0 }
0x36fb   : > { %v3701_v13 = vpop.permute.xlu1 %3700 }
0x36fc   : > { %v3703_v62 = vsel %vm666_vm1, %v3490_v19, %v3701_v13 }
0x36fd   : > { %4863 = vmatmul.mubr.msk.f32.vlgmr.msra.gmra.mrb[22].mxu1 %vm565_vm2, %v3703_v62 }
0x375c   : > { %v3667_v63 = vpop.f32.mrb[36].mxu0 }
0x375d   : > { %v3674_v2 = vrot.slane %v3667_v63, %v6176_v40  ;;  %v4845_v27 = vpop.f32.mrb[37].mxu0 }
0x375f   : > { %v6669_v7 = vadd.f32 %v3674_v2, %v6339_v53 }
0x37d0   : > { %v3773_v4 = vpop.f32.mrb[22].mxu1 }
0x37d1   : > { %v3774_v8 = vadd.f32 %v6631_v47, %v3773_v4  ;;  %v4864_v11 = vpop.f32.mrb[23].mxu1 }
0x37d3   : > { %5429 = vtanh.f32 %v3774_v8  ;;  %v4210_v35 = vmul.f32 -1.442695, %v3774_v8 }
0x37d5   : > { %5431 = vpow2.f32 %v4210_v35 }
0x37dd   : > { %v5430_v50 = vpop.eup %5429 }
0x37de   : > { %3786 = vrot.lane.b32.xlu1 %v5430_v50, %s5754_s30 }
0x37df   : > { %v5432_v16 = vpop.eup %5431 }
0x37e0   : > { %v3780_v17 = vadd.f32 1.0, %v5432_v16 }
0x37e2   : > { %5433 = vrcp.f32 %v3780_v17 }
0x37ec   : > { %v5434_v19 = vpop.eup %5433 }
0x37ed   : > { %v3784_v21 = vmul.f32 %v5434_v19, %v6637_v12 }
0x3850   : > { %v3787_v61 = vpop.permute.xlu1 %3786 }
0x3851   : > { %v3789_v20 = vmul.f32 %v5434_v19, %v3787_v61 }
0x3853   : > { %3791 = vrot.lane.b32.xlu1 %v3789_v20, %s5755_s26  ;;  %s6804_s26 = sld [smem:[#allocation23_spill]] }
0x3859   : > { %v6682_v30 = vld [vmem:[%s6804_s26] ss:$0 sm:$0xff] }
0x38c5   : > { %v3792_v23 = vpop.permute.xlu1 %3791 }
0x38c6   : > { %v3794_v3 = vadd.f32 %v3792_v23, %v3784_v21 }
0x38c8   : > { %5435 = vtanh.f32 %v3794_v3 }
0x38c9   : > { %5437 = vtanh.f32 %v6394_v49 }
0x38ca   : > { %5439 = vtanh.f32 %v6626_v45 }
0x38cb   : > { %5441 = vtanh.f32 %v6440_v59 }
0x38d2   : > { %v5436_v47 = vpop.eup %5435 }
0x38d3   : > { %3797 = vrot.lane.b32.xlu1 %v5436_v47, %s5754_s30  ;;  %v5438_v29 = vpop.eup %5437 }
0x38d4   : > { %v1798_v12 = vmul.f32 %v5438_v29, %v6682_v30  ;;  %v5440_v32 = vpop.eup %5439 }
0x38d5   : > { %v3364_v34 = vmul.f32 %v5440_v32, %v6682_v30  ;;  %v5442_v11 = vpop.eup %5441 }
0x38d6   : > { %v1799_v33 = vsel %vm666_vm1, %v1798_v12, 0.0  ;;  %v2112_v17 = vmul.f32 %v5442_v11, %v6682_v30 }
0x38d7   : > { %v3365_v18 = vsel %vm666_vm1, %v3364_v34, 0.0 }
0x38d8   : > { %v2113_v59 = vsel %vm666_vm1, %v2112_v17, 0.0 }
0x3945   : > { %v3798_v25 = vpop.permute.xlu1 %3797 }
0x3946   : > { %v3800_v31 = vmul.f32 %v5434_v19, %v3798_v25 }
0x3948   : > { %3802 = vrot.lane.b32.xlu0 %v3800_v31, %s5754_s30  ;;  %s4165_s30 = sshll.u32 %s6811_s27, 3 }
0x3949   : > { %s6701_s17 = scalar_lea.vmem %s6805_s4, %s4165_s30 }
0x3967   : > { %1800 = vadd.xlane.f32.xlu0 %v1799_v33 }
0x396b   : > { %3366 = vadd.xlane.f32.xlu0 %v3365_v18 }
0x39ba   : > { %v3803_v49 = vpop.permute.xlu0 %3802 }
0x39bb   : > { %4874 = vmatmul.mubr.msk.f32.vlgmr.msra.gmra.mrb[38].mxu0 %vm666_vm1, %v3803_v49 }
0x39bc   : > { %5153 = vmatpush3.bf16.msra.mxu0 %v6359_v6  ;;  %4884 = vmatprep.mubr.msk.f32.mxu0 %vm5752_vm0, %v5753_v1 }
0x39bd   : > { %5154 = vmatprep.subr.bf16.mxu0 %v5751_v0 }
0x39c0   : > { %5156 = vmatpush3.bf16.msra.mxu0 %v6365_v9 }
0x39f4   : > { %v1801_v45 = vpop.xlane.xlu0 %1800 }
0x39f5   : > { %v1802_v60 = vrot.slane %v1801_v45, 4 }
0x39f7   : > { %v1803_v37 = vmax.f32 %v1801_v45, %v1802_v60 }
0x39f8   : > { %v3367_v38 = vpop.xlane.xlu0 %3366 }
0x39f9   : > { %v1804_v42 = vrot.slane %v1803_v37, 2  ;;  %v3368_v43 = vrot.slane %v3367_v38, 4 }
0x39fb   : > { %v1805_v36 = vmax.f32 %v1803_v37, %v1804_v42  ;;  %v3369_v44 = vmax.f32 %v3367_v38, %v3368_v43 }
0x39fd   : > { %v1806_v10 = vrot.slane %v1805_v36, 1  ;;  %v3370_v48 = vrot.slane %v3369_v44, 2 }
0x39ff   : > { %v1807_v6 = vmax.f32 %v1805_v36, %v1806_v10  ;;  %v3371_v51 = vmax.f32 %v3369_v44, %v3370_v48 }
0x3a01   : > { %vm1808_vm3 = vcmp.ge.f32.partialorder %v1801_v45, %v1807_v6  ;;  %v3372_v1 = vrot.slane %v3371_v51, 1 }
0x3a02   : > { %v1809_v0 = vsel %vm1808_vm3, %v6173_v39, 8 }
0x3a03   : > { %v1810_v14 = vrot.slane %v1809_v0, 4  ;;  %v3373_v9 = vmax.f32 %v3371_v51, %v3372_v1 }
0x3a05   : > { %vm1811_vm4 = vcmp.lt.s32.totalorder %v1809_v0, %v1810_v14  ;;  %vm3374_vm5 = vcmp.ge.f32.partialorder %v3367_v38, %v3373_v9 }
0x3a06   : > { %v1812_v52 = vsel %vm1811_vm4, %v1809_v0, %v1810_v14  ;;  %v3375_v54 = vsel %vm3374_vm5, %v6173_v39, 8 }
0x3a07   : > { %v1813_v41 = vrot.slane %v1812_v52, 2  ;;  %v3376_v55 = vrot.slane %v3375_v54, 4 }
0x3a09   : > { %vm1814_vm6 = vcmp.lt.s32.totalorder %v1812_v52, %v1813_v41  ;;  %vm3377_vm7 = vcmp.lt.s32.totalorder %v3375_v54, %v3376_v55 }
0x3a0a   : > { %v1815_v56 = vsel %vm1814_vm6, %v1812_v52, %v1813_v41  ;;  %v3378_v57 = vsel %vm3377_vm7, %v3375_v54, %v3376_v55 }
0x3a0b   : > { %v1816_v58 = vrot.slane %v1815_v56, 1  ;;  %v3379_v46 = vrot.slane %v3378_v57, 2 }
0x3a0d   : > { %vm1817_vm9 = vcmp.lt.s32.totalorder %v1815_v56, %v1816_v58  ;;  %vm3380_vm10 = vcmp.lt.s32.totalorder %v3378_v57, %v3379_v46 }
0x3a0e   : > { %v1818_v22 = vsel %vm1817_vm9, %v1815_v56, %v1816_v58  ;;  %v3381_v13 = vsel %vm3380_vm10, %v3378_v57, %v3379_v46 }
0x3a0f   : > { %1820 = vst.msk [vmem:[%s6701_s17] sm:$0x1] %vm1819_vm8, %v1818_v22  ;;  %v3382_v62 = vrot.slane %v3381_v13, 1 }
0x3a11   : > { %vm3383_vm11 = vcmp.lt.s32.totalorder %v3381_v13, %v3382_v62 }
0x3a12   : > { %v3384_v63 = vsel %vm3383_vm11, %v3381_v13, %v3382_v62 }
0x3a13   : > { %3385 = vst.msk [vmem:[%s6701_s17 + $0x5] sm:$0x1] %vm1819_vm8, %v3384_v63 }
0x3a8e   : > { %v3872_v2 = vpop.f32.mrb[38].mxu0 }
0x3a8f   : > { %v3879_v27 = vrot.slane %v3872_v2, %v6176_v40  ;;  %v4875_v4 = vpop.f32.mrb[39].mxu0 }
0x3a91   : > { %v3880_v8 = vadd.f32 %v6460_v26, %v3879_v27 }
0x3a93   : > { %5443 = vtanh.f32 %v3880_v8 }
0x3a94   : > { %5445 = vtanh.f32 %v6489_v15 }
0x3a95   : > { %5447 = vtanh.f32 %v6535_v28 }
0x3a96   : > { %5449 = vtanh.f32 %v6581_v5 }
0x3a97   : > { %5451 = vtanh.f32 %v6669_v7 }
0x3a9d   : > { %v5444_v50 = vpop.eup %5443 }
0x3a9e   : > { %v3882_v35 = vmul.f32 %v6651_v24, %v5444_v50  ;;  %v5446_v19 = vpop.eup %5445 }
0x3a9f   : > { %v2425_v26 = vmul.f32 %v5446_v19, %v6682_v30  ;;  %v5448_v15 = vpop.eup %5447 }
0x3aa0   : > { %v3883_v16 = vsel %vm666_vm1, %v3882_v35, 0.0  ;;  %v2738_v24 = vmul.f32 %v5448_v15, %v6682_v30  ;;  %v5450_v61 = vpop.eup %5449 }
0x3aa1   : > { %3884 = vadd.xlane.f32.xlu1 %v3883_v16  ;;  %v2426_v28 = vsel %vm666_vm1, %v2425_v26, 0.0  ;;  %v3051_v20 = vmul.f32 %v5450_v61, %v6682_v30  ;;  %v5452_v21 = vpop.eup %5451 }
0x3aa2   : > { %v2739_v5 = vsel %vm666_vm1, %v2738_v24, 0.0  ;;  %v3677_v23 = vmul.f32 %v5452_v21, %v6682_v30 }
0x3aa3   : > { %v3052_v7 = vsel %vm666_vm1, %v3051_v20, 0.0 }
0x3aa4   : > { %v3678_v3 = vsel %vm666_vm1, %v3677_v23, 0.0 }
0x3aa5   : > { %2114 = vadd.xlane.f32.xlu1 %v2113_v59 }
0x3aa9   : > { %2427 = vadd.xlane.f32.xlu1 %v2426_v28 }
0x3aad   : > { %2740 = vadd.xlane.f32.xlu1 %v2739_v5 }
0x3ab1   : > { %3053 = vadd.xlane.f32.xlu1 %v3052_v7 }
0x3ab5   : > { %3679 = vadd.xlane.f32.xlu1 %v3678_v3 }
0x3b2e   : > { %v3885_v47 = vpop.xlane.xlu1 %3884 }
0x3b2f   : > { %v3886_v25 = vrot.slane %v3885_v47, 4 }
0x3b31   : > { %v3887_v31 = vmax.f32 %v3885_v47, %v3886_v25 }
0x3b32   : > { %v2115_v29 = vpop.xlane.xlu1 %2114 }
0x3b33   : > { %v3888_v12 = vrot.slane %v3887_v31, 2  ;;  %v2116_v32 = vrot.slane %v2115_v29, 4 }
0x3b35   : > { %v3889_v33 = vmax.f32 %v3887_v31, %v3888_v12  ;;  %v2117_v34 = vmax.f32 %v2115_v29, %v2116_v32 }
0x3b36   : > { %v2428_v18 = vpop.xlane.xlu1 %2427 }
0x3b37   : > { %v3890_v49 = vrot.slane %v3889_v33, 1  ;;  %v2118_v45 = vrot.slane %v2117_v34, 2  ;;  %v2429_v60 = vrot.slane %v2428_v18, 4 }
0x3b39   : > { %v3891_v37 = vmax.f32 %v3889_v33, %v3890_v49  ;;  %v2119_v38 = vmax.f32 %v2117_v34, %v2118_v45  ;;  %v2430_v42 = vmax.f32 %v2428_v18, %v2429_v60 }
0x3b3a   : > { %v2741_v43 = vpop.xlane.xlu1 %2740 }
0x3b3b   : > { %v3892_v36 = vsub.f32 %v3885_v47, %v3891_v37  ;;  %v2120_v44 = vrot.slane %v2119_v38, 1  ;;  %v2431_v10 = vrot.slane %v2430_v42, 2  ;;  %v2742_v48 = vrot.slane %v2741_v43, 4 }
0x3b3d   : > { %v3893_v6 = vmul.f32 1.442695, %v3892_v36  ;;  %v2121_v51 = vmax.f32 %v2119_v38, %v2120_v44  ;;  %v2432_v1 = vmax.f32 %v2430_v42, %v2431_v10  ;;  %v2743_v0 = vmax.f32 %v2741_v43, %v2742_v48 }
0x3b3e   : > { %v3054_v14 = vpop.xlane.xlu1 %3053 }
0x3b3f   : > { %5453 = vpow2.f32 %v3893_v6  ;;  %vm2122_vm12 = vcmp.ge.f32.partialorder %v2115_v29, %v2121_v51  ;;  %v2433_v9 = vrot.slane %v2432_v1, 1  ;;  %v2744_v52 = vrot.slane %v2743_v0, 2 }
0x3b40   : > { %v2123_v54 = vsel %vm2122_vm12, %v6173_v39, 8  ;;  %v3055_v41 = vrot.slane %v3054_v14, 4 }
0x3b41   : > { %v2124_v55 = vrot.slane %v2123_v54, 4  ;;  %v2434_v56 = vmax.f32 %v2432_v1, %v2433_v9  ;;  %v2745_v57 = vmax.f32 %v2743_v0, %v2744_v52 }
0x3b42   : > { %v3056_v58 = vmax.f32 %v3054_v14, %v3055_v41  ;;  %v3680_v46 = vpop.xlane.xlu1 %3679  ;;  %v5462_v41 = vld [vmem:[%s6090_s19] sm:$0xff] }
0x3b43   : > { %vm2125_vm13 = vcmp.lt.s32.totalorder %v2123_v54, %v2124_v55  ;;  %vm2435_vm14 = vcmp.ge.f32.partialorder %v2428_v18, %v2434_v56  ;;  %v2746_v22 = vrot.slane %v2745_v57, 1  ;;  %v3681_v13 = vrot.slane %v3680_v46, 4 }
0x3b44   : > { %v2126_v62 = vsel %vm2125_vm13, %v2123_v54, %v2124_v55  ;;  %v2436_v63 = vsel %vm2435_vm14, %v6173_v39, 8  ;;  %v3057_v2 = vrot.slane %v3056_v58, 2 }
0x3b45   : > { %v2127_v27 = vrot.slane %v2126_v62, 2  ;;  %v2437_v4 = vrot.slane %v2436_v63, 4  ;;  %v2747_v8 = vmax.f32 %v2745_v57, %v2746_v22  ;;  %v3682_v11 = vmax.f32 %v3680_v46, %v3681_v13 }
0x3b46   : > { %v3058_v50 = vmax.f32 %v3056_v58, %v3057_v2 }
0x3b47   : > { %vm2128_vm15 = vcmp.lt.s32.totalorder %v2126_v62, %v2127_v27  ;;  %vm2438_vm0 = vcmp.lt.s32.totalorder %v2436_v63, %v2437_v4  ;;  %vm2748_vm2 = vcmp.ge.f32.partialorder %v2741_v43, %v2747_v8  ;;  %v3683_v35 = vrot.slane %v3682_v11, 2 }
0x3b48   : > { %v2129_v16 = vsel %vm2128_vm15, %v2126_v62, %v2127_v27  ;;  %v2439_v17 = vsel %vm2438_vm0, %v2436_v63, %v2437_v4  ;;  %v2749_v19 = vsel %vm2748_vm2, %v6173_v39, 8  ;;  %v3059_v59 = vrot.slane %v3058_v50, 1 }
0x3b49   : > { %v5454_v26 = vpop.eup %5453  ;;  %v2130_v15 = vrot.slane %v2129_v16, 1  ;;  %v2440_v28 = vrot.slane %v2439_v17, 2  ;;  %v2750_v24 = vrot.slane %v2749_v19, 4  ;;  %v3684_v61 = vmax.f32 %v3682_v11, %v3683_v35 }
0x3b4a   : > { %v3895_v5 = vrot.slane %v5454_v26, 4  ;;  %v3060_v20 = vmax.f32 %v3058_v50, %v3059_v59 }
0x3b4b   : > { %vm2131_vm3 = vcmp.lt.s32.totalorder %v2129_v16, %v2130_v15  ;;  %vm2441_vm4 = vcmp.lt.s32.totalorder %v2439_v17, %v2440_v28  ;;  %vm2751_vm5 = vcmp.lt.s32.totalorder %v2749_v19, %v2750_v24  ;;  %v3685_v21 = vrot.slane %v3684_v61, 1 }
0x3b4c   : > { %v3896_v7 = vadd.f32 %v5454_v26, %v3895_v5  ;;  %v2132_v23 = vsel %vm2131_vm3, %v2129_v16, %v2130_v15  ;;  %v2442_v3 = vsel %vm2441_vm4, %v2439_v17, %v2440_v28  ;;  %v2752_v47 = vsel %vm2751_vm5, %v2749_v19, %v2750_v24 }
0x3b4d   : > { %2133 = vst.msk [vmem:[%s6701_s17 + $0x1] sm:$0x1] %vm1819_vm8, %v2132_v23  ;;  %v2443_v25 = vrot.slane %v2442_v3, 1  ;;  %v2753_v31 = vrot.slane %v2752_v47, 2  ;;  %vm3061_vm6 = vcmp.ge.f32.partialorder %v3054_v14, %v3060_v20  ;;  %v3686_v29 = vmax.f32 %v3684_v61, %v3685_v21 }
0x3b4e   : > { %v3897_v12 = vrot.slane %v3896_v7, 2  ;;  %v3062_v32 = vsel %vm3061_vm6, %v6173_v39, 8 }
0x3b4f   : > { %vm2444_vm7 = vcmp.lt.s32.totalorder %v2442_v3, %v2443_v25  ;;  %vm2754_vm9 = vcmp.lt.s32.totalorder %v2752_v47, %v2753_v31  ;;  %v3063_v33 = vrot.slane %v3062_v32, 4  ;;  %vm3687_vm10 = vcmp.ge.f32.partialorder %v3680_v46, %v3686_v29 }
0x3b50   : > { %v3898_v34 = vadd.f32 %v3897_v12, %v3896_v7  ;;  %v2445_v18 = vsel %vm2444_vm7, %v2442_v3, %v2443_v25  ;;  %v2755_v49 = vsel %vm2754_vm9, %v2752_v47, %v2753_v31  ;;  %v3688_v45 = vsel %vm3687_vm10, %v6173_v39, 8 }
0x3b51   : > { %2446 = vst.msk [vmem:[%s6701_s17 + $0x2] sm:$0x1] %vm1819_vm8, %v2445_v18  ;;  %v2756_v60 = vrot.slane %v2755_v49, 1  ;;  %vm3064_vm11 = vcmp.lt.s32.totalorder %v3062_v32, %v3063_v33  ;;  %v3689_v37 = vrot.slane %v3688_v45, 4 }
0x3b52   : > { %v3899_v38 = vrot.slane %v3898_v34, 1  ;;  %v3065_v42 = vsel %vm3064_vm11, %v3062_v32, %v3063_v33 }
0x3b53   : > { %vm2757_vm12 = vcmp.lt.s32.totalorder %v2755_v49, %v2756_v60  ;;  %v3066_v43 = vrot.slane %v3065_v42, 2  ;;  %vm3690_vm13 = vcmp.lt.s32.totalorder %v3688_v45, %v3689_v37 }
0x3b54   : > { %v2758_v36 = vsel %vm2757_vm12, %v2755_v49, %v2756_v60  ;;  %v3691_v44 = vsel %vm3690_vm13, %v3688_v45, %v3689_v37  ;;  %v3900_v10 = vadd.f32 %v3899_v38, %v3898_v34 }
0x3b55   : > { %2759 = vst.msk [vmem:[%s6701_s17 + $0x3] sm:$0x1] %vm1819_vm8, %v2758_v36  ;;  %vm3067_vm14 = vcmp.lt.s32.totalorder %v3065_v42, %v3066_v43  ;;  %v3692_v48 = vrot.slane %v3691_v44, 2 }
0x3b56   : > { %v3068_v6 = vsel %vm3067_vm14, %v3065_v42, %v3066_v43  ;;  %5455 = vrcp.f32 %v3900_v10 }
0x3b57   : > { %v3069_v51 = vrot.slane %v3068_v6, 1  ;;  %vm3693_vm15 = vcmp.lt.s32.totalorder %v3691_v44, %v3692_v48 }
0x3b58   : > { %v3694_v1 = vsel %vm3693_vm15, %v3691_v44, %v3692_v48 }
0x3b59   : > { %vm3070_vm0 = vcmp.lt.s32.totalorder %v3068_v6, %v3069_v51  ;;  %v3695_v0 = vrot.slane %v3694_v1, 1 }
0x3b5a   : > { %v3071_v14 = vsel %vm3070_vm0, %v3068_v6, %v3069_v51 }
0x3b5b   : > { %3072 = vst.msk [vmem:[%s6701_s17 + $0x4] sm:$0x1] %vm1819_vm8, %v3071_v14  ;;  %vm3696_vm2 = vcmp.lt.s32.totalorder %v3694_v1, %v3695_v0 }
0x3b5c   : > { %v3697_v9 = vsel %vm3696_vm2, %v3694_v1, %v3695_v0 }
0x3b5d   : > { %3698 = vst.msk [vmem:[%s6701_s17 + $0x6] sm:$0x1] %vm1819_vm8, %v3697_v9 }
0x3b60   : > { %v5456_v52 = vpop.eup %5455 }
0x3b61   : > { %v3902_v54 = vmul.f32 %v5456_v52, %v5454_v26 }
0x3b63   : > { %v3903_v55 = vmul.f32 %v5462_v41, %v3902_v54 }
0x3b65   : > { %v3904_v56 = vsel %vm666_vm1, %v3903_v55, 0.0 }
0x3b66   : > { %v3905_v57 = vrot.slane %v3904_v56, 4 }
0x3b68   : > { %v3906_v58 = vadd.f32 %v3905_v57, %v3904_v56 }
0x3b6a   : > { %v3907_v46 = vrot.slane %v3906_v58, 2 }
0x3b6c   : > { %v3908_v22 = vadd.f32 %v3907_v46, %v3906_v58 }
0x3b6e   : > { %v3909_v13 = vrot.slane %v3908_v22, 1 }
0x3b70   : > { %v3910_v62 = vadd.f32 %v3909_v13, %v3908_v22 }
0x3b72   : > { %4885 = vmatmul.mubr.msk.f32.vlgmr.msra.gmra.mrb[40].mxu0 %vm666_vm1, %v3910_v62 }
0x3c45   : > { %v3980_v63 = vpop.f32.mrb[40].mxu0 }
0x3c46   : > { %v3987_v2 = vrot.slane %v3980_v63, %v6176_v40  ;;  %v4886_v27 = vpop.f32.mrb[41].mxu0 }
0x3c48   : > { %v3988_v4 = vadd.f32 %v3987_v2, %v6339_v53 }
0x3c4a   : > { %5457 = vtanh.f32 %v3988_v4 }
0x3c54   : > { %v5458_v8 = vpop.eup %5457 }
0x3c55   : > { %v3990_v11 = vmul.f32 %v5458_v8, %v6682_v30 }
0x3c57   : > { %v3991_v50 = vsel %vm666_vm1, %v3990_v11, 0.0 }
0x3c58   : > { %3992 = vadd.xlane.f32.xlu0 %v3991_v50 }
0x3ce5   : > { %v3993_v35 = vpop.xlane.xlu0 %3992 }
0x3ce6   : > { %v3994_v16 = vrot.slane %v3993_v35, 4 }
0x3ce8   : > { %v3995_v17 = vmax.f32 %v3993_v35, %v3994_v16 }
0x3cea   : > { %v3996_v19 = vrot.slane %v3995_v17, 2 }
0x3cec   : > { %v3997_v59 = vmax.f32 %v3995_v17, %v3996_v19 }
0x3cee   : > { %v3998_v26 = vrot.slane %v3997_v59, 1 }
0x3cf0   : > { %v3999_v15 = vmax.f32 %v3997_v59, %v3998_v26 }
0x3cf2   : > { %vm4000_vm3 = vcmp.ge.f32.partialorder %v3993_v35, %v3999_v15 }
0x3cf3   : > { %v4001_v40 = vsel %vm4000_vm3, %v6173_v39, 8 }
0x3cf4   : > { %v4002_v28 = vrot.slane %v4001_v40, 4 }
0x3cf6   : > { %vm4003_vm4 = vcmp.lt.s32.totalorder %v4001_v40, %v4002_v28 }
0x3cf7   : > { %v4004_v53 = vsel %vm4003_vm4, %v4001_v40, %v4002_v28 }
0x3cf8   : > { %v4005_v24 = vrot.slane %v4004_v53, 2 }
0x3cfa   : > { %vm4006_vm5 = vcmp.lt.s32.totalorder %v4004_v53, %v4005_v24 }
0x3cfb   : > { %v4007_v30 = vsel %vm4006_vm5, %v4004_v53, %v4005_v24 }
0x3cfc   : > { %v4008_v61 = vrot.slane %v4007_v30, 1 }
0x3cfe   : > { %vm4009_vm1 = vcmp.lt.s32.totalorder %v4007_v30, %v4008_v61 }
0x3cff   : > { %v4010_v5 = vsel %vm4009_vm1, %v4007_v30, %v4008_v61 }
0x3d00   : > { %4011 = vst.msk [vmem:[%s6701_s17 + $0x7] sm:$0x1] %vm1819_vm8, %v4010_v5 }
0x3d01 PF: > { %p26_p10 = scmp.ge.s32.totalorder %s6029_s13, 4   ;;  %s6806_s21 = smov %s5731_s22 }
0x3d02   : > { %s6807_s22 = smov %s5735_s23  ;;  %s6808_s23 = smov %s6040_s12 }
0x3d03   : > { %s6809_s24 = smov %s6029_s13  ;;  %28 = sbr.rel (!%p26_p10) target bundleno = 13 (0xd), region = 136 }
0x3d0a   :  { %4031 = vsyncpa [#allocation3], 1 }
0x3d0b   :  { %4033 = vsyncpa [#allocation3 + $0x1], 1 }
0x3d0c   :  { %4034 = vsyncpa [#allocation5], 1 }
0x3d0d   :  { %4035 = vsyncpa [#allocation8], 1 }
0x3d0e   :  { %4036 = vsyncpa [#allocation11], 1 }
0x3d0f   :  { %4037 = vsyncpa [#allocation14], 1 }

</bundles_post_ra>
